<compile_context>
chip_gen: v7x
topology: tpu7x:2x2x1
jax: 0.10.0
libtpu: 0.0.40
codegen_flags: <defaults>
</compile_context>

<pallas_src>
import math

import jax
import jax.numpy as jnp
from jax.experimental import pallas as pl
from jax.experimental.pallas import tpu as pltpu


def _gelu_tanh(x):
    """GELU(x) = 0.5x * (1 + tanh(sqrt(2/pi) * (x + 0.044715 x^3))) in f32."""
    c = jnp.float32(math.sqrt(2.0 / math.pi))
    inner = x + jnp.float32(0.044715) * (x * x * x)
    return jnp.float32(0.5) * x * (jnp.float32(1.0) + jnp.tanh(c * inner))


def _ffn_kernel(x_ref, w1_ref, b1_ref, w2_ref, b2_ref, o_ref, acc_ref):
    """Fused FFN: for hidden block j, acc += GELU(x@W1[:,j]+b1[j]) @ W2[j,:]."""
    j = pl.program_id(1)

    @pl.when(j == 0)
    def _():
        acc_ref[...] = jnp.zeros_like(acc_ref)

    # First matmul slice (bf16 MXU, f32 accumulate) + fused bias + tanh-GELU.
    h = jnp.dot(x_ref[...], w1_ref[...], preferred_element_type=jnp.float32)
    h = _gelu_tanh(h + b1_ref[...].astype(jnp.float32))

    # Second matmul partial sum; recast the VMEM intermediate to bf16 for MXU.
    acc_ref[...] += jnp.dot(
        h.astype(w2_ref.dtype), w2_ref[...], preferred_element_type=jnp.float32
    )

    @pl.when(j == pl.num_programs(1) - 1)
    def _():
        o_ref[...] = (
            acc_ref[...] + b2_ref[...].astype(jnp.float32)
        ).astype(o_ref.dtype)


def _round_up(x, m):
    return ((x + m - 1) // m) * m


def _pick_divisor_tile(dim, candidates):
    for c in candidates:
        if dim % c == 0:
            return c
    return candidates[-1]


def feed_forward_pallas(x, w1, b1, w2, b2):
    """FeedForward: Linear(E,4E) -> GELU -> Linear(4E,E), fully fused in VMEM."""
    orig_shape = x.shape
    out_dtype = x.dtype
    E = orig_shape[-1]
    H = w1.shape[1]
    x2d = x.reshape(-1, E)
    M = x2d.shape[0]

    # MXU-friendly compute dtype; accumulation / bias / GELU stay in f32.
    x_bf = x2d.astype(jnp.bfloat16)
    w1_bf = w1.astype(jnp.bfloat16)
    w2_bf = w2.astype(jnp.bfloat16)
    b1_r = b1.astype(jnp.float32).reshape(1, H)
    b2_r = b2.astype(jnp.float32).reshape(1, E)

    # Lane dims (E, H) are multiples of 128 for the GPT config -> no weight
    # padding; rows aligned to 16 (bf16 sublane packing).
    Ep = _round_up(E, 128)
    Hp = _round_up(H, 128)
    m16 = _round_up(M, 16)
    tm = m16 if m16 <= 512 else 256
    Mp = _round_up(M, tm)
    th = _pick_divisor_tile(Hp, (1024, 512, 256, 128))

    if (Mp, Ep) != (M, E):
        x_bf = jnp.pad(x_bf, ((0, Mp - M), (0, Ep - E)))
    if Ep != E or Hp != H:  # never triggers for E=768 / H=3072
        w1_bf = jnp.pad(w1_bf, ((0, Ep - E), (0, Hp - H)))
        w2_bf = jnp.pad(w2_bf, ((0, Hp - H), (0, Ep - E)))
        b1_r = jnp.pad(b1_r, ((0, 0), (0, Hp - H)))
        b2_r = jnp.pad(b2_r, ((0, 0), (0, Ep - E)))

    grid = (Mp // tm, Hp // th)
    out_bytes = jnp.dtype(out_dtype).itemsize

    # VMEM working set: double-buffered streamed blocks + resident accumulator.
    need = (
        2 * tm * Ep * 2        # x block (bf16)
        + 2 * Ep * th * 2      # W1 block (bf16)
        + 2 * th * 4           # b1 block (f32)
        + 2 * th * Ep * 2      # W2 block (bf16)
        + 2 * Ep * 4           # b2 (f32)
        + 2 * tm * Ep * out_bytes  # output block
        + tm * Ep * 4          # f32 accumulator scratch
    )
    try:  # generation-aware cap (v7x has only 64 MiB of VMEM)
        cap = int(0.75 * pltpu.get_tpu_info().vmem_capacity_bytes)
    except Exception:
        cap = 48 << 20
    vmem_limit = int(min(max(2 * need, 16 << 20), max(cap, 32 << 20), 96 << 20))

    cost = pl.CostEstimate(
        flops=4 * Mp * Ep * Hp,                 # two matmuls
        transcendentals=Mp * Hp,                # one tanh per hidden element
        bytes_accessed=(Mp * Ep * 2 + Ep * Hp * 2 + Hp * Ep * 2
                        + Hp * 4 + Ep * 4 + Mp * Ep * out_bytes),
    )

    out = pl.pallas_call(
        _ffn_kernel,
        out_shape=jax.ShapeDtypeStruct((Mp, Ep), out_dtype),
        grid_spec=pltpu.PrefetchScalarGridSpec(
            num_scalar_prefetch=0,
            grid=grid,
            in_specs=[
                pl.BlockSpec((tm, Ep), lambda i, j: (i, 0)),   # x rows (resident over j)
                pl.BlockSpec((Ep, th), lambda i, j: (0, j)),   # W1 column block
                pl.BlockSpec((1, th), lambda i, j: (0, j)),    # b1 block
                pl.BlockSpec((th, Ep), lambda i, j: (j, 0)),   # W2 row block
                pl.BlockSpec((1, Ep), lambda i, j: (0, 0)),    # b2
            ],
            out_specs=pl.BlockSpec((tm, Ep), lambda i, j: (i, 0)),
            scratch_shapes=[pltpu.VMEM((tm, Ep), jnp.float32)],
        ),
        compiler_params=pltpu.CompilerParams(
            dimension_semantics=("parallel", "arbitrary"),
            vmem_limit_bytes=vmem_limit,
        ),
        cost_estimate=cost,
    )(x_bf, w1_bf, b1_r, w2_bf, b2_r)

    if (Mp, Ep) != (M, E):
        out = out[:M, :E]
    return out.reshape(orig_shape)


def feed_forward_ref(x, w1, b1, w2, b2):
    h = x @ w1 + b1
    a = jnp.sqrt(jnp.float32(2.0 / jnp.pi))
    h = 0.5 * h * (1.0 + jnp.tanh(a * (h + 0.044715 * jnp.power(h, 3))))
    return h @ w2 + b2


if __name__ == "__main__":
    # Shapes implied by the module: x = torch.rand(2, 3, 768), emb_dim = 768.
    B, S, E = 2, 3, 768
    H = 4 * E

    key = jax.random.PRNGKey(0)
    k1, k2, k3, k4, k5 = jax.random.split(key, 5)
    x = jax.random.uniform(k1, (B, S, E), dtype=jnp.float32)

    # nn.Linear default init: U(-1/sqrt(fan_in), 1/sqrt(fan_in)).
    lim1 = 1.0 / math.sqrt(E)
    w1 = jax.random.uniform(k2, (E, H), jnp.float32, -lim1, lim1)
    b1 = jax.random.uniform(k3, (H,), jnp.float32, -lim1, lim1)
    lim2 = 1.0 / math.sqrt(H)
    w2 = jax.random.uniform(k4, (H, E), jnp.float32, -lim2, lim2)
    b2 = jax.random.uniform(k5, (E,), jnp.float32, -lim2, lim2)

    ffn = jax.jit(feed_forward_pallas)
    y = ffn(x, w1, b1, w2, b2)
    jax.block_until_ready(y)

    y_ref = feed_forward_ref(x, w1, b1, w2, b2)
    assert y.shape == x.shape and y.dtype == x.dtype
    max_err = float(jnp.max(jnp.abs(y - y_ref)))
    # bf16 MXU inputs with f32 accumulation: errors are O(1e-3) at these scales.
    assert jnp.allclose(y, y_ref, atol=2e-2, rtol=2e-2), max_err
    print("KERNEL_OK")
</pallas_src>

<mosaic_0001>
module attributes {stable_mosaic.version = 11 : i64} {
  func.func @_ffn_kernel(%arg0: i32, %arg1: i32, %arg2: memref<16x768xbf16, #tpu.memory_space<vmem>>, %arg3: memref<768x1024xbf16, #tpu.memory_space<vmem>>, %arg4: memref<1x1024xf32, #tpu.memory_space<vmem>>, %arg5: memref<1024x768xbf16, #tpu.memory_space<vmem>>, %arg6: memref<1x768xf32, #tpu.memory_space<vmem>>, %arg7: memref<16x768xf32, #tpu.memory_space<vmem>>, %arg8: memref<16x768xf32, #tpu.memory_space<vmem>>) attributes {dimension_semantics = [#tpu.dimension_semantics<parallel>, #tpu.dimension_semantics<arbitrary>], iteration_bounds = array<i64: 1, 3>, scalar_prefetch = 0 : i64, scratch_operands = 1 : i64, tpu.core_type = #tpu.core_type<tc>, window_params = [{transform_indices = @transform_0, window_bounds = array<i64: 16, 768>}, {transform_indices = @transform_1, window_bounds = array<i64: 768, 1024>}, {transform_indices = @transform_2, window_bounds = array<i64: 1, 1024>}, {transform_indices = @transform_3, window_bounds = array<i64: 1024, 768>}, {pipeline_mode = #tpu.pipeline_mode<synchronous>, transform_indices = @transform_4, window_bounds = array<i64: 1, 768>}, {transform_indices = @transform_5, window_bounds = array<i64: 16, 768>}]} {
    %c0_i32 = arith.constant 0 : i32
    %0 = arith.cmpi eq, %arg1, %c0_i32 : i32
    %1 = arith.extui %0 : i1 to i32
    %c0_i32_0 = arith.constant 0 : i32
    %2 = arith.cmpi ne, %1, %c0_i32_0 : i32
    scf.if %2 {
      %cst_18 = arith.constant 0.000000e+00 : f32
      %31 = vector.broadcast %cst_18 : f32 to vector<16x768xf32>
      %c0_19 = arith.constant 0 : index
      %c0_20 = arith.constant 0 : index
      %32 = vector.load %arg8[%c0_19, %c0_20] : memref<16x768xf32, #tpu.memory_space<vmem>>, vector<16x768xf32>
      tpu.vector_store %arg8[%c0_19, %c0_20], %31 {strides = array<i32>} : memref<16x768xf32, #tpu.memory_space<vmem>>, vector<16x768xf32>,
    } else {
    }
    %c0 = arith.constant 0 : index
    %c0_1 = arith.constant 0 : index
    %3 = vector.load %arg2[%c0, %c0_1] : memref<16x768xbf16, #tpu.memory_space<vmem>>, vector<16x768xbf16>
    %c0_2 = arith.constant 0 : index
    %c0_3 = arith.constant 0 : index
    %4 = vector.load %arg3[%c0_2, %c0_3] : memref<768x1024xbf16, #tpu.memory_space<vmem>>, vector<768x1024xbf16>
    %cst = arith.constant dense<0.000000e+00> : vector<16x1024xf32>
    %5 = tpu.matmul %3, %4, %cst {dimension_numbers = #tpu.dot_dimension_numbers<[1], [0], [0], [1], [0, 0, 1, 1], [], []>} : vector<16x768xbf16>, vector<768x1024xbf16>, vector<16x1024xf32> -> vector<16x1024xf32>
    %c0_4 = arith.constant 0 : index
    %c0_5 = arith.constant 0 : index
    %6 = vector.load %arg4[%c0_4, %c0_5] : memref<1x1024xf32, #tpu.memory_space<vmem>>, vector<1x1024xf32>
    %7 = vector.broadcast %6 : vector<1x1024xf32> to vector<16x1024xf32>
    %8 = arith.addf %5, %7 : vector<16x1024xf32>
    %9 = arith.mulf %8, %8 : vector<16x1024xf32>
    %10 = arith.mulf %9, %8 : vector<16x1024xf32>
    %cst_6 = arith.constant 4.471500e-02 : f32
    %11 = vector.broadcast %cst_6 : f32 to vector<16x1024xf32>
    %12 = arith.mulf %11, %10 : vector<16x1024xf32>
    %13 = arith.addf %8, %12 : vector<16x1024xf32>
    %cst_7 = arith.constant 5.000000e-01 : f32
    %14 = vector.broadcast %cst_7 : f32 to vector<16x1024xf32>
    %15 = arith.mulf %14, %8 : vector<16x1024xf32>
    %cst_8 = arith.constant 0.797884583 : f32
    %16 = vector.broadcast %cst_8 : f32 to vector<16x1024xf32>
    %17 = arith.mulf %16, %13 : vector<16x1024xf32>
    %18 = math.tanh %17 : vector<16x1024xf32>
    %cst_9 = arith.constant 1.000000e+00 : f32
    %19 = vector.broadcast %cst_9 : f32 to vector<16x1024xf32>
    %20 = arith.addf %19, %18 : vector<16x1024xf32>
    %21 = arith.mulf %15, %20 : vector<16x1024xf32>
    %c0_10 = arith.constant 0 : index
    %c0_11 = arith.constant 0 : index
    %22 = vector.load %arg8[%c0_10, %c0_11] : memref<16x768xf32, #tpu.memory_space<vmem>>, vector<16x768xf32>
    %23 = arith.truncf %21 : vector<16x1024xf32> to vector<16x1024xbf16>
    %c0_12 = arith.constant 0 : index
    %c0_13 = arith.constant 0 : index
    %24 = vector.load %arg5[%c0_12, %c0_13] : memref<1024x768xbf16, #tpu.memory_space<vmem>>, vector<1024x768xbf16>
    %cst_14 = arith.constant dense<0.000000e+00> : vector<16x768xf32>
    %25 = tpu.matmul %23, %24, %cst_14 {dimension_numbers = #tpu.dot_dimension_numbers<[1], [0], [0], [1], [0, 0, 1, 1], [], []>} : vector<16x1024xbf16>, vector<1024x768xbf16>, vector<16x768xf32> -> vector<16x768xf32>
    %26 = arith.addf %22, %25 : vector<16x768xf32>
    %c0_15 = arith.constant 0 : index
    %c0_16 = arith.constant 0 : index
    %27 = vector.load %arg8[%c0_15, %c0_16] : memref<16x768xf32, #tpu.memory_space<vmem>>, vector<16x768xf32>
    tpu.vector_store %arg8[%c0_15, %c0_16], %26 {strides = array<i32>} : memref<16x768xf32, #tpu.memory_space<vmem>>, vector<16x768xf32>,
    %c2_i32 = arith.constant 2 : i32
    %28 = arith.cmpi eq, %arg1, %c2_i32 : i32
    %29 = arith.extui %28 : i1 to i32
    %c0_i32_17 = arith.constant 0 : i32
    %30 = arith.cmpi ne, %29, %c0_i32_17 : i32
    scf.if %30 {
      %c0_18 = arith.constant 0 : index
      %c0_19 = arith.constant 0 : index
      %31 = vector.load %arg8[%c0_18, %c0_19] : memref<16x768xf32, #tpu.memory_space<vmem>>, vector<16x768xf32>
      %c0_20 = arith.constant 0 : index
      %c0_21 = arith.constant 0 : index
      %32 = vector.load %arg6[%c0_20, %c0_21] : memref<1x768xf32, #tpu.memory_space<vmem>>, vector<1x768xf32>
      %33 = vector.broadcast %32 : vector<1x768xf32> to vector<16x768xf32>
      %34 = arith.addf %31, %33 : vector<16x768xf32>
      %c0_22 = arith.constant 0 : index
      %c0_23 = arith.constant 0 : index
      %35 = vector.load %arg7[%c0_22, %c0_23] : memref<16x768xf32, #tpu.memory_space<vmem>>, vector<16x768xf32>
      tpu.vector_store %arg7[%c0_22, %c0_23], %34 {strides = array<i32>} : memref<16x768xf32, #tpu.memory_space<vmem>>, vector<16x768xf32>,
    } else {
    }
    return
  }
  func.func @transform_0(%arg0: i32, %arg1: i32) -> (i32, i32) {
    %c0_i32 = arith.constant 0 : i32
    %c0_i32_0 = arith.constant 0 : i32
    return %arg0, %c0_i32 : i32, i32
  }
  func.func @transform_1(%arg0: i32, %arg1: i32) -> (i32, i32) {
    %c0_i32 = arith.constant 0 : i32
    %c0_i32_0 = arith.constant 0 : i32
    return %c0_i32, %arg1 : i32, i32
  }
  func.func @transform_2(%arg0: i32, %arg1: i32) -> (i32, i32) {
    %c0_i32 = arith.constant 0 : i32
    %c0_i32_0 = arith.constant 0 : i32
    return %c0_i32, %arg1 : i32, i32
  }
  func.func @transform_3(%arg0: i32, %arg1: i32) -> (i32, i32) {
    %c0_i32 = arith.constant 0 : i32
    %c0_i32_0 = arith.constant 0 : i32
    return %arg1, %c0_i32 : i32, i32
  }
  func.func @transform_4(%arg0: i32, %arg1: i32) -> (i32, i32) {
    %c0_i32 = arith.constant 0 : i32
    %c0_i32_0 = arith.constant 0 : i32
    %c0_i32_1 = arith.constant 0 : i32
    return %c0_i32, %c0_i32_0 : i32, i32
  }
  func.func @transform_5(%arg0: i32, %arg1: i32) -> (i32, i32) {
    %c0_i32 = arith.constant 0 : i32
    %c0_i32_0 = arith.constant 0 : i32
    return %arg0, %c0_i32 : i32, i32
  }
}

</mosaic_0001>

<bundles_post_ra>
// kernel: feed_forward_pallas.1
= control target key start
LH: loop header
LB: loop body
LE: loop exit
PB: predicated region body
PF: predicated region fallthrough
CT: control target
= control target key end

     0   :  { %s8815_s18 = smov 0   ;;  %s8817_s19 = smov 0   ;;  %s10695_s0 = inlined_call_operand.vmem [shape: bf16[16,768], index: 0, kind: input, shape index: {}]   ;;  %s10696_s1 = inlined_call_operand.vmem [shape: bf16[768,3072], index: 1, kind: input, shape index: {}]   ;;  %s10697_s2 = inlined_call_operand.vmem [shape: f32[1,3072], index: 2, kind: input, shape index: {}]   ;;  %s10698_s3 = inlined_call_operand.vmem [shape: bf16[3072,768], index: 3, kind: input, shape index: {}]   ;;  %s10699_s4 = inlined_call_operand.vmem [shape: f32[1,768], index: 4, kind: input, shape index: {}]   ;;  %s10700_s5 = inlined_call_operand.vmem [shape: f32[16,768], index: 5, kind: output, shape index: {}]  }
   0x1   :  { %s8819_s20 = smov 0   ;;  %s8821_s21 = smov 0  }
   0x2   :  { %s8823_s22 = smov 0  }
   0x3 LB: > { %s24_s23 = sadd.s32 1, %s8778_s21  ;;  %p67_p1 = scmp.ne.s32.totalorder %s8770_s19, %s8766_s18  ;;  %s8782_s22 = sphi %s8823_s22, %s15_s22   ;;  %s8778_s21 = sphi %s8821_s21, %s10704_s21   ;;  %s8774_s20 = sphi %s8819_s20, %s10703_s20   ;;  %s8770_s19 = sphi %s8817_s19, %s10702_s19   ;;  %s8766_s18 = sphi %s8815_s18, %s10701_s18  }
   0x4   : > { %p25_p0 = scmp.ge.s32.totalorder %s24_s23, 3  ;;  %p68_p2 = scmp.eq.s32.totalorder %s8782_s22, 0 }
   0x5   : > { %s60_s25 = sadd.s32 1, %s8770_s19  ;;  %p7199_p5 = scmp.ge.s32.totalorder %s8782_s22, 3 }
   0x6   : > { %s10706_s23 = smov (%p25_p0, %s24_s23), 0  ;;  %p69_p3 = por %p68_p2, %p67_p1 }
   0x7   : > { %s57_s24 = ssub.s32 %s8778_s21, %s10706_s23  ;;  %205 = sbr.rel (%p7199_p5) target bundleno = 211 (0xd3), region = 24 }
   0x8   : > { %p58_p4 = scmp.eq.s32.totalorder %s57_s24, 0 }
   0xa   : > { %s8850_s26 = scalar_select %p58_p4, %s8770_s19, %s60_s25  }
   0xe   : > { %208 = sbr.rel (!%p69_p3) target bundleno = 211 (0xd3), region = 28  ;;  %s210_s27 = sand.u32 (%p69_p3), 1, %s8770_s19  }
   0xf   : > { %s7986_s28 = sshll.u32 (%p69_p3), %s8778_s21, 5  ;;  %s8071_s29 = smul.u32 (%p69_p3), 3072, %s210_s27 }
  0x10   : > { %s8858_s7 = scalar_lea.vmem (%p69_p3), %s10696_s1, %s7986_s28 }
  0x11   : > { %v228_v0 = vld [vmem:[%s8858_s7] sm:$0xff] (%p69_p3)  ;;  %v230_v1 = vld [vmem:[%s8858_s7 + $0x8] sm:$0xff] (%p69_p3)  ;;  %v232_v2 = vld [vmem:[%s8858_s7 + $0x10] sm:$0xff] (%p69_p3)  ;;  %s8866_s8 = scalar_lea.vmem (%p69_p3), [#allocation3], %s8071_s29 }
  0x12   : > { %v234_v3 = vld [vmem:[%s8858_s7 + $0x18] sm:$0xff] (%p69_p3)  ;;  %v236_v4 = vld [vmem:[%s8858_s7 + $0x60] sm:$0xff] (%p69_p3)  ;;  %v238_v5 = vld [vmem:[%s8858_s7 + $0x68] sm:$0xff] (%p69_p3)  ;;  %229 = vst [vmem:[%s8866_s8] sm:$0xff] (%p69_p3), %v228_v0 }
  0x13   : > { %231 = vst [vmem:[%s8866_s8 + $0x8] sm:$0xff] (%p69_p3), %v230_v1  ;;  %233 = vst [vmem:[%s8866_s8 + $0x10] sm:$0xff] (%p69_p3), %v232_v2  ;;  %v240_v6 = vld [vmem:[%s8858_s7 + $0x70] sm:$0xff] (%p69_p3)  ;;  %v242_v7 = vld [vmem:[%s8858_s7 + $0x78] sm:$0xff] (%p69_p3) }
  0x14   : > { %235 = vst [vmem:[%s8866_s8 + $0x18] sm:$0xff] (%p69_p3), %v234_v3  ;;  %237 = vst [vmem:[%s8866_s8 + $0x20] sm:$0xff] (%p69_p3), %v236_v4  ;;  %v244_v8 = vld [vmem:[%s8858_s7 + $0xc0] sm:$0xff] (%p69_p3)  ;;  %v246_v9 = vld [vmem:[%s8858_s7 + $0xc8] sm:$0xff] (%p69_p3) }
  0x15   : > { %239 = vst [vmem:[%s8866_s8 + $0x28] sm:$0xff] %v238_v5  ;;  %241 = vst [vmem:[%s8866_s8 + $0x30] sm:$0xff] %v240_v6  ;;  %v248_v10 = vld [vmem:[%s8858_s7 + $0xd0] sm:$0xff]  ;;  %v250_v11 = vld [vmem:[%s8858_s7 + $0xd8] sm:$0xff] }
  0x16   : > { %243 = vst [vmem:[%s8866_s8 + $0x38] sm:$0xff] %v242_v7  ;;  %245 = vst [vmem:[%s8866_s8 + $0x40] sm:$0xff] %v244_v8  ;;  %v252_v12 = vld [vmem:[%s8858_s7 + $0x120] sm:$0xff]  ;;  %v254_v13 = vld [vmem:[%s8858_s7 + $0x128] sm:$0xff] }
  0x17   : > { %247 = vst [vmem:[%s8866_s8 + $0x48] sm:$0xff] %v246_v9  ;;  %249 = vst [vmem:[%s8866_s8 + $0x50] sm:$0xff] %v248_v10  ;;  %v256_v14 = vld [vmem:[%s8858_s7 + $0x130] sm:$0xff]  ;;  %v258_v15 = vld [vmem:[%s8858_s7 + $0x138] sm:$0xff] }
  0x18   : > { %251 = vst [vmem:[%s8866_s8 + $0x58] sm:$0xff] %v250_v11  ;;  %253 = vst [vmem:[%s8866_s8 + $0x60] sm:$0xff] %v252_v12  ;;  %v260_v16 = vld [vmem:[%s8858_s7 + $0x180] sm:$0xff]  ;;  %v262_v17 = vld [vmem:[%s8858_s7 + $0x188] sm:$0xff] }
  0x19   : > { %255 = vst [vmem:[%s8866_s8 + $0x68] sm:$0xff] %v254_v13  ;;  %257 = vst [vmem:[%s8866_s8 + $0x70] sm:$0xff] %v256_v14  ;;  %v264_v18 = vld [vmem:[%s8858_s7 + $0x190] sm:$0xff]  ;;  %v266_v19 = vld [vmem:[%s8858_s7 + $0x198] sm:$0xff] }
  0x1a   : > { %259 = vst [vmem:[%s8866_s8 + $0x78] sm:$0xff] %v258_v15  ;;  %261 = vst [vmem:[%s8866_s8 + $0x80] sm:$0xff] %v260_v16  ;;  %v268_v20 = vld [vmem:[%s8858_s7 + $0x1e0] sm:$0xff]  ;;  %v270_v21 = vld [vmem:[%s8858_s7 + $0x1e8] sm:$0xff] }
  0x1b   : > { %263 = vst [vmem:[%s8866_s8 + $0x88] sm:$0xff] %v262_v17  ;;  %265 = vst [vmem:[%s8866_s8 + $0x90] sm:$0xff] %v264_v18  ;;  %v272_v22 = vld [vmem:[%s8858_s7 + $0x1f0] sm:$0xff]  ;;  %v274_v23 = vld [vmem:[%s8858_s7 + $0x1f8] sm:$0xff] }
  0x1c   : > { %267 = vst [vmem:[%s8866_s8 + $0x98] sm:$0xff] %v266_v19  ;;  %269 = vst [vmem:[%s8866_s8 + $0xa0] sm:$0xff] %v268_v20  ;;  %v276_v24 = vld [vmem:[%s8858_s7 + $0x240] sm:$0xff]  ;;  %v278_v25 = vld [vmem:[%s8858_s7 + $0x248] sm:$0xff] }
  0x1d   : > { %271 = vst [vmem:[%s8866_s8 + $0xa8] sm:$0xff] %v270_v21  ;;  %273 = vst [vmem:[%s8866_s8 + $0xb0] sm:$0xff] %v272_v22  ;;  %v280_v26 = vld [vmem:[%s8858_s7 + $0x250] sm:$0xff]  ;;  %v282_v27 = vld [vmem:[%s8858_s7 + $0x258] sm:$0xff] }
  0x1e   : > { %275 = vst [vmem:[%s8866_s8 + $0xb8] sm:$0xff] %v274_v23  ;;  %277 = vst [vmem:[%s8866_s8 + $0xc0] sm:$0xff] %v276_v24  ;;  %v284_v28 = vld [vmem:[%s8858_s7 + $0x2a0] sm:$0xff]  ;;  %v286_v29 = vld [vmem:[%s8858_s7 + $0x2a8] sm:$0xff] }
  0x1f   : > { %279 = vst [vmem:[%s8866_s8 + $0xc8] sm:$0xff] %v278_v25  ;;  %281 = vst [vmem:[%s8866_s8 + $0xd0] sm:$0xff] %v280_v26  ;;  %v288_v30 = vld [vmem:[%s8858_s7 + $0x2b0] sm:$0xff]  ;;  %v290_v31 = vld [vmem:[%s8858_s7 + $0x2b8] sm:$0xff] }
  0x20   : > { %283 = vst [vmem:[%s8866_s8 + $0xd8] sm:$0xff] %v282_v27  ;;  %285 = vst [vmem:[%s8866_s8 + $0xe0] sm:$0xff] %v284_v28  ;;  %v292_v32 = vld [vmem:[%s8858_s7 + $0x300] sm:$0xff]  ;;  %v294_v33 = vld [vmem:[%s8858_s7 + $0x308] sm:$0xff] }
  0x21   : > { %287 = vst [vmem:[%s8866_s8 + $0xe8] sm:$0xff] %v286_v29  ;;  %289 = vst [vmem:[%s8866_s8 + $0xf0] sm:$0xff] %v288_v30  ;;  %v296_v34 = vld [vmem:[%s8858_s7 + $0x310] sm:$0xff]  ;;  %v298_v35 = vld [vmem:[%s8858_s7 + $0x318] sm:$0xff] }
  0x22   : > { %291 = vst [vmem:[%s8866_s8 + $0xf8] sm:$0xff] %v290_v31  ;;  %293 = vst [vmem:[%s8866_s8 + $0x100] sm:$0xff] %v292_v32  ;;  %v300_v36 = vld [vmem:[%s8858_s7 + $0x360] sm:$0xff]  ;;  %v302_v37 = vld [vmem:[%s8858_s7 + $0x368] sm:$0xff] }
  0x23   : > { %295 = vst [vmem:[%s8866_s8 + $0x108] sm:$0xff] %v294_v33  ;;  %297 = vst [vmem:[%s8866_s8 + $0x110] sm:$0xff] %v296_v34  ;;  %v304_v38 = vld [vmem:[%s8858_s7 + $0x370] sm:$0xff]  ;;  %v306_v39 = vld [vmem:[%s8858_s7 + $0x378] sm:$0xff] }
  0x24   : > { %299 = vst [vmem:[%s8866_s8 + $0x118] sm:$0xff] %v298_v35  ;;  %301 = vst [vmem:[%s8866_s8 + $0x120] sm:$0xff] %v300_v36  ;;  %v308_v40 = vld [vmem:[%s8858_s7 + $0x3c0] sm:$0xff]  ;;  %v310_v41 = vld [vmem:[%s8858_s7 + $0x3c8] sm:$0xff] }
  0x25   : > { %303 = vst [vmem:[%s8866_s8 + $0x128] sm:$0xff] %v302_v37  ;;  %305 = vst [vmem:[%s8866_s8 + $0x130] sm:$0xff] %v304_v38  ;;  %v312_v42 = vld [vmem:[%s8858_s7 + $0x3d0] sm:$0xff]  ;;  %v314_v43 = vld [vmem:[%s8858_s7 + $0x3d8] sm:$0xff] }
  0x26   : > { %307 = vst [vmem:[%s8866_s8 + $0x138] sm:$0xff] %v306_v39  ;;  %309 = vst [vmem:[%s8866_s8 + $0x140] sm:$0xff] %v308_v40  ;;  %v316_v44 = vld [vmem:[%s8858_s7 + $0x420] sm:$0xff]  ;;  %v318_v45 = vld [vmem:[%s8858_s7 + $0x428] sm:$0xff] }
  0x27   : > { %311 = vst [vmem:[%s8866_s8 + $0x148] sm:$0xff] %v310_v41  ;;  %313 = vst [vmem:[%s8866_s8 + $0x150] sm:$0xff] %v312_v42  ;;  %v320_v46 = vld [vmem:[%s8858_s7 + $0x430] sm:$0xff]  ;;  %v322_v47 = vld [vmem:[%s8858_s7 + $0x438] sm:$0xff] }
  0x28   : > { %315 = vst [vmem:[%s8866_s8 + $0x158] sm:$0xff] %v314_v43  ;;  %317 = vst [vmem:[%s8866_s8 + $0x160] sm:$0xff] %v316_v44  ;;  %v324_v48 = vld [vmem:[%s8858_s7 + $0x480] sm:$0xff]  ;;  %v326_v49 = vld [vmem:[%s8858_s7 + $0x488] sm:$0xff] }
  0x29   : > { %319 = vst [vmem:[%s8866_s8 + $0x168] sm:$0xff] %v318_v45  ;;  %321 = vst [vmem:[%s8866_s8 + $0x170] sm:$0xff] %v320_v46  ;;  %v328_v50 = vld [vmem:[%s8858_s7 + $0x490] sm:$0xff]  ;;  %v330_v51 = vld [vmem:[%s8858_s7 + $0x498] sm:$0xff] }
  0x2a   : > { %323 = vst [vmem:[%s8866_s8 + $0x178] sm:$0xff] %v322_v47  ;;  %325 = vst [vmem:[%s8866_s8 + $0x180] sm:$0xff] %v324_v48  ;;  %v332_v52 = vld [vmem:[%s8858_s7 + $0x4e0] sm:$0xff]  ;;  %v334_v53 = vld [vmem:[%s8858_s7 + $0x4e8] sm:$0xff] }
  0x2b   : > { %327 = vst [vmem:[%s8866_s8 + $0x188] sm:$0xff] %v326_v49  ;;  %329 = vst [vmem:[%s8866_s8 + $0x190] sm:$0xff] %v328_v50  ;;  %v336_v54 = vld [vmem:[%s8858_s7 + $0x4f0] sm:$0xff]  ;;  %v338_v55 = vld [vmem:[%s8858_s7 + $0x4f8] sm:$0xff] }
  0x2c   : > { %331 = vst [vmem:[%s8866_s8 + $0x198] sm:$0xff] %v330_v51  ;;  %333 = vst [vmem:[%s8866_s8 + $0x1a0] sm:$0xff] %v332_v52  ;;  %v340_v56 = vld [vmem:[%s8858_s7 + $0x540] sm:$0xff]  ;;  %v342_v57 = vld [vmem:[%s8858_s7 + $0x548] sm:$0xff] }
  0x2d   : > { %335 = vst [vmem:[%s8866_s8 + $0x1a8] sm:$0xff] %v334_v53  ;;  %337 = vst [vmem:[%s8866_s8 + $0x1b0] sm:$0xff] %v336_v54  ;;  %v344_v58 = vld [vmem:[%s8858_s7 + $0x550] sm:$0xff]  ;;  %v346_v59 = vld [vmem:[%s8858_s7 + $0x558] sm:$0xff] }
  0x2e   : > { %339 = vst [vmem:[%s8866_s8 + $0x1b8] sm:$0xff] %v338_v55  ;;  %341 = vst [vmem:[%s8866_s8 + $0x1c0] sm:$0xff] %v340_v56  ;;  %v348_v60 = vld [vmem:[%s8858_s7 + $0x5a0] sm:$0xff]  ;;  %v350_v61 = vld [vmem:[%s8858_s7 + $0x5a8] sm:$0xff] }
  0x2f   : > { %343 = vst [vmem:[%s8866_s8 + $0x1c8] sm:$0xff] %v342_v57  ;;  %345 = vst [vmem:[%s8866_s8 + $0x1d0] sm:$0xff] %v344_v58  ;;  %v352_v62 = vld [vmem:[%s8858_s7 + $0x5b0] sm:$0xff]  ;;  %v354_v63 = vld [vmem:[%s8858_s7 + $0x5b8] sm:$0xff] }
  0x30   : > { %347 = vst [vmem:[%s8866_s8 + $0x1d8] sm:$0xff] %v346_v59  ;;  %349 = vst [vmem:[%s8866_s8 + $0x1e0] sm:$0xff] %v348_v60  ;;  %v356_v0 = vld [vmem:[%s8858_s7 + $0x600] sm:$0xff]  ;;  %v358_v1 = vld [vmem:[%s8858_s7 + $0x608] sm:$0xff] }
  0x31   : > { %351 = vst [vmem:[%s8866_s8 + $0x1e8] sm:$0xff] %v350_v61  ;;  %353 = vst [vmem:[%s8866_s8 + $0x1f0] sm:$0xff] %v352_v62  ;;  %v360_v2 = vld [vmem:[%s8858_s7 + $0x610] sm:$0xff]  ;;  %v362_v3 = vld [vmem:[%s8858_s7 + $0x618] sm:$0xff] }
  0x32   : > { %355 = vst [vmem:[%s8866_s8 + $0x1f8] sm:$0xff] %v354_v63  ;;  %357 = vst [vmem:[%s8866_s8 + $0x200] sm:$0xff] %v356_v0  ;;  %v364_v4 = vld [vmem:[%s8858_s7 + $0x660] sm:$0xff]  ;;  %v366_v5 = vld [vmem:[%s8858_s7 + $0x668] sm:$0xff] }
  0x33   : > { %359 = vst [vmem:[%s8866_s8 + $0x208] sm:$0xff] %v358_v1  ;;  %361 = vst [vmem:[%s8866_s8 + $0x210] sm:$0xff] %v360_v2  ;;  %v368_v6 = vld [vmem:[%s8858_s7 + $0x670] sm:$0xff]  ;;  %v370_v7 = vld [vmem:[%s8858_s7 + $0x678] sm:$0xff] }
  0x34   : > { %363 = vst [vmem:[%s8866_s8 + $0x218] sm:$0xff] %v362_v3  ;;  %365 = vst [vmem:[%s8866_s8 + $0x220] sm:$0xff] %v364_v4  ;;  %v372_v8 = vld [vmem:[%s8858_s7 + $0x6c0] sm:$0xff]  ;;  %v374_v9 = vld [vmem:[%s8858_s7 + $0x6c8] sm:$0xff] }
  0x35   : > { %367 = vst [vmem:[%s8866_s8 + $0x228] sm:$0xff] %v366_v5  ;;  %369 = vst [vmem:[%s8866_s8 + $0x230] sm:$0xff] %v368_v6  ;;  %v376_v10 = vld [vmem:[%s8858_s7 + $0x6d0] sm:$0xff]  ;;  %v378_v11 = vld [vmem:[%s8858_s7 + $0x6d8] sm:$0xff] }
  0x36   : > { %371 = vst [vmem:[%s8866_s8 + $0x238] sm:$0xff] %v370_v7  ;;  %373 = vst [vmem:[%s8866_s8 + $0x240] sm:$0xff] %v372_v8  ;;  %v380_v12 = vld [vmem:[%s8858_s7 + $0x720] sm:$0xff]  ;;  %v382_v13 = vld [vmem:[%s8858_s7 + $0x728] sm:$0xff] }
  0x37   : > { %375 = vst [vmem:[%s8866_s8 + $0x248] sm:$0xff] %v374_v9  ;;  %377 = vst [vmem:[%s8866_s8 + $0x250] sm:$0xff] %v376_v10  ;;  %v384_v14 = vld [vmem:[%s8858_s7 + $0x730] sm:$0xff]  ;;  %v386_v15 = vld [vmem:[%s8858_s7 + $0x738] sm:$0xff] }
  0x38   : > { %379 = vst [vmem:[%s8866_s8 + $0x258] sm:$0xff] %v378_v11  ;;  %381 = vst [vmem:[%s8866_s8 + $0x260] sm:$0xff] %v380_v12  ;;  %v388_v16 = vld [vmem:[%s8858_s7 + $0x780] sm:$0xff]  ;;  %v390_v17 = vld [vmem:[%s8858_s7 + $0x788] sm:$0xff] }
  0x39   : > { %383 = vst [vmem:[%s8866_s8 + $0x268] sm:$0xff] %v382_v13  ;;  %385 = vst [vmem:[%s8866_s8 + $0x270] sm:$0xff] %v384_v14  ;;  %v392_v18 = vld [vmem:[%s8858_s7 + $0x790] sm:$0xff]  ;;  %v394_v19 = vld [vmem:[%s8858_s7 + $0x798] sm:$0xff] }
  0x3a   : > { %387 = vst [vmem:[%s8866_s8 + $0x278] sm:$0xff] %v386_v15  ;;  %389 = vst [vmem:[%s8866_s8 + $0x280] sm:$0xff] %v388_v16  ;;  %v396_v20 = vld [vmem:[%s8858_s7 + $0x7e0] sm:$0xff]  ;;  %v398_v21 = vld [vmem:[%s8858_s7 + $0x7e8] sm:$0xff] }
  0x3b   : > { %391 = vst [vmem:[%s8866_s8 + $0x288] sm:$0xff] %v390_v17  ;;  %393 = vst [vmem:[%s8866_s8 + $0x290] sm:$0xff] %v392_v18  ;;  %v400_v22 = vld [vmem:[%s8858_s7 + $0x7f0] sm:$0xff]  ;;  %v402_v23 = vld [vmem:[%s8858_s7 + $0x7f8] sm:$0xff] }
  0x3c   : > { %395 = vst [vmem:[%s8866_s8 + $0x298] sm:$0xff] %v394_v19  ;;  %397 = vst [vmem:[%s8866_s8 + $0x2a0] sm:$0xff] %v396_v20  ;;  %v404_v24 = vld [vmem:[%s8858_s7 + $0x840] sm:$0xff]  ;;  %v406_v25 = vld [vmem:[%s8858_s7 + $0x848] sm:$0xff] }
  0x3d   : > { %399 = vst [vmem:[%s8866_s8 + $0x2a8] sm:$0xff] %v398_v21  ;;  %401 = vst [vmem:[%s8866_s8 + $0x2b0] sm:$0xff] %v400_v22  ;;  %v408_v26 = vld [vmem:[%s8858_s7 + $0x850] sm:$0xff]  ;;  %v410_v27 = vld [vmem:[%s8858_s7 + $0x858] sm:$0xff] }
  0x3e   : > { %403 = vst [vmem:[%s8866_s8 + $0x2b8] sm:$0xff] %v402_v23  ;;  %405 = vst [vmem:[%s8866_s8 + $0x2c0] sm:$0xff] %v404_v24  ;;  %v412_v28 = vld [vmem:[%s8858_s7 + $0x8a0] sm:$0xff]  ;;  %v414_v29 = vld [vmem:[%s8858_s7 + $0x8a8] sm:$0xff] }
  0x3f   : > { %407 = vst [vmem:[%s8866_s8 + $0x2c8] sm:$0xff] %v406_v25  ;;  %409 = vst [vmem:[%s8866_s8 + $0x2d0] sm:$0xff] %v408_v26  ;;  %v416_v30 = vld [vmem:[%s8858_s7 + $0x8b0] sm:$0xff]  ;;  %v418_v31 = vld [vmem:[%s8858_s7 + $0x8b8] sm:$0xff] }
  0x40   : > { %411 = vst [vmem:[%s8866_s8 + $0x2d8] sm:$0xff] %v410_v27  ;;  %413 = vst [vmem:[%s8866_s8 + $0x2e0] sm:$0xff] %v412_v28  ;;  %v420_v32 = vld [vmem:[%s8858_s7 + $0x900] sm:$0xff]  ;;  %v422_v33 = vld [vmem:[%s8858_s7 + $0x908] sm:$0xff] }
  0x41   : > { %415 = vst [vmem:[%s8866_s8 + $0x2e8] sm:$0xff] %v414_v29  ;;  %417 = vst [vmem:[%s8866_s8 + $0x2f0] sm:$0xff] %v416_v30  ;;  %v424_v34 = vld [vmem:[%s8858_s7 + $0x910] sm:$0xff]  ;;  %v426_v35 = vld [vmem:[%s8858_s7 + $0x918] sm:$0xff] }
  0x42   : > { %419 = vst [vmem:[%s8866_s8 + $0x2f8] sm:$0xff] %v418_v31  ;;  %421 = vst [vmem:[%s8866_s8 + $0x300] sm:$0xff] %v420_v32  ;;  %v428_v36 = vld [vmem:[%s8858_s7 + $0x960] sm:$0xff]  ;;  %v430_v37 = vld [vmem:[%s8858_s7 + $0x968] sm:$0xff] }
  0x43   : > { %423 = vst [vmem:[%s8866_s8 + $0x308] sm:$0xff] %v422_v33  ;;  %425 = vst [vmem:[%s8866_s8 + $0x310] sm:$0xff] %v424_v34  ;;  %v432_v38 = vld [vmem:[%s8858_s7 + $0x970] sm:$0xff]  ;;  %v434_v39 = vld [vmem:[%s8858_s7 + $0x978] sm:$0xff] }
  0x44   : > { %427 = vst [vmem:[%s8866_s8 + $0x318] sm:$0xff] %v426_v35  ;;  %429 = vst [vmem:[%s8866_s8 + $0x320] sm:$0xff] %v428_v36  ;;  %v436_v40 = vld [vmem:[%s8858_s7 + $0x9c0] sm:$0xff]  ;;  %v438_v41 = vld [vmem:[%s8858_s7 + $0x9c8] sm:$0xff] }
  0x45   : > { %431 = vst [vmem:[%s8866_s8 + $0x328] sm:$0xff] %v430_v37  ;;  %433 = vst [vmem:[%s8866_s8 + $0x330] sm:$0xff] %v432_v38  ;;  %v440_v42 = vld [vmem:[%s8858_s7 + $0x9d0] sm:$0xff]  ;;  %v442_v43 = vld [vmem:[%s8858_s7 + $0x9d8] sm:$0xff] }
  0x46   : > { %435 = vst [vmem:[%s8866_s8 + $0x338] sm:$0xff] %v434_v39  ;;  %437 = vst [vmem:[%s8866_s8 + $0x340] sm:$0xff] %v436_v40  ;;  %v444_v44 = vld [vmem:[%s8858_s7 + $0xa20] sm:$0xff]  ;;  %v446_v45 = vld [vmem:[%s8858_s7 + $0xa28] sm:$0xff] }
  0x47   : > { %439 = vst [vmem:[%s8866_s8 + $0x348] sm:$0xff] %v438_v41  ;;  %441 = vst [vmem:[%s8866_s8 + $0x350] sm:$0xff] %v440_v42  ;;  %v448_v46 = vld [vmem:[%s8858_s7 + $0xa30] sm:$0xff]  ;;  %v450_v47 = vld [vmem:[%s8858_s7 + $0xa38] sm:$0xff] }
  0x48   : > { %443 = vst [vmem:[%s8866_s8 + $0x358] sm:$0xff] %v442_v43  ;;  %445 = vst [vmem:[%s8866_s8 + $0x360] sm:$0xff] %v444_v44  ;;  %v452_v48 = vld [vmem:[%s8858_s7 + $0xa80] sm:$0xff]  ;;  %v454_v49 = vld [vmem:[%s8858_s7 + $0xa88] sm:$0xff] }
  0x49   : > { %447 = vst [vmem:[%s8866_s8 + $0x368] sm:$0xff] %v446_v45  ;;  %449 = vst [vmem:[%s8866_s8 + $0x370] sm:$0xff] %v448_v46  ;;  %v456_v50 = vld [vmem:[%s8858_s7 + $0xa90] sm:$0xff]  ;;  %v458_v51 = vld [vmem:[%s8858_s7 + $0xa98] sm:$0xff] }
  0x4a   : > { %451 = vst [vmem:[%s8866_s8 + $0x378] sm:$0xff] %v450_v47  ;;  %453 = vst [vmem:[%s8866_s8 + $0x380] sm:$0xff] %v452_v48  ;;  %v460_v52 = vld [vmem:[%s8858_s7 + $0xae0] sm:$0xff]  ;;  %v462_v53 = vld [vmem:[%s8858_s7 + $0xae8] sm:$0xff] }
  0x4b   : > { %455 = vst [vmem:[%s8866_s8 + $0x388] sm:$0xff] %v454_v49  ;;  %457 = vst [vmem:[%s8866_s8 + $0x390] sm:$0xff] %v456_v50  ;;  %v464_v54 = vld [vmem:[%s8858_s7 + $0xaf0] sm:$0xff]  ;;  %v466_v55 = vld [vmem:[%s8858_s7 + $0xaf8] sm:$0xff] }
  0x4c   : > { %459 = vst [vmem:[%s8866_s8 + $0x398] sm:$0xff] %v458_v51  ;;  %461 = vst [vmem:[%s8866_s8 + $0x3a0] sm:$0xff] %v460_v52  ;;  %v468_v56 = vld [vmem:[%s8858_s7 + $0xb40] sm:$0xff]  ;;  %v470_v57 = vld [vmem:[%s8858_s7 + $0xb48] sm:$0xff] }
  0x4d   : > { %463 = vst [vmem:[%s8866_s8 + $0x3a8] sm:$0xff] %v462_v53  ;;  %465 = vst [vmem:[%s8866_s8 + $0x3b0] sm:$0xff] %v464_v54  ;;  %v472_v58 = vld [vmem:[%s8858_s7 + $0xb50] sm:$0xff]  ;;  %v474_v59 = vld [vmem:[%s8858_s7 + $0xb58] sm:$0xff] }
  0x4e   : > { %467 = vst [vmem:[%s8866_s8 + $0x3b8] sm:$0xff] %v466_v55  ;;  %469 = vst [vmem:[%s8866_s8 + $0x3c0] sm:$0xff] %v468_v56  ;;  %v476_v60 = vld [vmem:[%s8858_s7 + $0xba0] sm:$0xff]  ;;  %v478_v61 = vld [vmem:[%s8858_s7 + $0xba8] sm:$0xff] }
  0x4f   : > { %471 = vst [vmem:[%s8866_s8 + $0x3c8] sm:$0xff] %v470_v57  ;;  %473 = vst [vmem:[%s8866_s8 + $0x3d0] sm:$0xff] %v472_v58  ;;  %v480_v62 = vld [vmem:[%s8858_s7 + $0xbb0] sm:$0xff]  ;;  %v482_v63 = vld [vmem:[%s8858_s7 + $0xbb8] sm:$0xff] }
  0x50   : > { %475 = vst [vmem:[%s8866_s8 + $0x3d8] sm:$0xff] %v474_v59  ;;  %477 = vst [vmem:[%s8866_s8 + $0x3e0] sm:$0xff] %v476_v60  ;;  %v484_v0 = vld [vmem:[%s8858_s7 + $0xc00] sm:$0xff]  ;;  %v486_v1 = vld [vmem:[%s8858_s7 + $0xc08] sm:$0xff] }
  0x51   : > { %479 = vst [vmem:[%s8866_s8 + $0x3e8] sm:$0xff] %v478_v61  ;;  %481 = vst [vmem:[%s8866_s8 + $0x3f0] sm:$0xff] %v480_v62  ;;  %v488_v2 = vld [vmem:[%s8858_s7 + $0xc10] sm:$0xff]  ;;  %v490_v3 = vld [vmem:[%s8858_s7 + $0xc18] sm:$0xff] }
  0x52   : > { %483 = vst [vmem:[%s8866_s8 + $0x3f8] sm:$0xff] %v482_v63  ;;  %485 = vst [vmem:[%s8866_s8 + $0x400] sm:$0xff] %v484_v0  ;;  %v492_v4 = vld [vmem:[%s8858_s7 + $0xc60] sm:$0xff]  ;;  %v494_v5 = vld [vmem:[%s8858_s7 + $0xc68] sm:$0xff] }
  0x53   : > { %487 = vst [vmem:[%s8866_s8 + $0x408] sm:$0xff] %v486_v1  ;;  %489 = vst [vmem:[%s8866_s8 + $0x410] sm:$0xff] %v488_v2  ;;  %v496_v6 = vld [vmem:[%s8858_s7 + $0xc70] sm:$0xff]  ;;  %v498_v7 = vld [vmem:[%s8858_s7 + $0xc78] sm:$0xff] }
  0x54   : > { %491 = vst [vmem:[%s8866_s8 + $0x418] sm:$0xff] %v490_v3  ;;  %493 = vst [vmem:[%s8866_s8 + $0x420] sm:$0xff] %v492_v4  ;;  %v500_v8 = vld [vmem:[%s8858_s7 + $0xcc0] sm:$0xff]  ;;  %v502_v9 = vld [vmem:[%s8858_s7 + $0xcc8] sm:$0xff] }
  0x55   : > { %495 = vst [vmem:[%s8866_s8 + $0x428] sm:$0xff] %v494_v5  ;;  %497 = vst [vmem:[%s8866_s8 + $0x430] sm:$0xff] %v496_v6  ;;  %v504_v10 = vld [vmem:[%s8858_s7 + $0xcd0] sm:$0xff]  ;;  %v506_v11 = vld [vmem:[%s8858_s7 + $0xcd8] sm:$0xff] }
  0x56   : > { %499 = vst [vmem:[%s8866_s8 + $0x438] sm:$0xff] %v498_v7  ;;  %501 = vst [vmem:[%s8866_s8 + $0x440] sm:$0xff] %v500_v8  ;;  %v508_v12 = vld [vmem:[%s8858_s7 + $0xd20] sm:$0xff]  ;;  %v510_v13 = vld [vmem:[%s8858_s7 + $0xd28] sm:$0xff] }
  0x57   : > { %503 = vst [vmem:[%s8866_s8 + $0x448] sm:$0xff] %v502_v9  ;;  %505 = vst [vmem:[%s8866_s8 + $0x450] sm:$0xff] %v504_v10  ;;  %v512_v14 = vld [vmem:[%s8858_s7 + $0xd30] sm:$0xff]  ;;  %v514_v15 = vld [vmem:[%s8858_s7 + $0xd38] sm:$0xff] }
  0x58   : > { %507 = vst [vmem:[%s8866_s8 + $0x458] sm:$0xff] %v506_v11  ;;  %509 = vst [vmem:[%s8866_s8 + $0x460] sm:$0xff] %v508_v12  ;;  %v516_v16 = vld [vmem:[%s8858_s7 + $0xd80] sm:$0xff]  ;;  %v518_v17 = vld [vmem:[%s8858_s7 + $0xd88] sm:$0xff] }
  0x59   : > { %511 = vst [vmem:[%s8866_s8 + $0x468] sm:$0xff] %v510_v13  ;;  %513 = vst [vmem:[%s8866_s8 + $0x470] sm:$0xff] %v512_v14  ;;  %v520_v18 = vld [vmem:[%s8858_s7 + $0xd90] sm:$0xff]  ;;  %v522_v19 = vld [vmem:[%s8858_s7 + $0xd98] sm:$0xff] }
  0x5a   : > { %515 = vst [vmem:[%s8866_s8 + $0x478] sm:$0xff] %v514_v15  ;;  %517 = vst [vmem:[%s8866_s8 + $0x480] sm:$0xff] %v516_v16  ;;  %v524_v20 = vld [vmem:[%s8858_s7 + $0xde0] sm:$0xff]  ;;  %v526_v21 = vld [vmem:[%s8858_s7 + $0xde8] sm:$0xff] }
  0x5b   : > { %519 = vst [vmem:[%s8866_s8 + $0x488] sm:$0xff] %v518_v17  ;;  %521 = vst [vmem:[%s8866_s8 + $0x490] sm:$0xff] %v520_v18  ;;  %v528_v22 = vld [vmem:[%s8858_s7 + $0xdf0] sm:$0xff]  ;;  %v530_v23 = vld [vmem:[%s8858_s7 + $0xdf8] sm:$0xff] }
  0x5c   : > { %523 = vst [vmem:[%s8866_s8 + $0x498] sm:$0xff] %v522_v19  ;;  %525 = vst [vmem:[%s8866_s8 + $0x4a0] sm:$0xff] %v524_v20  ;;  %v532_v24 = vld [vmem:[%s8858_s7 + $0xe40] sm:$0xff]  ;;  %v534_v25 = vld [vmem:[%s8858_s7 + $0xe48] sm:$0xff] }
  0x5d   : > { %527 = vst [vmem:[%s8866_s8 + $0x4a8] sm:$0xff] %v526_v21  ;;  %529 = vst [vmem:[%s8866_s8 + $0x4b0] sm:$0xff] %v528_v22  ;;  %v536_v26 = vld [vmem:[%s8858_s7 + $0xe50] sm:$0xff]  ;;  %v538_v27 = vld [vmem:[%s8858_s7 + $0xe58] sm:$0xff] }
  0x5e   : > { %531 = vst [vmem:[%s8866_s8 + $0x4b8] sm:$0xff] %v530_v23  ;;  %533 = vst [vmem:[%s8866_s8 + $0x4c0] sm:$0xff] %v532_v24  ;;  %v540_v28 = vld [vmem:[%s8858_s7 + $0xea0] sm:$0xff]  ;;  %v542_v29 = vld [vmem:[%s8858_s7 + $0xea8] sm:$0xff] }
  0x5f   : > { %535 = vst [vmem:[%s8866_s8 + $0x4c8] sm:$0xff] %v534_v25  ;;  %537 = vst [vmem:[%s8866_s8 + $0x4d0] sm:$0xff] %v536_v26  ;;  %v544_v30 = vld [vmem:[%s8858_s7 + $0xeb0] sm:$0xff]  ;;  %v546_v31 = vld [vmem:[%s8858_s7 + $0xeb8] sm:$0xff] }
  0x60   : > { %539 = vst [vmem:[%s8866_s8 + $0x4d8] sm:$0xff] %v538_v27  ;;  %541 = vst [vmem:[%s8866_s8 + $0x4e0] sm:$0xff] %v540_v28  ;;  %v548_v32 = vld [vmem:[%s8858_s7 + $0xf00] sm:$0xff]  ;;  %v550_v33 = vld [vmem:[%s8858_s7 + $0xf08] sm:$0xff] }
  0x61   : > { %543 = vst [vmem:[%s8866_s8 + $0x4e8] sm:$0xff] %v542_v29  ;;  %545 = vst [vmem:[%s8866_s8 + $0x4f0] sm:$0xff] %v544_v30  ;;  %v552_v34 = vld [vmem:[%s8858_s7 + $0xf10] sm:$0xff]  ;;  %v554_v35 = vld [vmem:[%s8858_s7 + $0xf18] sm:$0xff] }
  0x62   : > { %547 = vst [vmem:[%s8866_s8 + $0x4f8] sm:$0xff] %v546_v31  ;;  %549 = vst [vmem:[%s8866_s8 + $0x500] sm:$0xff] %v548_v32  ;;  %v556_v36 = vld [vmem:[%s8858_s7 + $0xf60] sm:$0xff]  ;;  %v558_v37 = vld [vmem:[%s8858_s7 + $0xf68] sm:$0xff] }
  0x63   : > { %551 = vst [vmem:[%s8866_s8 + $0x508] sm:$0xff] %v550_v33  ;;  %553 = vst [vmem:[%s8866_s8 + $0x510] sm:$0xff] %v552_v34  ;;  %v560_v38 = vld [vmem:[%s8858_s7 + $0xf70] sm:$0xff]  ;;  %v562_v39 = vld [vmem:[%s8858_s7 + $0xf78] sm:$0xff] }
  0x64   : > { %555 = vst [vmem:[%s8866_s8 + $0x518] sm:$0xff] %v554_v35  ;;  %557 = vst [vmem:[%s8866_s8 + $0x520] sm:$0xff] %v556_v36  ;;  %v564_v40 = vld [vmem:[%s8858_s7 + $0xfc0] sm:$0xff]  ;;  %v566_v41 = vld [vmem:[%s8858_s7 + $0xfc8] sm:$0xff] }
  0x65   : > { %559 = vst [vmem:[%s8866_s8 + $0x528] sm:$0xff] %v558_v37  ;;  %561 = vst [vmem:[%s8866_s8 + $0x530] sm:$0xff] %v560_v38  ;;  %v568_v42 = vld [vmem:[%s8858_s7 + $0xfd0] sm:$0xff]  ;;  %v570_v43 = vld [vmem:[%s8858_s7 + $0xfd8] sm:$0xff] }
  0x66   : > { %563 = vst [vmem:[%s8866_s8 + $0x538] sm:$0xff] %v562_v39  ;;  %565 = vst [vmem:[%s8866_s8 + $0x540] sm:$0xff] %v564_v40  ;;  %v572_v44 = vld [vmem:[%s8858_s7 + $0x1020] sm:$0xff]  ;;  %v574_v45 = vld [vmem:[%s8858_s7 + $0x1028] sm:$0xff] }
  0x67   : > { %567 = vst [vmem:[%s8866_s8 + $0x548] sm:$0xff] %v566_v41  ;;  %569 = vst [vmem:[%s8866_s8 + $0x550] sm:$0xff] %v568_v42  ;;  %v576_v46 = vld [vmem:[%s8858_s7 + $0x1030] sm:$0xff]  ;;  %v578_v47 = vld [vmem:[%s8858_s7 + $0x1038] sm:$0xff] }
  0x68   : > { %571 = vst [vmem:[%s8866_s8 + $0x558] sm:$0xff] %v570_v43  ;;  %573 = vst [vmem:[%s8866_s8 + $0x560] sm:$0xff] %v572_v44  ;;  %v580_v48 = vld [vmem:[%s8858_s7 + $0x1080] sm:$0xff]  ;;  %v582_v49 = vld [vmem:[%s8858_s7 + $0x1088] sm:$0xff] }
  0x69   : > { %575 = vst [vmem:[%s8866_s8 + $0x568] sm:$0xff] %v574_v45  ;;  %577 = vst [vmem:[%s8866_s8 + $0x570] sm:$0xff] %v576_v46  ;;  %v584_v50 = vld [vmem:[%s8858_s7 + $0x1090] sm:$0xff]  ;;  %v586_v51 = vld [vmem:[%s8858_s7 + $0x1098] sm:$0xff] }
  0x6a   : > { %579 = vst [vmem:[%s8866_s8 + $0x578] sm:$0xff] %v578_v47  ;;  %581 = vst [vmem:[%s8866_s8 + $0x580] sm:$0xff] %v580_v48  ;;  %v588_v52 = vld [vmem:[%s8858_s7 + $0x10e0] sm:$0xff]  ;;  %v590_v53 = vld [vmem:[%s8858_s7 + $0x10e8] sm:$0xff] }
  0x6b   : > { %583 = vst [vmem:[%s8866_s8 + $0x588] sm:$0xff] %v582_v49  ;;  %585 = vst [vmem:[%s8866_s8 + $0x590] sm:$0xff] %v584_v50  ;;  %v592_v54 = vld [vmem:[%s8858_s7 + $0x10f0] sm:$0xff]  ;;  %v594_v55 = vld [vmem:[%s8858_s7 + $0x10f8] sm:$0xff] }
  0x6c   : > { %587 = vst [vmem:[%s8866_s8 + $0x598] sm:$0xff] %v586_v51  ;;  %589 = vst [vmem:[%s8866_s8 + $0x5a0] sm:$0xff] %v588_v52  ;;  %v596_v56 = vld [vmem:[%s8858_s7 + $0x1140] sm:$0xff]  ;;  %v598_v57 = vld [vmem:[%s8858_s7 + $0x1148] sm:$0xff] }
  0x6d   : > { %591 = vst [vmem:[%s8866_s8 + $0x5a8] sm:$0xff] %v590_v53  ;;  %593 = vst [vmem:[%s8866_s8 + $0x5b0] sm:$0xff] %v592_v54  ;;  %v600_v58 = vld [vmem:[%s8858_s7 + $0x1150] sm:$0xff]  ;;  %v602_v59 = vld [vmem:[%s8858_s7 + $0x1158] sm:$0xff] }
  0x6e   : > { %595 = vst [vmem:[%s8866_s8 + $0x5b8] sm:$0xff] %v594_v55  ;;  %597 = vst [vmem:[%s8866_s8 + $0x5c0] sm:$0xff] %v596_v56  ;;  %v604_v60 = vld [vmem:[%s8858_s7 + $0x11a0] sm:$0xff]  ;;  %v606_v61 = vld [vmem:[%s8858_s7 + $0x11a8] sm:$0xff] }
  0x6f   : > { %599 = vst [vmem:[%s8866_s8 + $0x5c8] sm:$0xff] %v598_v57  ;;  %601 = vst [vmem:[%s8866_s8 + $0x5d0] sm:$0xff] %v600_v58  ;;  %v608_v62 = vld [vmem:[%s8858_s7 + $0x11b0] sm:$0xff]  ;;  %v610_v63 = vld [vmem:[%s8858_s7 + $0x11b8] sm:$0xff] }
  0x70   : > { %603 = vst [vmem:[%s8866_s8 + $0x5d8] sm:$0xff] %v602_v59  ;;  %605 = vst [vmem:[%s8866_s8 + $0x5e0] sm:$0xff] %v604_v60  ;;  %v612_v0 = vld [vmem:[%s8858_s7 + $0x1200] sm:$0xff]  ;;  %v614_v1 = vld [vmem:[%s8858_s7 + $0x1208] sm:$0xff] }
  0x71   : > { %607 = vst [vmem:[%s8866_s8 + $0x5e8] sm:$0xff] %v606_v61  ;;  %609 = vst [vmem:[%s8866_s8 + $0x5f0] sm:$0xff] %v608_v62  ;;  %v616_v2 = vld [vmem:[%s8858_s7 + $0x1210] sm:$0xff]  ;;  %v618_v3 = vld [vmem:[%s8858_s7 + $0x1218] sm:$0xff] }
  0x72   : > { %611 = vst [vmem:[%s8866_s8 + $0x5f8] sm:$0xff] %v610_v63  ;;  %613 = vst [vmem:[%s8866_s8 + $0x600] sm:$0xff] %v612_v0  ;;  %v620_v4 = vld [vmem:[%s8858_s7 + $0x1260] sm:$0xff]  ;;  %v622_v5 = vld [vmem:[%s8858_s7 + $0x1268] sm:$0xff] }
  0x73   : > { %615 = vst [vmem:[%s8866_s8 + $0x608] sm:$0xff] %v614_v1  ;;  %617 = vst [vmem:[%s8866_s8 + $0x610] sm:$0xff] %v616_v2  ;;  %v624_v6 = vld [vmem:[%s8858_s7 + $0x1270] sm:$0xff]  ;;  %v626_v7 = vld [vmem:[%s8858_s7 + $0x1278] sm:$0xff] }
  0x74   : > { %619 = vst [vmem:[%s8866_s8 + $0x618] sm:$0xff] %v618_v3  ;;  %621 = vst [vmem:[%s8866_s8 + $0x620] sm:$0xff] %v620_v4  ;;  %v628_v8 = vld [vmem:[%s8858_s7 + $0x12c0] sm:$0xff]  ;;  %v630_v9 = vld [vmem:[%s8858_s7 + $0x12c8] sm:$0xff] }
  0x75   : > { %623 = vst [vmem:[%s8866_s8 + $0x628] sm:$0xff] %v622_v5  ;;  %625 = vst [vmem:[%s8866_s8 + $0x630] sm:$0xff] %v624_v6  ;;  %v632_v10 = vld [vmem:[%s8858_s7 + $0x12d0] sm:$0xff]  ;;  %v634_v11 = vld [vmem:[%s8858_s7 + $0x12d8] sm:$0xff] }
  0x76   : > { %627 = vst [vmem:[%s8866_s8 + $0x638] sm:$0xff] %v626_v7  ;;  %629 = vst [vmem:[%s8866_s8 + $0x640] sm:$0xff] %v628_v8  ;;  %v636_v12 = vld [vmem:[%s8858_s7 + $0x1320] sm:$0xff]  ;;  %v638_v13 = vld [vmem:[%s8858_s7 + $0x1328] sm:$0xff] }
  0x77   : > { %631 = vst [vmem:[%s8866_s8 + $0x648] sm:$0xff] %v630_v9  ;;  %633 = vst [vmem:[%s8866_s8 + $0x650] sm:$0xff] %v632_v10  ;;  %v640_v14 = vld [vmem:[%s8858_s7 + $0x1330] sm:$0xff]  ;;  %v642_v15 = vld [vmem:[%s8858_s7 + $0x1338] sm:$0xff] }
  0x78   : > { %635 = vst [vmem:[%s8866_s8 + $0x658] sm:$0xff] %v634_v11  ;;  %637 = vst [vmem:[%s8866_s8 + $0x660] sm:$0xff] %v636_v12  ;;  %v644_v16 = vld [vmem:[%s8858_s7 + $0x1380] sm:$0xff]  ;;  %v646_v17 = vld [vmem:[%s8858_s7 + $0x1388] sm:$0xff] }
  0x79   : > { %639 = vst [vmem:[%s8866_s8 + $0x668] sm:$0xff] %v638_v13  ;;  %641 = vst [vmem:[%s8866_s8 + $0x670] sm:$0xff] %v640_v14  ;;  %v648_v18 = vld [vmem:[%s8858_s7 + $0x1390] sm:$0xff]  ;;  %v650_v19 = vld [vmem:[%s8858_s7 + $0x1398] sm:$0xff] }
  0x7a   : > { %643 = vst [vmem:[%s8866_s8 + $0x678] sm:$0xff] %v642_v15  ;;  %645 = vst [vmem:[%s8866_s8 + $0x680] sm:$0xff] %v644_v16  ;;  %v652_v20 = vld [vmem:[%s8858_s7 + $0x13e0] sm:$0xff]  ;;  %v654_v21 = vld [vmem:[%s8858_s7 + $0x13e8] sm:$0xff] }
  0x7b   : > { %647 = vst [vmem:[%s8866_s8 + $0x688] sm:$0xff] %v646_v17  ;;  %649 = vst [vmem:[%s8866_s8 + $0x690] sm:$0xff] %v648_v18  ;;  %v656_v22 = vld [vmem:[%s8858_s7 + $0x13f0] sm:$0xff]  ;;  %v658_v23 = vld [vmem:[%s8858_s7 + $0x13f8] sm:$0xff] }
  0x7c   : > { %651 = vst [vmem:[%s8866_s8 + $0x698] sm:$0xff] %v650_v19  ;;  %653 = vst [vmem:[%s8866_s8 + $0x6a0] sm:$0xff] %v652_v20  ;;  %v660_v24 = vld [vmem:[%s8858_s7 + $0x1440] sm:$0xff]  ;;  %v662_v25 = vld [vmem:[%s8858_s7 + $0x1448] sm:$0xff] }
  0x7d   : > { %655 = vst [vmem:[%s8866_s8 + $0x6a8] sm:$0xff] %v654_v21  ;;  %657 = vst [vmem:[%s8866_s8 + $0x6b0] sm:$0xff] %v656_v22  ;;  %v664_v26 = vld [vmem:[%s8858_s7 + $0x1450] sm:$0xff]  ;;  %v666_v27 = vld [vmem:[%s8858_s7 + $0x1458] sm:$0xff] }
  0x7e   : > { %659 = vst [vmem:[%s8866_s8 + $0x6b8] sm:$0xff] %v658_v23  ;;  %661 = vst [vmem:[%s8866_s8 + $0x6c0] sm:$0xff] %v660_v24  ;;  %v668_v28 = vld [vmem:[%s8858_s7 + $0x14a0] sm:$0xff]  ;;  %v670_v29 = vld [vmem:[%s8858_s7 + $0x14a8] sm:$0xff] }
  0x7f   : > { %663 = vst [vmem:[%s8866_s8 + $0x6c8] sm:$0xff] %v662_v25  ;;  %665 = vst [vmem:[%s8866_s8 + $0x6d0] sm:$0xff] %v664_v26  ;;  %v672_v30 = vld [vmem:[%s8858_s7 + $0x14b0] sm:$0xff]  ;;  %v674_v31 = vld [vmem:[%s8858_s7 + $0x14b8] sm:$0xff] }
  0x80   : > { %667 = vst [vmem:[%s8866_s8 + $0x6d8] sm:$0xff] %v666_v27  ;;  %669 = vst [vmem:[%s8866_s8 + $0x6e0] sm:$0xff] %v668_v28  ;;  %v676_v32 = vld [vmem:[%s8858_s7 + $0x1500] sm:$0xff]  ;;  %v678_v33 = vld [vmem:[%s8858_s7 + $0x1508] sm:$0xff] }
  0x81   : > { %671 = vst [vmem:[%s8866_s8 + $0x6e8] sm:$0xff] %v670_v29  ;;  %673 = vst [vmem:[%s8866_s8 + $0x6f0] sm:$0xff] %v672_v30  ;;  %v680_v34 = vld [vmem:[%s8858_s7 + $0x1510] sm:$0xff]  ;;  %v682_v35 = vld [vmem:[%s8858_s7 + $0x1518] sm:$0xff] }
  0x82   : > { %675 = vst [vmem:[%s8866_s8 + $0x6f8] sm:$0xff] %v674_v31  ;;  %677 = vst [vmem:[%s8866_s8 + $0x700] sm:$0xff] %v676_v32  ;;  %v684_v36 = vld [vmem:[%s8858_s7 + $0x1560] sm:$0xff]  ;;  %v686_v37 = vld [vmem:[%s8858_s7 + $0x1568] sm:$0xff] }
  0x83   : > { %679 = vst [vmem:[%s8866_s8 + $0x708] sm:$0xff] %v678_v33  ;;  %681 = vst [vmem:[%s8866_s8 + $0x710] sm:$0xff] %v680_v34  ;;  %v688_v38 = vld [vmem:[%s8858_s7 + $0x1570] sm:$0xff]  ;;  %v690_v39 = vld [vmem:[%s8858_s7 + $0x1578] sm:$0xff] }
  0x84   : > { %683 = vst [vmem:[%s8866_s8 + $0x718] sm:$0xff] %v682_v35  ;;  %685 = vst [vmem:[%s8866_s8 + $0x720] sm:$0xff] %v684_v36  ;;  %v692_v40 = vld [vmem:[%s8858_s7 + $0x15c0] sm:$0xff]  ;;  %v694_v41 = vld [vmem:[%s8858_s7 + $0x15c8] sm:$0xff] }
  0x85   : > { %687 = vst [vmem:[%s8866_s8 + $0x728] sm:$0xff] %v686_v37  ;;  %689 = vst [vmem:[%s8866_s8 + $0x730] sm:$0xff] %v688_v38  ;;  %v696_v42 = vld [vmem:[%s8858_s7 + $0x15d0] sm:$0xff]  ;;  %v698_v43 = vld [vmem:[%s8858_s7 + $0x15d8] sm:$0xff] }
  0x86   : > { %691 = vst [vmem:[%s8866_s8 + $0x738] sm:$0xff] %v690_v39  ;;  %693 = vst [vmem:[%s8866_s8 + $0x740] sm:$0xff] %v692_v40  ;;  %v700_v44 = vld [vmem:[%s8858_s7 + $0x1620] sm:$0xff]  ;;  %v702_v45 = vld [vmem:[%s8858_s7 + $0x1628] sm:$0xff] }
  0x87   : > { %695 = vst [vmem:[%s8866_s8 + $0x748] sm:$0xff] %v694_v41  ;;  %697 = vst [vmem:[%s8866_s8 + $0x750] sm:$0xff] %v696_v42  ;;  %v704_v46 = vld [vmem:[%s8858_s7 + $0x1630] sm:$0xff]  ;;  %v706_v47 = vld [vmem:[%s8858_s7 + $0x1638] sm:$0xff] }
  0x88   : > { %699 = vst [vmem:[%s8866_s8 + $0x758] sm:$0xff] %v698_v43  ;;  %701 = vst [vmem:[%s8866_s8 + $0x760] sm:$0xff] %v700_v44  ;;  %v708_v48 = vld [vmem:[%s8858_s7 + $0x1680] sm:$0xff]  ;;  %v710_v49 = vld [vmem:[%s8858_s7 + $0x1688] sm:$0xff] }
  0x89   : > { %703 = vst [vmem:[%s8866_s8 + $0x768] sm:$0xff] %v702_v45  ;;  %705 = vst [vmem:[%s8866_s8 + $0x770] sm:$0xff] %v704_v46  ;;  %v712_v50 = vld [vmem:[%s8858_s7 + $0x1690] sm:$0xff]  ;;  %v714_v51 = vld [vmem:[%s8858_s7 + $0x1698] sm:$0xff] }
  0x8a   : > { %707 = vst [vmem:[%s8866_s8 + $0x778] sm:$0xff] %v706_v47  ;;  %709 = vst [vmem:[%s8866_s8 + $0x780] sm:$0xff] %v708_v48  ;;  %v716_v52 = vld [vmem:[%s8858_s7 + $0x16e0] sm:$0xff]  ;;  %v718_v53 = vld [vmem:[%s8858_s7 + $0x16e8] sm:$0xff] }
  0x8b   : > { %711 = vst [vmem:[%s8866_s8 + $0x788] sm:$0xff] %v710_v49  ;;  %713 = vst [vmem:[%s8866_s8 + $0x790] sm:$0xff] %v712_v50  ;;  %v720_v54 = vld [vmem:[%s8858_s7 + $0x16f0] sm:$0xff]  ;;  %v722_v55 = vld [vmem:[%s8858_s7 + $0x16f8] sm:$0xff] }
  0x8c   : > { %715 = vst [vmem:[%s8866_s8 + $0x798] sm:$0xff] %v714_v51  ;;  %717 = vst [vmem:[%s8866_s8 + $0x7a0] sm:$0xff] %v716_v52  ;;  %v724_v56 = vld [vmem:[%s8858_s7 + $0x1740] sm:$0xff]  ;;  %v726_v57 = vld [vmem:[%s8858_s7 + $0x1748] sm:$0xff] }
  0x8d   : > { %719 = vst [vmem:[%s8866_s8 + $0x7a8] sm:$0xff] %v718_v53  ;;  %721 = vst [vmem:[%s8866_s8 + $0x7b0] sm:$0xff] %v720_v54  ;;  %v728_v58 = vld [vmem:[%s8858_s7 + $0x1750] sm:$0xff]  ;;  %v730_v59 = vld [vmem:[%s8858_s7 + $0x1758] sm:$0xff] }
  0x8e   : > { %723 = vst [vmem:[%s8866_s8 + $0x7b8] sm:$0xff] %v722_v55  ;;  %725 = vst [vmem:[%s8866_s8 + $0x7c0] sm:$0xff] %v724_v56  ;;  %v732_v60 = vld [vmem:[%s8858_s7 + $0x17a0] sm:$0xff]  ;;  %v734_v61 = vld [vmem:[%s8858_s7 + $0x17a8] sm:$0xff] }
  0x8f   : > { %727 = vst [vmem:[%s8866_s8 + $0x7c8] sm:$0xff] %v726_v57  ;;  %729 = vst [vmem:[%s8866_s8 + $0x7d0] sm:$0xff] %v728_v58  ;;  %v736_v62 = vld [vmem:[%s8858_s7 + $0x17b0] sm:$0xff]  ;;  %v738_v63 = vld [vmem:[%s8858_s7 + $0x17b8] sm:$0xff] }
  0x90   : > { %731 = vst [vmem:[%s8866_s8 + $0x7d8] sm:$0xff] %v730_v59  ;;  %733 = vst [vmem:[%s8866_s8 + $0x7e0] sm:$0xff] %v732_v60  ;;  %v740_v0 = vld [vmem:[%s8858_s7 + $0x1800] sm:$0xff]  ;;  %v742_v1 = vld [vmem:[%s8858_s7 + $0x1808] sm:$0xff] }
  0x91   : > { %735 = vst [vmem:[%s8866_s8 + $0x7e8] sm:$0xff] %v734_v61  ;;  %737 = vst [vmem:[%s8866_s8 + $0x7f0] sm:$0xff] %v736_v62  ;;  %v744_v2 = vld [vmem:[%s8858_s7 + $0x1810] sm:$0xff]  ;;  %v746_v3 = vld [vmem:[%s8858_s7 + $0x1818] sm:$0xff] }
  0x92   : > { %739 = vst [vmem:[%s8866_s8 + $0x7f8] sm:$0xff] %v738_v63  ;;  %741 = vst [vmem:[%s8866_s8 + $0x800] sm:$0xff] %v740_v0  ;;  %v748_v4 = vld [vmem:[%s8858_s7 + $0x1860] sm:$0xff]  ;;  %v750_v5 = vld [vmem:[%s8858_s7 + $0x1868] sm:$0xff] }
  0x93   : > { %743 = vst [vmem:[%s8866_s8 + $0x808] sm:$0xff] %v742_v1  ;;  %745 = vst [vmem:[%s8866_s8 + $0x810] sm:$0xff] %v744_v2  ;;  %v752_v6 = vld [vmem:[%s8858_s7 + $0x1870] sm:$0xff]  ;;  %v754_v7 = vld [vmem:[%s8858_s7 + $0x1878] sm:$0xff] }
  0x94   : > { %747 = vst [vmem:[%s8866_s8 + $0x818] sm:$0xff] %v746_v3  ;;  %749 = vst [vmem:[%s8866_s8 + $0x820] sm:$0xff] %v748_v4  ;;  %v756_v8 = vld [vmem:[%s8858_s7 + $0x18c0] sm:$0xff]  ;;  %v758_v9 = vld [vmem:[%s8858_s7 + $0x18c8] sm:$0xff] }
  0x95   : > { %751 = vst [vmem:[%s8866_s8 + $0x828] sm:$0xff] %v750_v5  ;;  %753 = vst [vmem:[%s8866_s8 + $0x830] sm:$0xff] %v752_v6  ;;  %v760_v10 = vld [vmem:[%s8858_s7 + $0x18d0] sm:$0xff]  ;;  %v762_v11 = vld [vmem:[%s8858_s7 + $0x18d8] sm:$0xff] }
  0x96   : > { %755 = vst [vmem:[%s8866_s8 + $0x838] sm:$0xff] %v754_v7  ;;  %757 = vst [vmem:[%s8866_s8 + $0x840] sm:$0xff] %v756_v8  ;;  %v764_v12 = vld [vmem:[%s8858_s7 + $0x1920] sm:$0xff]  ;;  %v766_v13 = vld [vmem:[%s8858_s7 + $0x1928] sm:$0xff] }
  0x97   : > { %759 = vst [vmem:[%s8866_s8 + $0x848] sm:$0xff] %v758_v9  ;;  %761 = vst [vmem:[%s8866_s8 + $0x850] sm:$0xff] %v760_v10  ;;  %v768_v14 = vld [vmem:[%s8858_s7 + $0x1930] sm:$0xff]  ;;  %v770_v15 = vld [vmem:[%s8858_s7 + $0x1938] sm:$0xff] }
  0x98   : > { %763 = vst [vmem:[%s8866_s8 + $0x858] sm:$0xff] %v762_v11  ;;  %765 = vst [vmem:[%s8866_s8 + $0x860] sm:$0xff] %v764_v12  ;;  %v772_v16 = vld [vmem:[%s8858_s7 + $0x1980] sm:$0xff]  ;;  %v774_v17 = vld [vmem:[%s8858_s7 + $0x1988] sm:$0xff] }
  0x99   : > { %767 = vst [vmem:[%s8866_s8 + $0x868] sm:$0xff] %v766_v13  ;;  %769 = vst [vmem:[%s8866_s8 + $0x870] sm:$0xff] %v768_v14  ;;  %v776_v18 = vld [vmem:[%s8858_s7 + $0x1990] sm:$0xff]  ;;  %v778_v19 = vld [vmem:[%s8858_s7 + $0x1998] sm:$0xff] }
  0x9a   : > { %771 = vst [vmem:[%s8866_s8 + $0x878] sm:$0xff] %v770_v15  ;;  %773 = vst [vmem:[%s8866_s8 + $0x880] sm:$0xff] %v772_v16  ;;  %v780_v20 = vld [vmem:[%s8858_s7 + $0x19e0] sm:$0xff]  ;;  %v782_v21 = vld [vmem:[%s8858_s7 + $0x19e8] sm:$0xff] }
  0x9b   : > { %775 = vst [vmem:[%s8866_s8 + $0x888] sm:$0xff] %v774_v17  ;;  %777 = vst [vmem:[%s8866_s8 + $0x890] sm:$0xff] %v776_v18  ;;  %v784_v22 = vld [vmem:[%s8858_s7 + $0x19f0] sm:$0xff]  ;;  %v786_v23 = vld [vmem:[%s8858_s7 + $0x19f8] sm:$0xff] }
  0x9c   : > { %779 = vst [vmem:[%s8866_s8 + $0x898] sm:$0xff] %v778_v19  ;;  %781 = vst [vmem:[%s8866_s8 + $0x8a0] sm:$0xff] %v780_v20  ;;  %v788_v24 = vld [vmem:[%s8858_s7 + $0x1a40] sm:$0xff]  ;;  %v790_v25 = vld [vmem:[%s8858_s7 + $0x1a48] sm:$0xff] }
  0x9d   : > { %783 = vst [vmem:[%s8866_s8 + $0x8a8] sm:$0xff] %v782_v21  ;;  %785 = vst [vmem:[%s8866_s8 + $0x8b0] sm:$0xff] %v784_v22  ;;  %v792_v26 = vld [vmem:[%s8858_s7 + $0x1a50] sm:$0xff]  ;;  %v794_v27 = vld [vmem:[%s8858_s7 + $0x1a58] sm:$0xff] }
  0x9e   : > { %787 = vst [vmem:[%s8866_s8 + $0x8b8] sm:$0xff] %v786_v23  ;;  %789 = vst [vmem:[%s8866_s8 + $0x8c0] sm:$0xff] %v788_v24  ;;  %v796_v28 = vld [vmem:[%s8858_s7 + $0x1aa0] sm:$0xff]  ;;  %v798_v29 = vld [vmem:[%s8858_s7 + $0x1aa8] sm:$0xff] }
  0x9f   : > { %791 = vst [vmem:[%s8866_s8 + $0x8c8] sm:$0xff] %v790_v25  ;;  %793 = vst [vmem:[%s8866_s8 + $0x8d0] sm:$0xff] %v792_v26  ;;  %v800_v30 = vld [vmem:[%s8858_s7 + $0x1ab0] sm:$0xff]  ;;  %v802_v31 = vld [vmem:[%s8858_s7 + $0x1ab8] sm:$0xff] }
  0xa0   : > { %795 = vst [vmem:[%s8866_s8 + $0x8d8] sm:$0xff] %v794_v27  ;;  %797 = vst [vmem:[%s8866_s8 + $0x8e0] sm:$0xff] %v796_v28  ;;  %v804_v32 = vld [vmem:[%s8858_s7 + $0x1b00] sm:$0xff]  ;;  %v806_v33 = vld [vmem:[%s8858_s7 + $0x1b08] sm:$0xff] }
  0xa1   : > { %799 = vst [vmem:[%s8866_s8 + $0x8e8] sm:$0xff] %v798_v29  ;;  %801 = vst [vmem:[%s8866_s8 + $0x8f0] sm:$0xff] %v800_v30  ;;  %v808_v34 = vld [vmem:[%s8858_s7 + $0x1b10] sm:$0xff]  ;;  %v810_v35 = vld [vmem:[%s8858_s7 + $0x1b18] sm:$0xff] }
  0xa2   : > { %803 = vst [vmem:[%s8866_s8 + $0x8f8] sm:$0xff] %v802_v31  ;;  %805 = vst [vmem:[%s8866_s8 + $0x900] sm:$0xff] %v804_v32  ;;  %v812_v36 = vld [vmem:[%s8858_s7 + $0x1b60] sm:$0xff]  ;;  %v814_v37 = vld [vmem:[%s8858_s7 + $0x1b68] sm:$0xff] }
  0xa3   : > { %807 = vst [vmem:[%s8866_s8 + $0x908] sm:$0xff] %v806_v33  ;;  %809 = vst [vmem:[%s8866_s8 + $0x910] sm:$0xff] %v808_v34  ;;  %v816_v38 = vld [vmem:[%s8858_s7 + $0x1b70] sm:$0xff]  ;;  %v818_v39 = vld [vmem:[%s8858_s7 + $0x1b78] sm:$0xff] }
  0xa4   : > { %811 = vst [vmem:[%s8866_s8 + $0x918] sm:$0xff] %v810_v35  ;;  %813 = vst [vmem:[%s8866_s8 + $0x920] sm:$0xff] %v812_v36  ;;  %v820_v40 = vld [vmem:[%s8858_s7 + $0x1bc0] sm:$0xff]  ;;  %v822_v41 = vld [vmem:[%s8858_s7 + $0x1bc8] sm:$0xff] }
  0xa5   : > { %815 = vst [vmem:[%s8866_s8 + $0x928] sm:$0xff] %v814_v37  ;;  %817 = vst [vmem:[%s8866_s8 + $0x930] sm:$0xff] %v816_v38  ;;  %v824_v42 = vld [vmem:[%s8858_s7 + $0x1bd0] sm:$0xff]  ;;  %v826_v43 = vld [vmem:[%s8858_s7 + $0x1bd8] sm:$0xff] }
  0xa6   : > { %819 = vst [vmem:[%s8866_s8 + $0x938] sm:$0xff] %v818_v39  ;;  %821 = vst [vmem:[%s8866_s8 + $0x940] sm:$0xff] %v820_v40  ;;  %v828_v44 = vld [vmem:[%s8858_s7 + $0x1c20] sm:$0xff]  ;;  %v830_v45 = vld [vmem:[%s8858_s7 + $0x1c28] sm:$0xff] }
  0xa7   : > { %823 = vst [vmem:[%s8866_s8 + $0x948] sm:$0xff] %v822_v41  ;;  %825 = vst [vmem:[%s8866_s8 + $0x950] sm:$0xff] %v824_v42  ;;  %v832_v46 = vld [vmem:[%s8858_s7 + $0x1c30] sm:$0xff]  ;;  %v834_v47 = vld [vmem:[%s8858_s7 + $0x1c38] sm:$0xff] }
  0xa8   : > { %827 = vst [vmem:[%s8866_s8 + $0x958] sm:$0xff] %v826_v43  ;;  %829 = vst [vmem:[%s8866_s8 + $0x960] sm:$0xff] %v828_v44  ;;  %v836_v48 = vld [vmem:[%s8858_s7 + $0x1c80] sm:$0xff]  ;;  %v838_v49 = vld [vmem:[%s8858_s7 + $0x1c88] sm:$0xff] }
  0xa9   : > { %831 = vst [vmem:[%s8866_s8 + $0x968] sm:$0xff] %v830_v45  ;;  %833 = vst [vmem:[%s8866_s8 + $0x970] sm:$0xff] %v832_v46  ;;  %v840_v50 = vld [vmem:[%s8858_s7 + $0x1c90] sm:$0xff]  ;;  %v842_v51 = vld [vmem:[%s8858_s7 + $0x1c98] sm:$0xff] }
  0xaa   : > { %835 = vst [vmem:[%s8866_s8 + $0x978] sm:$0xff] %v834_v47  ;;  %837 = vst [vmem:[%s8866_s8 + $0x980] sm:$0xff] %v836_v48  ;;  %v844_v52 = vld [vmem:[%s8858_s7 + $0x1ce0] sm:$0xff]  ;;  %v846_v53 = vld [vmem:[%s8858_s7 + $0x1ce8] sm:$0xff] }
  0xab   : > { %839 = vst [vmem:[%s8866_s8 + $0x988] sm:$0xff] %v838_v49  ;;  %841 = vst [vmem:[%s8866_s8 + $0x990] sm:$0xff] %v840_v50  ;;  %v848_v54 = vld [vmem:[%s8858_s7 + $0x1cf0] sm:$0xff]  ;;  %v850_v55 = vld [vmem:[%s8858_s7 + $0x1cf8] sm:$0xff] }
  0xac   : > { %843 = vst [vmem:[%s8866_s8 + $0x998] sm:$0xff] %v842_v51  ;;  %845 = vst [vmem:[%s8866_s8 + $0x9a0] sm:$0xff] %v844_v52  ;;  %v852_v56 = vld [vmem:[%s8858_s7 + $0x1d40] sm:$0xff]  ;;  %v854_v57 = vld [vmem:[%s8858_s7 + $0x1d48] sm:$0xff] }
  0xad   : > { %847 = vst [vmem:[%s8866_s8 + $0x9a8] sm:$0xff] %v846_v53  ;;  %849 = vst [vmem:[%s8866_s8 + $0x9b0] sm:$0xff] %v848_v54  ;;  %v856_v58 = vld [vmem:[%s8858_s7 + $0x1d50] sm:$0xff]  ;;  %v858_v59 = vld [vmem:[%s8858_s7 + $0x1d58] sm:$0xff] }
  0xae   : > { %851 = vst [vmem:[%s8866_s8 + $0x9b8] sm:$0xff] %v850_v55  ;;  %853 = vst [vmem:[%s8866_s8 + $0x9c0] sm:$0xff] %v852_v56  ;;  %v860_v60 = vld [vmem:[%s8858_s7 + $0x1da0] sm:$0xff]  ;;  %v862_v61 = vld [vmem:[%s8858_s7 + $0x1da8] sm:$0xff] }
  0xaf   : > { %855 = vst [vmem:[%s8866_s8 + $0x9c8] sm:$0xff] %v854_v57  ;;  %857 = vst [vmem:[%s8866_s8 + $0x9d0] sm:$0xff] %v856_v58  ;;  %v864_v62 = vld [vmem:[%s8858_s7 + $0x1db0] sm:$0xff]  ;;  %v866_v63 = vld [vmem:[%s8858_s7 + $0x1db8] sm:$0xff] }
  0xb0   : > { %859 = vst [vmem:[%s8866_s8 + $0x9d8] sm:$0xff] %v858_v59  ;;  %861 = vst [vmem:[%s8866_s8 + $0x9e0] sm:$0xff] %v860_v60  ;;  %v868_v0 = vld [vmem:[%s8858_s7 + $0x1e00] sm:$0xff]  ;;  %v870_v1 = vld [vmem:[%s8858_s7 + $0x1e08] sm:$0xff] }
  0xb1   : > { %863 = vst [vmem:[%s8866_s8 + $0x9e8] sm:$0xff] %v862_v61  ;;  %865 = vst [vmem:[%s8866_s8 + $0x9f0] sm:$0xff] %v864_v62  ;;  %v872_v2 = vld [vmem:[%s8858_s7 + $0x1e10] sm:$0xff]  ;;  %v874_v3 = vld [vmem:[%s8858_s7 + $0x1e18] sm:$0xff] }
  0xb2   : > { %867 = vst [vmem:[%s8866_s8 + $0x9f8] sm:$0xff] %v866_v63  ;;  %869 = vst [vmem:[%s8866_s8 + $0xa00] sm:$0xff] %v868_v0  ;;  %v876_v4 = vld [vmem:[%s8858_s7 + $0x1e60] sm:$0xff]  ;;  %v878_v5 = vld [vmem:[%s8858_s7 + $0x1e68] sm:$0xff] }
  0xb3   : > { %871 = vst [vmem:[%s8866_s8 + $0xa08] sm:$0xff] %v870_v1  ;;  %873 = vst [vmem:[%s8866_s8 + $0xa10] sm:$0xff] %v872_v2  ;;  %v880_v6 = vld [vmem:[%s8858_s7 + $0x1e70] sm:$0xff]  ;;  %v882_v7 = vld [vmem:[%s8858_s7 + $0x1e78] sm:$0xff] }
  0xb4   : > { %875 = vst [vmem:[%s8866_s8 + $0xa18] sm:$0xff] %v874_v3  ;;  %877 = vst [vmem:[%s8866_s8 + $0xa20] sm:$0xff] %v876_v4  ;;  %v884_v8 = vld [vmem:[%s8858_s7 + $0x1ec0] sm:$0xff]  ;;  %v886_v9 = vld [vmem:[%s8858_s7 + $0x1ec8] sm:$0xff] }
  0xb5   : > { %879 = vst [vmem:[%s8866_s8 + $0xa28] sm:$0xff] %v878_v5  ;;  %881 = vst [vmem:[%s8866_s8 + $0xa30] sm:$0xff] %v880_v6  ;;  %v888_v10 = vld [vmem:[%s8858_s7 + $0x1ed0] sm:$0xff]  ;;  %v890_v11 = vld [vmem:[%s8858_s7 + $0x1ed8] sm:$0xff] }
  0xb6   : > { %883 = vst [vmem:[%s8866_s8 + $0xa38] sm:$0xff] %v882_v7  ;;  %885 = vst [vmem:[%s8866_s8 + $0xa40] sm:$0xff] %v884_v8  ;;  %v892_v12 = vld [vmem:[%s8858_s7 + $0x1f20] sm:$0xff]  ;;  %v894_v13 = vld [vmem:[%s8858_s7 + $0x1f28] sm:$0xff] }
  0xb7   : > { %887 = vst [vmem:[%s8866_s8 + $0xa48] sm:$0xff] %v886_v9  ;;  %889 = vst [vmem:[%s8866_s8 + $0xa50] sm:$0xff] %v888_v10  ;;  %v896_v14 = vld [vmem:[%s8858_s7 + $0x1f30] sm:$0xff]  ;;  %v898_v15 = vld [vmem:[%s8858_s7 + $0x1f38] sm:$0xff] }
  0xb8   : > { %891 = vst [vmem:[%s8866_s8 + $0xa58] sm:$0xff] %v890_v11  ;;  %893 = vst [vmem:[%s8866_s8 + $0xa60] sm:$0xff] %v892_v12  ;;  %v900_v16 = vld [vmem:[%s8858_s7 + $0x1f80] sm:$0xff]  ;;  %v902_v17 = vld [vmem:[%s8858_s7 + $0x1f88] sm:$0xff] }
  0xb9   : > { %895 = vst [vmem:[%s8866_s8 + $0xa68] sm:$0xff] %v894_v13  ;;  %897 = vst [vmem:[%s8866_s8 + $0xa70] sm:$0xff] %v896_v14  ;;  %v904_v18 = vld [vmem:[%s8858_s7 + $0x1f90] sm:$0xff]  ;;  %v906_v19 = vld [vmem:[%s8858_s7 + $0x1f98] sm:$0xff] }
  0xba   : > { %899 = vst [vmem:[%s8866_s8 + $0xa78] sm:$0xff] %v898_v15  ;;  %901 = vst [vmem:[%s8866_s8 + $0xa80] sm:$0xff] %v900_v16  ;;  %v908_v20 = vld [vmem:[%s8858_s7 + $0x1fe0] sm:$0xff]  ;;  %v910_v21 = vld [vmem:[%s8858_s7 + $0x1fe8] sm:$0xff] }
  0xbb   : > { %903 = vst [vmem:[%s8866_s8 + $0xa88] sm:$0xff] %v902_v17  ;;  %905 = vst [vmem:[%s8866_s8 + $0xa90] sm:$0xff] %v904_v18  ;;  %v912_v22 = vld [vmem:[%s8858_s7 + $0x1ff0] sm:$0xff]  ;;  %v914_v23 = vld [vmem:[%s8858_s7 + $0x1ff8] sm:$0xff] }
  0xbc   : > { %907 = vst [vmem:[%s8866_s8 + $0xa98] sm:$0xff] %v906_v19  ;;  %909 = vst [vmem:[%s8866_s8 + $0xaa0] sm:$0xff] %v908_v20  ;;  %v916_v24 = vld [vmem:[%s8858_s7 + $0x2040] sm:$0xff]  ;;  %v918_v25 = vld [vmem:[%s8858_s7 + $0x2048] sm:$0xff] }
  0xbd   : > { %911 = vst [vmem:[%s8866_s8 + $0xaa8] sm:$0xff] %v910_v21  ;;  %913 = vst [vmem:[%s8866_s8 + $0xab0] sm:$0xff] %v912_v22  ;;  %v920_v26 = vld [vmem:[%s8858_s7 + $0x2050] sm:$0xff]  ;;  %v922_v27 = vld [vmem:[%s8858_s7 + $0x2058] sm:$0xff] }
  0xbe   : > { %915 = vst [vmem:[%s8866_s8 + $0xab8] sm:$0xff] %v914_v23  ;;  %917 = vst [vmem:[%s8866_s8 + $0xac0] sm:$0xff] %v916_v24  ;;  %v924_v28 = vld [vmem:[%s8858_s7 + $0x20a0] sm:$0xff]  ;;  %v926_v29 = vld [vmem:[%s8858_s7 + $0x20a8] sm:$0xff] }
  0xbf   : > { %919 = vst [vmem:[%s8866_s8 + $0xac8] sm:$0xff] %v918_v25  ;;  %921 = vst [vmem:[%s8866_s8 + $0xad0] sm:$0xff] %v920_v26  ;;  %v928_v30 = vld [vmem:[%s8858_s7 + $0x20b0] sm:$0xff]  ;;  %v930_v31 = vld [vmem:[%s8858_s7 + $0x20b8] sm:$0xff] }
  0xc0   : > { %923 = vst [vmem:[%s8866_s8 + $0xad8] sm:$0xff] %v922_v27  ;;  %925 = vst [vmem:[%s8866_s8 + $0xae0] sm:$0xff] %v924_v28  ;;  %v932_v32 = vld [vmem:[%s8858_s7 + $0x2100] sm:$0xff]  ;;  %v934_v33 = vld [vmem:[%s8858_s7 + $0x2108] sm:$0xff] }
  0xc1   : > { %927 = vst [vmem:[%s8866_s8 + $0xae8] sm:$0xff] %v926_v29  ;;  %929 = vst [vmem:[%s8866_s8 + $0xaf0] sm:$0xff] %v928_v30  ;;  %v936_v34 = vld [vmem:[%s8858_s7 + $0x2110] sm:$0xff]  ;;  %v938_v35 = vld [vmem:[%s8858_s7 + $0x2118] sm:$0xff] }
  0xc2   : > { %931 = vst [vmem:[%s8866_s8 + $0xaf8] sm:$0xff] %v930_v31  ;;  %933 = vst [vmem:[%s8866_s8 + $0xb00] sm:$0xff] %v932_v32  ;;  %v940_v36 = vld [vmem:[%s8858_s7 + $0x2160] sm:$0xff]  ;;  %v942_v37 = vld [vmem:[%s8858_s7 + $0x2168] sm:$0xff] }
  0xc3   : > { %935 = vst [vmem:[%s8866_s8 + $0xb08] sm:$0xff] %v934_v33  ;;  %937 = vst [vmem:[%s8866_s8 + $0xb10] sm:$0xff] %v936_v34  ;;  %v944_v38 = vld [vmem:[%s8858_s7 + $0x2170] sm:$0xff]  ;;  %v946_v39 = vld [vmem:[%s8858_s7 + $0x2178] sm:$0xff] }
  0xc4   : > { %939 = vst [vmem:[%s8866_s8 + $0xb18] sm:$0xff] %v938_v35  ;;  %941 = vst [vmem:[%s8866_s8 + $0xb20] sm:$0xff] %v940_v36  ;;  %v948_v40 = vld [vmem:[%s8858_s7 + $0x21c0] sm:$0xff]  ;;  %v950_v41 = vld [vmem:[%s8858_s7 + $0x21c8] sm:$0xff] }
  0xc5   : > { %943 = vst [vmem:[%s8866_s8 + $0xb28] sm:$0xff] %v942_v37  ;;  %945 = vst [vmem:[%s8866_s8 + $0xb30] sm:$0xff] %v944_v38  ;;  %v952_v42 = vld [vmem:[%s8858_s7 + $0x21d0] sm:$0xff]  ;;  %v954_v43 = vld [vmem:[%s8858_s7 + $0x21d8] sm:$0xff] }
  0xc6   : > { %947 = vst [vmem:[%s8866_s8 + $0xb38] sm:$0xff] %v946_v39  ;;  %949 = vst [vmem:[%s8866_s8 + $0xb40] sm:$0xff] %v948_v40  ;;  %v956_v44 = vld [vmem:[%s8858_s7 + $0x2220] sm:$0xff]  ;;  %v958_v45 = vld [vmem:[%s8858_s7 + $0x2228] sm:$0xff] }
  0xc7   : > { %951 = vst [vmem:[%s8866_s8 + $0xb48] sm:$0xff] %v950_v41  ;;  %953 = vst [vmem:[%s8866_s8 + $0xb50] sm:$0xff] %v952_v42  ;;  %v960_v46 = vld [vmem:[%s8858_s7 + $0x2230] sm:$0xff]  ;;  %v962_v47 = vld [vmem:[%s8858_s7 + $0x2238] sm:$0xff] }
  0xc8   : > { %955 = vst [vmem:[%s8866_s8 + $0xb58] sm:$0xff] %v954_v43  ;;  %957 = vst [vmem:[%s8866_s8 + $0xb60] sm:$0xff] %v956_v44  ;;  %v964_v48 = vld [vmem:[%s8858_s7 + $0x2280] sm:$0xff]  ;;  %v966_v49 = vld [vmem:[%s8858_s7 + $0x2288] sm:$0xff] }
  0xc9   : > { %959 = vst [vmem:[%s8866_s8 + $0xb68] sm:$0xff] %v958_v45  ;;  %961 = vst [vmem:[%s8866_s8 + $0xb70] sm:$0xff] %v960_v46  ;;  %v968_v50 = vld [vmem:[%s8858_s7 + $0x2290] sm:$0xff]  ;;  %v970_v51 = vld [vmem:[%s8858_s7 + $0x2298] sm:$0xff] }
  0xca   : > { %963 = vst [vmem:[%s8866_s8 + $0xb78] sm:$0xff] %v962_v47  ;;  %965 = vst [vmem:[%s8866_s8 + $0xb80] sm:$0xff] %v964_v48  ;;  %v972_v52 = vld [vmem:[%s8858_s7 + $0x22e0] sm:$0xff]  ;;  %v974_v53 = vld [vmem:[%s8858_s7 + $0x22e8] sm:$0xff] }
  0xcb   : > { %967 = vst [vmem:[%s8866_s8 + $0xb88] sm:$0xff] %v966_v49  ;;  %969 = vst [vmem:[%s8866_s8 + $0xb90] sm:$0xff] %v968_v50  ;;  %v976_v54 = vld [vmem:[%s8858_s7 + $0x22f0] sm:$0xff]  ;;  %v978_v55 = vld [vmem:[%s8858_s7 + $0x22f8] sm:$0xff] }
  0xcc   : > { %971 = vst [vmem:[%s8866_s8 + $0xb98] sm:$0xff] %v970_v51  ;;  %973 = vst [vmem:[%s8866_s8 + $0xba0] sm:$0xff] %v972_v52  ;;  %v980_v56 = vld [vmem:[%s8858_s7 + $0x2340] sm:$0xff]  ;;  %v982_v57 = vld [vmem:[%s8858_s7 + $0x2348] sm:$0xff] }
  0xcd   : > { %975 = vst [vmem:[%s8866_s8 + $0xba8] sm:$0xff] %v974_v53  ;;  %977 = vst [vmem:[%s8866_s8 + $0xbb0] sm:$0xff] %v976_v54  ;;  %v984_v58 = vld [vmem:[%s8858_s7 + $0x2350] sm:$0xff]  ;;  %v986_v59 = vld [vmem:[%s8858_s7 + $0x2358] sm:$0xff] }
  0xce   : > { %979 = vst [vmem:[%s8866_s8 + $0xbb8] sm:$0xff] %v978_v55  ;;  %981 = vst [vmem:[%s8866_s8 + $0xbc0] sm:$0xff] %v980_v56  ;;  %v988_v60 = vld [vmem:[%s8858_s7 + $0x23a0] sm:$0xff]  ;;  %v990_v61 = vld [vmem:[%s8858_s7 + $0x23a8] sm:$0xff] }
  0xcf   : > { %983 = vst [vmem:[%s8866_s8 + $0xbc8] sm:$0xff] %v982_v57  ;;  %985 = vst [vmem:[%s8866_s8 + $0xbd0] sm:$0xff] %v984_v58  ;;  %v992_v62 = vld [vmem:[%s8858_s7 + $0x23b0] sm:$0xff]  ;;  %v994_v63 = vld [vmem:[%s8858_s7 + $0x23b8] sm:$0xff] }
  0xd0   : > { %987 = vst [vmem:[%s8866_s8 + $0xbd8] sm:$0xff] %v986_v59  ;;  %989 = vst [vmem:[%s8866_s8 + $0xbe0] sm:$0xff] %v988_v60 }
  0xd1   : > { %991 = vst [vmem:[%s8866_s8 + $0xbe8] sm:$0xff] %v990_v61  ;;  %993 = vst [vmem:[%s8866_s8 + $0xbf0] sm:$0xff] %v992_v62 }
  0xd2   : > { %995 = vst [vmem:[%s8866_s8 + $0xbf8] sm:$0xff] %v994_v63 }
  0xd3 PF: > { %p7202_p6 = scmp.ge.s32.totalorder %s8782_s22, 1  ;;  %p1018_p7 = scmp.lt.s32.totalorder %s8782_s22, 4 }
  0xd5   : > { %p1019_p8 = pnand %p7202_p6, %p1018_p7 }
  0xd6   : > { %s1025_s9 = sand.u32 (!%p1019_p8), 1, %s8766_s18   ;;  %s7203_s10 = sshll.u32 (!%p1019_p8), %s8774_s20, 3 }
  0xd7   : > { %1022 = sbr.rel (%p1019_p8) target bundleno = 1477 (0x5c5), region = 59  ;;  %p1078_p9 = scmp.lt.s32.totalorder (!%p1019_p8), %s7203_s10, 23 }
  0xd8   : > { %s8072_s11 = smul.u32 (!%p1019_p8), 3072, %s1025_s9  ;;  %s7204_s12 = sshll.u32 (!%p1019_p8), %s8774_s20, 7 }
  0xd9   : > { %p1083_p10 = scmp.lt.s32.totalorder (!%p1019_p8), %s7204_s12, 383  ;;  %p7206_p11 = scmp.ne.s32.totalorder (!%p1019_p8), %s8774_s20, 0 }
  0xda   : > { %s9645_s27 = scalar_lea.vmem (!%p1019_p8), [#allocation3], %s8072_s11 }
  0xde   : > { %s10708_s10 = smov (!%p1078_p9, %s7203_s10), 23  ;;  %s10710_s12 = smov (!%p1083_p10, %s7204_s12), 383 }
  0xdf   : > { %s9638_s15 = scalar_lea.vmem %s10697_s2, %s10708_s10  ;;  %s8073_s16 = smul.u32 24, %s10710_s12  ;;  %v8784_v0 = vmov (!%p7206_p11), 0.0  }
  0xe0   : > { %1099 = sbr.rel (%p7206_p11) target bundleno = 231 (0xe7), region = 67  ;;  %1100 = vst [vmem:[#allocation2] sm:$0xff] (!%p7206_p11), %v8784_v0  ;;  %1101 = vst [vmem:[#allocation2 + $0x8] sm:$0xff] (!%p7206_p11), %v8784_v0 }
  0xe1   : > { %s9643_s25 = scalar_lea.vmem %s10698_s3, %s8073_s16  ;;  %1102 = vst [vmem:[#allocation2 + $0x10] sm:$0xff] (!%p7206_p11), %v8784_v0  ;;  %1103 = vst [vmem:[#allocation2 + $0x18] sm:$0xff] (!%p7206_p11), %v8784_v0 }
  0xe2   : > { %1104 = vst [vmem:[#allocation2 + $0x20] sm:$0xff] (!%p7206_p11), %v8784_v0  ;;  %1105 = vst [vmem:[#allocation2 + $0x28] sm:$0xff] (!%p7206_p11), %v8784_v0 }
  0xe3   : > { %1106 = vst [vmem:[#allocation2 + $0x30] sm:$0xff] (!%p7206_p11), %v8784_v0  ;;  %1107 = vst [vmem:[#allocation2 + $0x38] sm:$0xff] (!%p7206_p11), %v8784_v0 }
  0xe4   : > { %1108 = vst [vmem:[#allocation2 + $0x40] sm:$0xff] (!%p7206_p11), %v8784_v0  ;;  %1109 = vst [vmem:[#allocation2 + $0x48] sm:$0xff] (!%p7206_p11), %v8784_v0 }
  0xe5   : > { %1110 = vst [vmem:[#allocation2 + $0x50] sm:$0xff] (!%p7206_p11), %v8784_v0  ;;  %1111 = vst [vmem:[#allocation2 + $0x58] sm:$0xff] (!%p7206_p11), %v8784_v0 }
  0xe7 PF: > { %v1118_v1 = vld [vmem:[%s9645_s27] sm:$0xff]  ;;  %p7981_p12 = scmp.ne.s32.totalorder %s8774_s20, 2 }
  0xe8   : > { %v1122_v2 = vld [vmem:[%s9645_s27 + $0x20] sm:$0xff] }
  0xe9   : > { %v1126_v3 = vld [vmem:[%s9645_s27 + $0x40] sm:$0xff]  ;;  %v7214_v4 = vcombine.high %v1118_v1, %v1122_v2  ;;  %v7213_v5 = vcombine.low %v1118_v1, %v1122_v2 }
  0xea   : > { %v1130_v6 = vld [vmem:[%s9645_s27 + $0x60] sm:$0xff] }
  0xeb   : > { %v7222_v7 = vcombine.high %v1126_v3, %v1130_v6  ;;  %v1134_v8 = vld [vmem:[%s9645_s27 + $0x80] sm:$0xff]  ;;  %3494 = vmatprep.subr.bf16.mxu1 %v7214_v4  ;;  %v7221_v10 = vcombine.low %v1126_v3, %v1130_v6  ;;  %v8118_v4 = vld [vmem:[%s10695_s0 + $0x14] ss:$24 sps:$4 sm:$0xff]  }
  0xec   : > { %v1138_v9 = vld [vmem:[%s9645_s27 + $0xa0] sm:$0xff]  ;;  %3495 = vmatpush1.bf16.msra.mxu1 %v7213_v5  ;;  %3612 = vmatprep.mubr.bf16.mxu0 %v8118_v4 }
  0xed   : > { %3496 = vmatprep.subr.bf16.mxu1 %v7222_v7  ;;  %v7230_v11 = vcombine.high %v1134_v8, %v1138_v9  ;;  %v1142_v12 = vld [vmem:[%s9645_s27 + $0xc0] sm:$0xff]  ;;  %v7229_v16 = vcombine.low %v1134_v8, %v1138_v9 }
  0xee   : > { %v1146_v13 = vld [vmem:[%s9645_s27 + $0xe0] sm:$0xff] }
  0xef   : > { %v1374_v14 = vld [vmem:[%s9645_s27 + $0x800] sm:$0xff]  ;;  %v7238_v20 = vcombine.high %v1142_v12, %v1146_v13  ;;  %v7237_v28 = vcombine.low %v1142_v12, %v1146_v13 }
  0xf0   : > { %v1378_v15 = vld [vmem:[%s9645_s27 + $0x820] sm:$0xff]  ;;  %3497 = vmatpush1.bf16.msra.mxu1 %v7221_v10 }
  0xf1   : > { %v7470_v17 = vcombine.high %v1374_v14, %v1378_v15  ;;  %v7469_v18 = vcombine.low %v1374_v14, %v1378_v15  ;;  %v1382_v19 = vld [vmem:[%s9645_s27 + $0x840] sm:$0xff]  ;;  %3498 = vmatprep.subr.bf16.mxu1 %v7230_v11 }
  0xf2   : > { %v1150_v21 = vld [vmem:[%s9645_s27 + $0x100] sm:$0xff] }
  0xf3   : > { %v1386_v22 = vld [vmem:[%s9645_s27 + $0x860] sm:$0xff]  ;;  %3580 = vmatprep.subr.bf16.mxu0 %v7470_v17 }
  0xf4   : > { %v1154_v23 = vld [vmem:[%s9645_s27 + $0x120] sm:$0xff]  ;;  %v7478_v24 = vcombine.high %v1382_v19, %v1386_v22  ;;  %3581 = vmatpush1.bf16.msra.mxu0 %v7469_v18  ;;  %v7477_v27 = vcombine.low %v1382_v19, %v1386_v22  ;;  %3499 = vmatpush1.bf16.msra.mxu1 %v7229_v16 }
  0xf5   : > { %v1390_v25 = vld [vmem:[%s9645_s27 + $0x880] sm:$0xff]  ;;  %3500 = vmatprep.subr.bf16.mxu1 %v7238_v20  ;;  %v7246_v30 = vcombine.high %v1150_v21, %v1154_v23  ;;  %v7245_v37 = vcombine.low %v1150_v21, %v1154_v23 }
  0xf6   : > { %v1394_v26 = vld [vmem:[%s9645_s27 + $0x8a0] sm:$0xff]  ;;  %3582 = vmatprep.subr.bf16.mxu0 %v7478_v24 }
  0xf7   : > { %v7486_v29 = vcombine.high %v1390_v25, %v1394_v26  ;;  %v1398_v31 = vld [vmem:[%s9645_s27 + $0x8c0] sm:$0xff]  ;;  %v7485_v35 = vcombine.low %v1390_v25, %v1394_v26 }
  0xf8   : > { %v1402_v32 = vld [vmem:[%s9645_s27 + $0x8e0] sm:$0xff]  ;;  %3583 = vmatpush1.bf16.msra.mxu0 %v7477_v27  ;;  %3501 = vmatpush1.bf16.msra.mxu1 %v7237_v28 }
  0xf9   : > { %v1158_v33 = vld [vmem:[%s9645_s27 + $0x140] sm:$0xff]  ;;  %3584 = vmatprep.subr.bf16.mxu0 %v7486_v29  ;;  %v7494_v38 = vcombine.high %v1398_v31, %v1402_v32  ;;  %3502 = vmatprep.subr.bf16.mxu1 %v7246_v30  ;;  %v7493_v44 = vcombine.low %v1398_v31, %v1402_v32 }
  0xfa   : > { %v1162_v34 = vld [vmem:[%s9645_s27 + $0x160] sm:$0xff] }
  0xfb   : > { %v9671_v36 = vld [vmem:[%s10695_s0 + $0x4] ss:$24 sps:$4 sm:$0xff]   ;;  %v7254_v39 = vcombine.high %v1158_v33, %v1162_v34  ;;  %v7253_v45 = vcombine.low %v1158_v33, %v1162_v34  ;;  %v9726_v4 = vld [vmem:[%s10695_s0] ss:$24 sps:$4 sm:$0xff]  }
  0xfc   : > { %v1406_v40 = vld [vmem:[%s9645_s27 + $0x900] sm:$0xff]  ;;  %3526 = vmatprep.mubr.bf16.mxu1 %v9671_v36  ;;  %3585 = vmatpush1.bf16.msra.mxu0 %v7485_v35 }
  0xfd   : > { %v1410_v41 = vld [vmem:[%s9645_s27 + $0x920] sm:$0xff]  ;;  %3503 = vmatpush1.bf16.msra.mxu1 %v7245_v37  ;;  %3586 = vmatprep.subr.bf16.mxu0 %v7494_v38 }
  0xfe   : > { %v1166_v42 = vld [vmem:[%s9645_s27 + $0x180] sm:$0xff]  ;;  %v7502_v46 = vcombine.high %v1406_v40, %v1410_v41  ;;  %3504 = vmatprep.subr.bf16.mxu1 %v7254_v39  ;;  %v7501_v52 = vcombine.low %v1406_v40, %v1410_v41 }
  0xff   : > { %v1170_v43 = vld [vmem:[%s9645_s27 + $0x1a0] sm:$0xff] }
 0x100   : > { %v7262_v47 = vcombine.high %v1166_v42, %v1170_v43  ;;  %v1414_v48 = vld [vmem:[%s9645_s27 + $0x940] sm:$0xff]  ;;  %3587 = vmatpush1.bf16.msra.mxu0 %v7493_v44  ;;  %v7261_v53 = vcombine.low %v1166_v42, %v1170_v43 }
 0x101   : > { %v1418_v49 = vld [vmem:[%s9645_s27 + $0x960] sm:$0xff]  ;;  %3505 = vmatpush1.bf16.msra.mxu1 %v7253_v45  ;;  %3588 = vmatprep.subr.bf16.mxu0 %v7502_v46 }
 0x102   : > { %v1174_v50 = vld [vmem:[%s9645_s27 + $0x1c0] sm:$0xff]  ;;  %v7510_v54 = vcombine.high %v1414_v48, %v1418_v49  ;;  %3506 = vmatprep.subr.bf16.mxu1 %v7262_v47  ;;  %v7509_v60 = vcombine.low %v1414_v48, %v1418_v49 }
 0x103   : > { %v1178_v51 = vld [vmem:[%s9645_s27 + $0x1e0] sm:$0xff] }
 0x104   : > { %v7270_v55 = vcombine.high %v1174_v50, %v1178_v51  ;;  %v1422_v56 = vld [vmem:[%s9645_s27 + $0x980] sm:$0xff]  ;;  %3589 = vmatpush1.bf16.msra.mxu0 %v7501_v52  ;;  %v7269_v61 = vcombine.low %v1174_v50, %v1178_v51 }
 0x105   : > { %v1426_v57 = vld [vmem:[%s9645_s27 + $0x9a0] sm:$0xff]  ;;  %3507 = vmatpush1.bf16.msra.mxu1 %v7261_v53  ;;  %3590 = vmatprep.subr.bf16.mxu0 %v7510_v54 }
 0x106   : > { %v1182_v58 = vld [vmem:[%s9645_s27 + $0x200] sm:$0xff]  ;;  %v7518_v63 = vcombine.high %v1422_v56, %v1426_v57  ;;  %3508 = vmatprep.subr.bf16.mxu1 %v7270_v55  ;;  %v7517_v5 = vcombine.low %v1422_v56, %v1426_v57 }
 0x107   : > { %v1186_v59 = vld [vmem:[%s9645_s27 + $0x220] sm:$0xff] }
 0x108   : > { %v1190_v62 = vld [vmem:[%s9645_s27 + $0x240] sm:$0xff]  ;;  %v7278_v0 = vcombine.high %v1182_v58, %v1186_v59  ;;  %3591 = vmatpush1.bf16.msra.mxu0 %v7509_v60  ;;  %v7277_v6 = vcombine.low %v1182_v58, %v1186_v59 }
 0x109   : > { %v1194_v1 = vld [vmem:[%s9645_s27 + $0x260] sm:$0xff]  ;;  %3509 = vmatpush1.bf16.msra.mxu1 %v7269_v61  ;;  %3592 = vmatprep.subr.bf16.mxu0 %v7518_v63 }
 0x10a   : > { %v1430_v2 = vld [vmem:[%s9645_s27 + $0x9c0] sm:$0xff]  ;;  %3510 = vmatprep.subr.bf16.mxu1 %v7278_v0  ;;  %v7286_v8 = vcombine.high %v1190_v62, %v1194_v1  ;;  %v7285_v14 = vcombine.low %v1190_v62, %v1194_v1 }
 0x10b   : > { %v1434_v3 = vld [vmem:[%s9645_s27 + $0x9e0] sm:$0xff] }
 0x10c   : > { %v7526_v7 = vcombine.high %v1430_v2, %v1434_v3  ;;  %v1438_v9 = vld [vmem:[%s9645_s27 + $0xa00] sm:$0xff]  ;;  %3593 = vmatpush1.bf16.msra.mxu0 %v7517_v5  ;;  %v7525_v13 = vcombine.low %v1430_v2, %v1434_v3 }
 0x10d   : > { %v1442_v10 = vld [vmem:[%s9645_s27 + $0xa20] sm:$0xff]  ;;  %3511 = vmatpush1.bf16.msra.mxu1 %v7277_v6 }
 0x10e   : > { %v1198_v11 = vld [vmem:[%s9645_s27 + $0x280] sm:$0xff]  ;;  %3594 = vmatprep.subr.bf16.mxu0 %v7526_v7  ;;  %v7534_v15 = vcombine.high %v1438_v9, %v1442_v10  ;;  %3512 = vmatprep.subr.bf16.mxu1 %v7286_v8  ;;  %v7533_v21 = vcombine.low %v1438_v9, %v1442_v10 }
 0x10f   : > { %v1202_v12 = vld [vmem:[%s9645_s27 + $0x2a0] sm:$0xff] }
 0x110   : > { %v7294_v16 = vcombine.high %v1198_v11, %v1202_v12  ;;  %v1446_v17 = vld [vmem:[%s9645_s27 + $0xa40] sm:$0xff]  ;;  %3595 = vmatpush1.bf16.msra.mxu0 %v7525_v13  ;;  %v7293_v22 = vcombine.low %v1198_v11, %v1202_v12  ;;  %v1120_v12 = vld [vmem:[%s9645_s27 + $0x10] sm:$0xff] }
 0x111   : > { %v1450_v18 = vld [vmem:[%s9645_s27 + $0xa60] sm:$0xff]  ;;  %3513 = vmatpush1.bf16.msra.mxu1 %v7285_v14  ;;  %3596 = vmatprep.subr.bf16.mxu0 %v7534_v15  ;;  %v1124_v14 = vld [vmem:[%s9645_s27 + $0x30] sm:$0xff] }
 0x112   : > { %v1206_v19 = vld [vmem:[%s9645_s27 + $0x2c0] sm:$0xff]  ;;  %v7542_v23 = vcombine.high %v1446_v17, %v1450_v18  ;;  %3514 = vmatprep.subr.bf16.mxu1 %v7294_v16  ;;  %v7541_v29 = vcombine.low %v1446_v17, %v1450_v18 }
 0x113   : > { %v1210_v20 = vld [vmem:[%s9645_s27 + $0x2e0] sm:$0xff] }
 0x114   : > { %v7302_v24 = vcombine.high %v1206_v19, %v1210_v20  ;;  %v1454_v25 = vld [vmem:[%s9645_s27 + $0xa80] sm:$0xff]  ;;  %3597 = vmatpush1.bf16.msra.mxu0 %v7533_v21  ;;  %v7301_v30 = vcombine.low %v1206_v19, %v1210_v20  ;;  %v7218_v20 = vcombine.high %v1120_v12, %v1124_v14  ;;  %v8120_v21 = vld [vmem:[%s10695_s0 + $0x10] ss:$24 sps:$4 sm:$0xff]  }
 0x115   : > { %v1458_v26 = vld [vmem:[%s9645_s27 + $0xaa0] sm:$0xff]  ;;  %3515 = vmatpush1.bf16.msra.mxu1 %v7293_v22  ;;  %3598 = vmatprep.subr.bf16.mxu0 %v7542_v23  ;;  %v1128_v23 = vld [vmem:[%s9645_s27 + $0x50] sm:$0xff] }
 0x116   : > { %v1214_v27 = vld [vmem:[%s9645_s27 + $0x300] sm:$0xff]  ;;  %v7550_v31 = vcombine.high %v1454_v25, %v1458_v26  ;;  %3516 = vmatprep.subr.bf16.mxu1 %v7302_v24  ;;  %v7549_v38 = vcombine.low %v1454_v25, %v1458_v26  ;;  %v1132_v24 = vld [vmem:[%s9645_s27 + $0x70] sm:$0xff]  ;;  %v7217_v25 = vcombine.low %v1120_v12, %v1124_v14 }
 0x117   : > { %v1218_v28 = vld [vmem:[%s9645_s27 + $0x320] sm:$0xff] }
 0x118   : > { %v7310_v32 = vcombine.high %v1214_v27, %v1218_v28  ;;  %v1462_v33 = vld [vmem:[%s9645_s27 + $0xac0] sm:$0xff]  ;;  %3599 = vmatpush1.bf16.msra.mxu0 %v7541_v29  ;;  %v7309_v39 = vcombine.low %v1214_v27, %v1218_v28  ;;  %v7226_v29 = vcombine.high %v1128_v23, %v1132_v24 }
 0x119   : > { %v1466_v34 = vld [vmem:[%s9645_s27 + $0xae0] sm:$0xff]  ;;  %3517 = vmatpush1.bf16.msra.mxu1 %v7301_v30  ;;  %3600 = vmatprep.subr.bf16.mxu0 %v7550_v31  ;;  %v1136_v31 = vld [vmem:[%s9645_s27 + $0x90] sm:$0xff] }
 0x11a   : > { %v1222_v35 = vld [vmem:[%s9645_s27 + $0x340] sm:$0xff]  ;;  %v7558_v40 = vcombine.high %v1462_v33, %v1466_v34  ;;  %3518 = vmatprep.subr.bf16.mxu1 %v7310_v32  ;;  %v7557_v46 = vcombine.low %v1462_v33, %v1466_v34  ;;  %v1140_v32 = vld [vmem:[%s9645_s27 + $0xb0] sm:$0xff]  ;;  %v7225_v33 = vcombine.low %v1128_v23, %v1132_v24 }
 0x11b   : > { %v1226_v37 = vld [vmem:[%s9645_s27 + $0x360] sm:$0xff] }
 0x11c   : > { %v7318_v41 = vcombine.high %v1222_v35, %v1226_v37  ;;  %v1470_v42 = vld [vmem:[%s9645_s27 + $0xb00] sm:$0xff]  ;;  %3601 = vmatpush1.bf16.msra.mxu0 %v7549_v38  ;;  %v7317_v47 = vcombine.low %v1222_v35, %v1226_v37  ;;  %v7234_v38 = vcombine.high %v1136_v31, %v1140_v32 }
 0x11d   : > { %v1474_v43 = vld [vmem:[%s9645_s27 + $0xb20] sm:$0xff]  ;;  %3519 = vmatpush1.bf16.msra.mxu1 %v7309_v39  ;;  %3602 = vmatprep.subr.bf16.mxu0 %v7558_v40  ;;  %v1144_v40 = vld [vmem:[%s9645_s27 + $0xd0] sm:$0xff] }
 0x11e   : > { %v1230_v44 = vld [vmem:[%s9645_s27 + $0x380] sm:$0xff]  ;;  %v7566_v48 = vcombine.high %v1470_v42, %v1474_v43  ;;  %3520 = vmatprep.subr.bf16.mxu1 %v7318_v41  ;;  %v7565_v54 = vcombine.low %v1470_v42, %v1474_v43  ;;  %v1148_v41 = vld [vmem:[%s9645_s27 + $0xf0] sm:$0xff]  ;;  %v7233_v42 = vcombine.low %v1136_v31, %v1140_v32 }
 0x11f   : > { %v1234_v45 = vld [vmem:[%s9645_s27 + $0x3a0] sm:$0xff] }
 0x120   : > { %v7326_v49 = vcombine.high %v1230_v44, %v1234_v45  ;;  %v1478_v50 = vld [vmem:[%s9645_s27 + $0xb40] sm:$0xff]  ;;  %3603 = vmatpush1.bf16.msra.mxu0 %v7557_v46  ;;  %v7325_v55 = vcombine.low %v1230_v44, %v1234_v45  ;;  %v7242_v45 = vcombine.high %v1144_v40, %v1148_v41 }
 0x121   : > { %v1482_v51 = vld [vmem:[%s9645_s27 + $0xb60] sm:$0xff]  ;;  %3521 = vmatpush1.bf16.msra.mxu1 %v7317_v47  ;;  %3604 = vmatprep.subr.bf16.mxu0 %v7566_v48  ;;  %v1152_v47 = vld [vmem:[%s9645_s27 + $0x110] sm:$0xff] }
 0x122   : > { %v1238_v52 = vld [vmem:[%s9645_s27 + $0x3c0] sm:$0xff]  ;;  %v7574_v56 = vcombine.high %v1478_v50, %v1482_v51  ;;  %3522 = vmatprep.subr.bf16.mxu1 %v7326_v49  ;;  %v7573_v62 = vcombine.low %v1478_v50, %v1482_v51  ;;  %v1156_v48 = vld [vmem:[%s9645_s27 + $0x130] sm:$0xff]  ;;  %v7241_v49 = vcombine.low %v1144_v40, %v1148_v41 }
 0x123   : > { %v1242_v53 = vld [vmem:[%s9645_s27 + $0x3e0] sm:$0xff] }
 0x124   : > { %v7334_v57 = vcombine.high %v1238_v52, %v1242_v53  ;;  %v1486_v58 = vld [vmem:[%s9645_s27 + $0xb80] sm:$0xff]  ;;  %3605 = vmatpush1.bf16.msra.mxu0 %v7565_v54  ;;  %v7333_v63 = vcombine.low %v1238_v52, %v1242_v53  ;;  %v7250_v53 = vcombine.high %v1152_v47, %v1156_v48 }
 0x125   : > { %v1490_v59 = vld [vmem:[%s9645_s27 + $0xba0] sm:$0xff]  ;;  %3523 = vmatpush1.bf16.msra.mxu1 %v7325_v55  ;;  %3606 = vmatprep.subr.bf16.mxu0 %v7574_v56  ;;  %v1160_v55 = vld [vmem:[%s9645_s27 + $0x150] sm:$0xff] }
 0x126   : > { %v1246_v60 = vld [vmem:[%s9645_s27 + $0x400] sm:$0xff]  ;;  %v7582_v2 = vcombine.high %v1486_v58, %v1490_v59  ;;  %3524 = vmatprep.subr.bf16.mxu1 %v7334_v57  ;;  %v7581_v7 = vcombine.low %v1486_v58, %v1490_v59  ;;  %v1164_v56 = vld [vmem:[%s9645_s27 + $0x170] sm:$0xff]  ;;  %v7249_v57 = vcombine.low %v1152_v47, %v1156_v48 }
 0x127   : > { %v1250_v61 = vld [vmem:[%s9645_s27 + $0x420] sm:$0xff] }
 0x128   : > { %v1254_v0 = vld [vmem:[%s9645_s27 + $0x440] sm:$0xff]  ;;  %v7342_v3 = vcombine.high %v1246_v60, %v1250_v61  ;;  %3607 = vmatpush1.bf16.msra.mxu0 %v7573_v62  ;;  %v7341_v8 = vcombine.low %v1246_v60, %v1250_v61  ;;  %v7258_v61 = vcombine.high %v1160_v55, %v1164_v56 }
 0x129   : > { %v1258_v1 = vld [vmem:[%s9645_s27 + $0x460] sm:$0xff]  ;;  %3525 = vmatpush1.bf16.msra.mxu1 %v7333_v63  ;;  %3608 = vmatprep.subr.bf16.mxu0 %v7582_v2  ;;  %v1168_v63 = vld [vmem:[%s9645_s27 + $0x190] sm:$0xff] }
 0x12a   : > { %v1494_v5 = vld [vmem:[%s9645_s27 + $0xbc0] sm:$0xff]  ;;  %3537 = vmatprep.subr.bf16.mxu1 %v7342_v3  ;;  %v7350_v13 = vcombine.high %v1254_v0, %v1258_v1  ;;  %v7349_v17 = vcombine.low %v1254_v0, %v1258_v1  ;;  %v1172_v0 = vld [vmem:[%s9645_s27 + $0x1b0] sm:$0xff]  ;;  %v7257_v1 = vcombine.low %v1160_v55, %v1164_v56 }
 0x12b   : > { %v1498_v6 = vld [vmem:[%s9645_s27 + $0xbe0] sm:$0xff] }
 0x12c   : > { %v1262_v9 = vld [vmem:[%s9645_s27 + $0x480] sm:$0xff]  ;;  %v7590_v11 = vcombine.high %v1494_v5, %v1498_v6  ;;  %3527 = vmatmul.mubr.bf16.vlgmr.msra.gmra.mrb[0].mxu1 %v9726_v4  ;;  %3609 = vmatpush1.bf16.msra.mxu0 %v7581_v7  ;;  %v7589_v16 = vcombine.low %v1494_v5, %v1498_v6  ;;  %v7266_v6 = vcombine.high %v1168_v63, %v1172_v0 }
 0x12d   : > { %v1266_v10 = vld [vmem:[%s9645_s27 + $0x4a0] sm:$0xff]  ;;  %3538 = vmatpush1.bf16.msra.mxu1 %v7341_v8  ;;  %v1176_v8 = vld [vmem:[%s9645_s27 + $0x1d0] sm:$0xff] }
 0x12e   : > { %v9737_v15 = vld [vmem:[%s10695_s0 + $0xc] ss:$24 sps:$4 sm:$0xff]   ;;  %3610 = vmatprep.subr.bf16.mxu0 %v7590_v11  ;;  %3539 = vmatprep.subr.bf16.mxu1 %v7350_v13  ;;  %v7358_v22 = vcombine.high %v1262_v9, %v1266_v10  ;;  %v7357_v26 = vcombine.low %v1262_v9, %v1266_v10  ;;  %v1180_v9 = vld [vmem:[%s9645_s27 + $0x1f0] sm:$0xff]  ;;  %v7265_v10 = vcombine.low %v1168_v63, %v1172_v0 }
 0x12f   : > { %v1270_v18 = vld [vmem:[%s9645_s27 + $0x4c0] sm:$0xff]  ;;  %3569 = vmatprep.mubr.bf16.mxu1 %v9737_v15  ;;  %v7274_v14 = vcombine.high %v1176_v8, %v1180_v9 }
 0x130   : > { %v1274_v19 = vld [vmem:[%s9645_s27 + $0x4e0] sm:$0xff]  ;;  %3611 = vmatpush1.bf16.msra.mxu0 %v7589_v16 }
 0x131   : > { %3540 = vmatpush1.bf16.msra.mxu1 %v7349_v17  ;;  %v1278_v27 = vld [vmem:[%s9645_s27 + $0x500] sm:$0xff]  ;;  %3752 = vmatprep.subr.bf16.mxu0 %v7218_v20  ;;  %v7366_v30 = vcombine.high %v1270_v18, %v1274_v19  ;;  %v7365_v34 = vcombine.low %v1270_v18, %v1274_v19  ;;  %v1184_v17 = vld [vmem:[%s9645_s27 + $0x210] sm:$0xff]  ;;  %v7273_v19 = vcombine.low %v1176_v8, %v1180_v9 }
 0x132   : > { %v1282_v28 = vld [vmem:[%s9645_s27 + $0x520] sm:$0xff]  ;;  %3541 = vmatprep.subr.bf16.mxu1 %v7358_v22  ;;  %v1188_v18 = vld [vmem:[%s9645_s27 + $0x230] sm:$0xff] }
 0x133   : > { %3613 = vmatmul.mubr.bf16.vlgmr.msra.gmra.mrb[0].mxu0 %v8120_v21  ;;  %v1286_v35 = vld [vmem:[%s9645_s27 + $0x540] sm:$0xff]  ;;  %v7374_v39 = vcombine.high %v1278_v27, %v1282_v28  ;;  %v7373_v43 = vcombine.low %v1278_v27, %v1282_v28  ;;  %v7282_v23 = vcombine.high %v1184_v17, %v1188_v18  ;;  %v7281_v27 = vcombine.low %v1184_v17, %v1188_v18  ;;  %v1139_v17 = vld [vmem:[%s9645_s27 + $0xa8] sm:$0xff] }
 0x134   : > { %3753 = vmatpush1.bf16.msra.mxu0 %v7217_v25  ;;  %3784 = vmatprep.mubr.bf16.mxu0 %v9671_v36  ;;  %v1290_v37 = vld [vmem:[%s9645_s27 + $0x560] sm:$0xff]  ;;  %v1192_v25 = vld [vmem:[%s9645_s27 + $0x250] sm:$0xff] }
 0x135   : > { %3542 = vmatpush1.bf16.msra.mxu1 %v7357_v26  ;;  %3754 = vmatprep.subr.bf16.mxu0 %v7226_v29  ;;  %v1294_v36 = vld [vmem:[%s9645_s27 + $0x580] sm:$0xff]  ;;  %v7382_v46 = vcombine.high %v1286_v35, %v1290_v37  ;;  %v7381_v50 = vcombine.low %v1286_v35, %v1290_v37  ;;  %v1196_v26 = vld [vmem:[%s9645_s27 + $0x270] sm:$0xff] }
 0x136   : > { %3543 = vmatprep.subr.bf16.mxu1 %v7366_v30  ;;  %v1298_v44 = vld [vmem:[%s9645_s27 + $0x5a0] sm:$0xff]  ;;  %v7290_v31 = vcombine.high %v1192_v25, %v1196_v26  ;;  %v7289_v35 = vcombine.low %v1192_v25, %v1196_v26  ;;  %v1147_v25 = vld [vmem:[%s9645_s27 + $0xe8] sm:$0xff] }
 0x137   : > { %v1302_v51 = vld [vmem:[%s9645_s27 + $0x5c0] sm:$0xff]  ;;  %v7390_v54 = vcombine.high %v1294_v36, %v1298_v44  ;;  %v7389_v58 = vcombine.low %v1294_v36, %v1298_v44 }
 0x138   : > { %3755 = vmatpush1.bf16.msra.mxu0 %v7225_v33  ;;  %v1306_v52 = vld [vmem:[%s9645_s27 + $0x5e0] sm:$0xff]  ;;  %v1200_v33 = vld [vmem:[%s9645_s27 + $0x290] sm:$0xff] }
 0x139   : > { %3544 = vmatpush1.bf16.msra.mxu1 %v7365_v34  ;;  %3756 = vmatprep.subr.bf16.mxu0 %v7234_v38  ;;  %v1310_v59 = vld [vmem:[%s9645_s27 + $0x600] sm:$0xff]  ;;  %v7398_v62 = vcombine.high %v1302_v51, %v1306_v52  ;;  %v7397_v2 = vcombine.low %v1302_v51, %v1306_v52  ;;  %v1204_v34 = vld [vmem:[%s9645_s27 + $0x2b0] sm:$0xff] }
 0x13a   : > { %3545 = vmatprep.subr.bf16.mxu1 %v7374_v39  ;;  %v1314_v60 = vld [vmem:[%s9645_s27 + $0x620] sm:$0xff]  ;;  %v7298_v40 = vcombine.high %v1200_v33, %v1204_v34  ;;  %v7297_v36 = vcombine.low %v1200_v33, %v1204_v34  ;;  %v1151_v33 = vld [vmem:[%s9645_s27 + $0x108] sm:$0xff] }
 0x13b   : > { %v1318_v3 = vld [vmem:[%s9645_s27 + $0x640] sm:$0xff]  ;;  %v7406_v7 = vcombine.high %v1310_v59, %v1314_v60  ;;  %v7405_v11 = vcombine.low %v1310_v59, %v1314_v60  ;;  %v1155_v34 = vld [vmem:[%s9645_s27 + $0x128] sm:$0xff] }
 0x13c   : > { %3757 = vmatpush1.bf16.msra.mxu0 %v7233_v42  ;;  %v1322_v5 = vld [vmem:[%s9645_s27 + $0x660] sm:$0xff]  ;;  %v1208_v42 = vld [vmem:[%s9645_s27 + $0x2d0] sm:$0xff] }
 0x13d   : > { %3546 = vmatpush1.bf16.msra.mxu1 %v7373_v43  ;;  %3758 = vmatprep.subr.bf16.mxu0 %v7242_v45  ;;  %v1326_v12 = vld [vmem:[%s9645_s27 + $0x680] sm:$0xff]  ;;  %v7414_v16 = vcombine.high %v1318_v3, %v1322_v5  ;;  %v7413_v20 = vcombine.low %v1318_v3, %v1322_v5  ;;  %v1212_v43 = vld [vmem:[%s9645_s27 + $0x2f0] sm:$0xff] }
 0x13e   : > { %3547 = vmatprep.subr.bf16.mxu1 %v7382_v46  ;;  %v1330_v13 = vld [vmem:[%s9645_s27 + $0x6a0] sm:$0xff]  ;;  %v7306_v47 = vcombine.high %v1208_v42, %v1212_v43  ;;  %v7305_v51 = vcombine.low %v1208_v42, %v1212_v43  ;;  %v1159_v42 = vld [vmem:[%s9645_s27 + $0x148] sm:$0xff] }
 0x13f   : > { %v1334_v21 = vld [vmem:[%s9645_s27 + $0x6c0] sm:$0xff]  ;;  %v7422_v24 = vcombine.high %v1326_v12, %v1330_v13  ;;  %v7421_v28 = vcombine.low %v1326_v12, %v1330_v13  ;;  %v1244_v12 = vld [vmem:[%s9645_s27 + $0x3f0] sm:$0xff]  ;;  %v1163_v43 = vld [vmem:[%s9645_s27 + $0x168] sm:$0xff] }
 0x140   : > { %3759 = vmatpush1.bf16.msra.mxu0 %v7241_v49  ;;  %v1338_v22 = vld [vmem:[%s9645_s27 + $0x6e0] sm:$0xff]  ;;  %v1216_v49 = vld [vmem:[%s9645_s27 + $0x310] sm:$0xff] }
 0x141   : > { %3548 = vmatpush1.bf16.msra.mxu1 %v7381_v50  ;;  %3760 = vmatprep.subr.bf16.mxu0 %v7250_v53  ;;  %v1342_v29 = vld [vmem:[%s9645_s27 + $0x700] sm:$0xff]  ;;  %v7430_v32 = vcombine.high %v1334_v21, %v1338_v22  ;;  %v7429_v37 = vcombine.low %v1334_v21, %v1338_v22  ;;  %v1220_v50 = vld [vmem:[%s9645_s27 + $0x330] sm:$0xff] }
 0x142   : > { %3549 = vmatprep.subr.bf16.mxu1 %v7390_v54  ;;  %v1346_v30 = vld [vmem:[%s9645_s27 + $0x720] sm:$0xff]  ;;  %v7314_v55 = vcombine.high %v1216_v49, %v1220_v50  ;;  %v7313_v59 = vcombine.low %v1216_v49, %v1220_v50  ;;  %v1252_v21 = vld [vmem:[%s9645_s27 + $0x430] sm:$0xff]  ;;  %v7256_v50 = vcombine.high %v1159_v42, %v1163_v43 }
 0x143   : > { %v1350_v38 = vld [vmem:[%s9645_s27 + $0x740] sm:$0xff]  ;;  %v7438_v41 = vcombine.high %v1342_v29, %v1346_v30  ;;  %v7437_v44 = vcombine.low %v1342_v29, %v1346_v30  ;;  %v1260_v29 = vld [vmem:[%s9645_s27 + $0x470] sm:$0xff] }
 0x144   : > { %3761 = vmatpush1.bf16.msra.mxu0 %v7249_v57  ;;  %v1354_v39 = vld [vmem:[%s9645_s27 + $0x760] sm:$0xff]  ;;  %v1224_v57 = vld [vmem:[%s9645_s27 + $0x350] sm:$0xff] }
 0x145   : > { %3550 = vmatpush1.bf16.msra.mxu1 %v7389_v58  ;;  %3762 = vmatprep.subr.bf16.mxu0 %v7258_v61  ;;  %v1358_v45 = vld [vmem:[%s9645_s27 + $0x780] sm:$0xff]  ;;  %v7446_v48 = vcombine.high %v1350_v38, %v1354_v39  ;;  %v7445_v52 = vcombine.low %v1350_v38, %v1354_v39  ;;  %v1228_v58 = vld [vmem:[%s9645_s27 + $0x370] sm:$0xff]  ;;  %v1119_v61 = vld [vmem:[%s9645_s27 + $0x8] sm:$0xff] }
 0x146   : > { %3551 = vmatprep.subr.bf16.mxu1 %v7398_v62  ;;  %v1362_v46 = vld [vmem:[%s9645_s27 + $0x7a0] sm:$0xff]  ;;  %v1123_v62 = vld [vmem:[%s9645_s27 + $0x28] sm:$0xff]  ;;  %v7322_v63 = vcombine.high %v1224_v57, %v1228_v58  ;;  %v7321_v3 = vcombine.low %v1224_v57, %v1228_v58  ;;  %v1264_v38 = vld [vmem:[%s9645_s27 + $0x490] sm:$0xff] }
 0x147   : > { %v1366_v53 = vld [vmem:[%s9645_s27 + $0x7c0] sm:$0xff]  ;;  %v7454_v56 = vcombine.high %v1358_v45, %v1362_v46  ;;  %v7453_v60 = vcombine.low %v1358_v45, %v1362_v46  ;;  %v1268_v39 = vld [vmem:[%s9645_s27 + $0x4b0] sm:$0xff] }
 0x148   : > { %3763 = vmatpush1.bf16.msra.mxu0 %v7257_v1  ;;  %v1370_v54 = vld [vmem:[%s9645_s27 + $0x7e0] sm:$0xff]  ;;  %v1232_v1 = vld [vmem:[%s9645_s27 + $0x390] sm:$0xff] }
 0x149   : > { %3552 = vmatpush1.bf16.msra.mxu1 %v7397_v2  ;;  %3764 = vmatprep.subr.bf16.mxu0 %v7266_v6  ;;  %v7462_v0 = vcombine.high %v1366_v53, %v1370_v54  ;;  %v1236_v2 = vld [vmem:[%s9645_s27 + $0x3b0] sm:$0xff]  ;;  %v7461_v5 = vcombine.low %v1366_v53, %v1370_v54  ;;  %v1127_v6 = vld [vmem:[%s9645_s27 + $0x48] sm:$0xff]  ;;  %v8732_v30 = vld [vmem:[%s10695_s0 + $0x4] ss:$24 sps:$4 sm:$0xff]   ;;  %v7255_v54 = vcombine.low %v1159_v42, %v1163_v43 }
 0x14a   : > { %3553 = vmatprep.subr.bf16.mxu1 %v7406_v7  ;;  %v1131_v7 = vld [vmem:[%s9645_s27 + $0x68] sm:$0xff]  ;;  %v7330_v8 = vcombine.high %v1232_v1, %v1236_v2  ;;  %v7329_v13 = vcombine.low %v1232_v1, %v1236_v2  ;;  %v1272_v45 = vld [vmem:[%s9645_s27 + $0x4d0] sm:$0xff] }
 0x14b   : > { %v9806_v9 = vld [vmem:[%s10695_s0 + $0x8] ss:$24 sps:$4 sm:$0xff]   ;;  %v1276_v46 = vld [vmem:[%s9645_s27 + $0x4f0] sm:$0xff] }
 0x14c   : > { %3765 = vmatpush1.bf16.msra.mxu0 %v7265_v10  ;;  %v7216_v10 = vcombine.high %v1119_v61, %v1123_v62  ;;  %v7370_v49 = vcombine.high %v1272_v45, %v1276_v46  ;;  %v7369_v53 = vcombine.low %v1272_v45, %v1276_v46  ;;  %v1223_v43 = vld [vmem:[%s9645_s27 + $0x348] sm:$0xff]  ;;  %v1336_v45 = vld [vmem:[%s9645_s27 + $0x6d0] sm:$0xff] }
 0x14d   : > { %3554 = vmatpush1.bf16.msra.mxu1 %v7405_v11  ;;  %3766 = vmatprep.subr.bf16.mxu0 %v7274_v14  ;;  %v1240_v11 = vld [vmem:[%s9645_s27 + $0x3d0] sm:$0xff]  ;;  %v7215_v14 = vcombine.low %v1119_v61, %v1123_v62 }
 0x14e   : > { %3555 = vmatprep.subr.bf16.mxu1 %v7414_v16  ;;  %v1135_v16 = vld [vmem:[%s9645_s27 + $0x88] sm:$0xff]  ;;  %v7338_v18 = vcombine.high %v1240_v11, %v1244_v12  ;;  %v7337_v22 = vcombine.low %v1240_v11, %v1244_v12  ;;  %v1340_v46 = vld [vmem:[%s9645_s27 + $0x6f0] sm:$0xff] }
 0x150   : > { %3767 = vmatpush1.bf16.msra.mxu0 %v7273_v19  ;;  %v7224_v19 = vcombine.high %v1127_v6, %v1131_v7 }
 0x151   : > { %3556 = vmatpush1.bf16.msra.mxu1 %v7413_v20  ;;  %3768 = vmatprep.subr.bf16.mxu0 %v7282_v23  ;;  %v1248_v20 = vld [vmem:[%s9645_s27 + $0x410] sm:$0xff]  ;;  %v7223_v23 = vcombine.low %v1127_v6, %v1131_v7 }
 0x152   : > { %3557 = vmatprep.subr.bf16.mxu1 %v7422_v24  ;;  %v1143_v24 = vld [vmem:[%s9645_s27 + $0xc8] sm:$0xff]  ;;  %v7346_v26 = vcombine.high %v1248_v20, %v1252_v21 }
 0x154   : > { %3769 = vmatpush1.bf16.msra.mxu0 %v7281_v27  ;;  %v7232_v27 = vcombine.high %v1135_v16, %v1139_v17 }
 0x155   : > { %3558 = vmatpush1.bf16.msra.mxu1 %v7421_v28  ;;  %3770 = vmatprep.subr.bf16.mxu0 %v7290_v31  ;;  %v1256_v28 = vld [vmem:[%s9645_s27 + $0x450] sm:$0xff]  ;;  %v7345_v31 = vcombine.low %v1248_v20, %v1252_v21 }
 0x156   : > { %3559 = vmatprep.subr.bf16.mxu1 %v7430_v32  ;;  %v7231_v32 = vcombine.low %v1135_v16, %v1139_v17 }
 0x158   : > { %3771 = vmatpush1.bf16.msra.mxu0 %v7289_v35  ;;  %v7354_v35 = vcombine.high %v1256_v28, %v1260_v29 }
 0x159   : > { %3560 = vmatpush1.bf16.msra.mxu1 %v7429_v37  ;;  %3772 = vmatprep.subr.bf16.mxu0 %v7298_v40  ;;  %v7240_v37 = vcombine.high %v1143_v24, %v1147_v25  ;;  %v7353_v40 = vcombine.low %v1256_v28, %v1260_v29 }
 0x15a   : > { %3561 = vmatprep.subr.bf16.mxu1 %v7438_v41  ;;  %v7239_v41 = vcombine.low %v1143_v24, %v1147_v25 }
 0x15c   : > { %3773 = vmatpush1.bf16.msra.mxu0 %v7297_v36  ;;  %v7362_v36 = vcombine.high %v1264_v38, %v1268_v39 }
 0x15d   : > { %3562 = vmatpush1.bf16.msra.mxu1 %v7437_v44  ;;  %3774 = vmatprep.subr.bf16.mxu0 %v7306_v47  ;;  %v7248_v44 = vcombine.high %v1151_v33, %v1155_v34  ;;  %v7247_v47 = vcombine.low %v1151_v33, %v1155_v34  ;;  %v1215_v34 = vld [vmem:[%s9645_s27 + $0x308] sm:$0xff] }
 0x15e   : > { %3563 = vmatprep.subr.bf16.mxu1 %v7446_v48  ;;  %v1171_v48 = vld [vmem:[%s9645_s27 + $0x1a8] sm:$0xff] }
 0x160   : > { %3775 = vmatpush1.bf16.msra.mxu0 %v7305_v51  ;;  %v1280_v51 = vld [vmem:[%s9645_s27 + $0x510] sm:$0xff] }
 0x161   : > { %3564 = vmatpush1.bf16.msra.mxu1 %v7445_v52  ;;  %3776 = vmatprep.subr.bf16.mxu0 %v7314_v55  ;;  %v1284_v52 = vld [vmem:[%s9645_s27 + $0x530] sm:$0xff]  ;;  %v1175_v55 = vld [vmem:[%s9645_s27 + $0x1c8] sm:$0xff] }
 0x162   : > { %3565 = vmatprep.subr.bf16.mxu1 %v7454_v56  ;;  %v1179_v56 = vld [vmem:[%s9645_s27 + $0x1e8] sm:$0xff]  ;;  %v7378_v57 = vcombine.high %v1280_v51, %v1284_v52  ;;  %v7377_v61 = vcombine.low %v1280_v51, %v1284_v52  ;;  %v1344_v51 = vld [vmem:[%s9645_s27 + $0x710] sm:$0xff] }
 0x163   : > { %v7272_v2 = vcombine.high %v1175_v55, %v1179_v56  ;;  %v7271_v7 = vcombine.low %v1175_v55, %v1179_v56  ;;  %v1348_v52 = vld [vmem:[%s9645_s27 + $0x730] sm:$0xff]  ;;  %v1239_v56 = vld [vmem:[%s9645_s27 + $0x3c8] sm:$0xff] }
 0x164   : > { %3777 = vmatpush1.bf16.msra.mxu0 %v7313_v59  ;;  %v1288_v59 = vld [vmem:[%s9645_s27 + $0x550] sm:$0xff] }
 0x165   : > { %3566 = vmatpush1.bf16.msra.mxu1 %v7453_v60  ;;  %3778 = vmatprep.subr.bf16.mxu0 %v7322_v63  ;;  %v1292_v60 = vld [vmem:[%s9645_s27 + $0x570] sm:$0xff]  ;;  %v1183_v63 = vld [vmem:[%s9645_s27 + $0x208] sm:$0xff] }
 0x166   : > { %3567 = vmatprep.subr.bf16.mxu1 %v7462_v0  ;;  %v1187_v0 = vld [vmem:[%s9645_s27 + $0x228] sm:$0xff]  ;;  %v7386_v1 = vcombine.high %v1288_v59, %v1292_v60  ;;  %v7385_v6 = vcombine.low %v1288_v59, %v1292_v60  ;;  %v1352_v59 = vld [vmem:[%s9645_s27 + $0x750] sm:$0xff] }
 0x167   : > { %v7280_v12 = vcombine.high %v1183_v63, %v1187_v0  ;;  %v7279_v17 = vcombine.low %v1183_v63, %v1187_v0  ;;  %v1356_v60 = vld [vmem:[%s9645_s27 + $0x770] sm:$0xff]  ;;  %v1247_v0 = vld [vmem:[%s9645_s27 + $0x408] sm:$0xff] }
 0x168   : > { %3779 = vmatpush1.bf16.msra.mxu0 %v7321_v3  ;;  %v1296_v3 = vld [vmem:[%s9645_s27 + $0x590] sm:$0xff] }
 0x169   : > { %3568 = vmatpush1.bf16.msra.mxu1 %v7461_v5  ;;  %3780 = vmatprep.subr.bf16.mxu0 %v7330_v8  ;;  %v1300_v5 = vld [vmem:[%s9645_s27 + $0x5b0] sm:$0xff]  ;;  %v1191_v8 = vld [vmem:[%s9645_s27 + $0x248] sm:$0xff] }
 0x16a   : > { %3623 = vmatprep.subr.bf16.mxu1 %v7216_v10  ;;  %v1195_v10 = vld [vmem:[%s9645_s27 + $0x268] sm:$0xff]  ;;  %v7394_v11 = vcombine.high %v1296_v3, %v1300_v5  ;;  %v7393_v16 = vcombine.low %v1296_v3, %v1300_v5  ;;  %v1360_v3 = vld [vmem:[%s9645_s27 + $0x790] sm:$0xff] }
 0x16b   : > { %v7288_v21 = vcombine.high %v1191_v8, %v1195_v10  ;;  %v7287_v25 = vcombine.low %v1191_v8, %v1195_v10  ;;  %v1255_v10 = vld [vmem:[%s9645_s27 + $0x448] sm:$0xff] }
 0x16c   : > { %3570 = vmatmul.mubr.bf16.vlgmr.msra.gmra.mrb[0].mxu1 %v9806_v9  ;;  %3781 = vmatpush1.bf16.msra.mxu0 %v7329_v13  ;;  %v1304_v13 = vld [vmem:[%s9645_s27 + $0x5d0] sm:$0xff] }
 0x16d   : > { %3624 = vmatpush1.bf16.msra.mxu1 %v7215_v14  ;;  %3782 = vmatprep.subr.bf16.mxu0 %v7338_v18  ;;  %v1308_v14 = vld [vmem:[%s9645_s27 + $0x5f0] sm:$0xff]  ;;  %v1199_v18 = vld [vmem:[%s9645_s27 + $0x288] sm:$0xff] }
 0x16e   : > { %3625 = vmatprep.subr.bf16.mxu1 %v7224_v19  ;;  %3655 = vmatprep.mubr.bf16.mxu1 %v8732_v30  ;;  %v1203_v19 = vld [vmem:[%s9645_s27 + $0x2a8] sm:$0xff]  ;;  %v7402_v20 = vcombine.high %v1304_v13, %v1308_v14  ;;  %v7401_v24 = vcombine.low %v1304_v13, %v1308_v14  ;;  %v1320_v30 = vld [vmem:[%s9645_s27 + $0x650] sm:$0xff] }
 0x16f   : > { %v7296_v29 = vcombine.high %v1199_v18, %v1203_v19  ;;  %v7295_v33 = vcombine.low %v1199_v18, %v1203_v19  ;;  %v1368_v13 = vld [vmem:[%s9645_s27 + $0x7d0] sm:$0xff]  ;;  %v1263_v19 = vld [vmem:[%s9645_s27 + $0x488] sm:$0xff] }
 0x170   : > { %3783 = vmatpush1.bf16.msra.mxu0 %v7337_v22  ;;  %v1312_v22 = vld [vmem:[%s9645_s27 + $0x610] sm:$0xff] }
 0x171   : > { %3626 = vmatpush1.bf16.msra.mxu1 %v7223_v23  ;;  %3795 = vmatprep.subr.bf16.mxu0 %v7346_v26  ;;  %v1316_v23 = vld [vmem:[%s9645_s27 + $0x630] sm:$0xff]  ;;  %v1207_v26 = vld [vmem:[%s9645_s27 + $0x2c8] sm:$0xff] }
 0x172   : > { %3627 = vmatprep.subr.bf16.mxu1 %v7232_v27  ;;  %v1211_v27 = vld [vmem:[%s9645_s27 + $0x2e8] sm:$0xff]  ;;  %v7410_v28 = vcombine.high %v1312_v22, %v1316_v23 }
 0x173   : > { %3785 = vmatmul.mubr.bf16.vlgmr.msra.gmra.mrb[4].mxu0 %v9726_v4  ;;  %v7361_v4 = vcombine.low %v1264_v38, %v1268_v39  ;;  %v1328_v38 = vld [vmem:[%s9645_s27 + $0x690] sm:$0xff]  ;;  %v7303_v42 = vcombine.low %v1207_v26, %v1211_v27 }
 0x174   : > { %3796 = vmatpush1.bf16.msra.mxu0 %v7345_v31  ;;  %3827 = vmatprep.mubr.bf16.mxu0 %v9737_v15  ;;  %v1167_v15 = vld [vmem:[%s9645_s27 + $0x188] sm:$0xff]  ;;  %v1324_v31 = vld [vmem:[%s9645_s27 + $0x670] sm:$0xff] }
 0x175   : > { %3628 = vmatpush1.bf16.msra.mxu1 %v7231_v32  ;;  %3797 = vmatprep.subr.bf16.mxu0 %v7354_v35  ;;  %v7264_v58 = vcombine.high %v1167_v15, %v1171_v48  ;;  %v7263_v62 = vcombine.low %v1167_v15, %v1171_v48  ;;  %v7409_v32 = vcombine.low %v1312_v22, %v1316_v23  ;;  %v1219_v35 = vld [vmem:[%s9645_s27 + $0x328] sm:$0xff]  ;;  %v1332_v39 = vld [vmem:[%s9645_s27 + $0x6b0] sm:$0xff] }
 0x176   : > { %3629 = vmatprep.subr.bf16.mxu1 %v7240_v37  ;;  %v7418_v37 = vcombine.high %v1320_v30, %v1324_v31  ;;  %v7311_v15 = vcombine.low %v1215_v34, %v1219_v35  ;;  %v1231_v48 = vld [vmem:[%s9645_s27 + $0x388] sm:$0xff]  ;;  %v1376_v22 = vld [vmem:[%s9645_s27 + $0x810] sm:$0xff] }
 0x178   : > { %3798 = vmatpush1.bf16.msra.mxu0 %v7353_v40  ;;  %v7304_v40 = vcombine.high %v1207_v26, %v1211_v27 }
 0x179   : > { %3630 = vmatpush1.bf16.msra.mxu1 %v7239_v41  ;;  %3799 = vmatprep.subr.bf16.mxu0 %v7362_v36  ;;  %v7417_v41 = vcombine.low %v1320_v30, %v1324_v31  ;;  %v1227_v36 = vld [vmem:[%s9645_s27 + $0x368] sm:$0xff]  ;;  %v1384_v31 = vld [vmem:[%s9645_s27 + $0x850] sm:$0xff] }
 0x17a   : > { %3631 = vmatprep.subr.bf16.mxu1 %v7248_v44  ;;  %v7426_v44 = vcombine.high %v1328_v38, %v1332_v39  ;;  %v7319_v55 = vcombine.low %v1223_v43, %v1227_v36 }
 0x17c   : > { %3800 = vmatpush1.bf16.msra.mxu0 %v7361_v4  ;;  %v7312_v4 = vcombine.high %v1215_v34, %v1219_v35  ;;  %v8734_v34 = vld [vmem:[%s10695_s0 + $0xc] ss:$24 sps:$4 sm:$0xff]  }
 0x17d   : > { %3632 = vmatpush1.bf16.msra.mxu1 %v7247_v47  ;;  %3801 = vmatprep.subr.bf16.mxu0 %v7370_v49  ;;  %v7425_v47 = vcombine.low %v1328_v38, %v1332_v39  ;;  %v1235_v49 = vld [vmem:[%s9645_s27 + $0x3a8] sm:$0xff] }
 0x17e   : > { %3633 = vmatprep.subr.bf16.mxu1 %v7256_v50  ;;  %v7434_v50 = vcombine.high %v1336_v45, %v1340_v46  ;;  %v7327_v63 = vcombine.low %v1231_v48, %v1235_v49  ;;  %v1279_v38 = vld [vmem:[%s9645_s27 + $0x508] sm:$0xff] }
 0x17f   : > { %v1283_v39 = vld [vmem:[%s9645_s27 + $0x528] sm:$0xff] }
 0x180   : > { %3802 = vmatpush1.bf16.msra.mxu0 %v7369_v53  ;;  %v7320_v53 = vcombine.high %v1223_v43, %v1227_v36  ;;  %v1396_v43 = vld [vmem:[%s9645_s27 + $0x8b0] sm:$0xff] }
 0x181   : > { %3634 = vmatpush1.bf16.msra.mxu1 %v7255_v54  ;;  %3803 = vmatprep.subr.bf16.mxu0 %v7378_v57  ;;  %v7433_v54 = vcombine.low %v1336_v45, %v1340_v46  ;;  %v1243_v57 = vld [vmem:[%s9645_s27 + $0x3e8] sm:$0xff] }
 0x182   : > { %3635 = vmatprep.subr.bf16.mxu1 %v7264_v58  ;;  %v7442_v58 = vcombine.high %v1344_v51, %v1348_v52  ;;  %v7336_v5 = vcombine.high %v1239_v56, %v1243_v57  ;;  %v7335_v8 = vcombine.low %v1239_v56, %v1243_v57  ;;  %v1287_v46 = vld [vmem:[%s9645_s27 + $0x548] sm:$0xff]  ;;  %v1412_v56 = vld [vmem:[%s9645_s27 + $0x930] sm:$0xff] }
 0x184   : > { %3804 = vmatpush1.bf16.msra.mxu0 %v7377_v61  ;;  %v7328_v61 = vcombine.high %v1231_v48, %v1235_v49  ;;  %v1404_v48 = vld [vmem:[%s9645_s27 + $0x8f0] sm:$0xff] }
 0x185   : > { %3636 = vmatpush1.bf16.msra.mxu1 %v7263_v62  ;;  %3805 = vmatprep.subr.bf16.mxu0 %v7386_v1  ;;  %v7441_v62 = vcombine.low %v1344_v51, %v1348_v52  ;;  %v1251_v1 = vld [vmem:[%s9645_s27 + $0x428] sm:$0xff] }
 0x186   : > { %3637 = vmatprep.subr.bf16.mxu1 %v7272_v2  ;;  %v7450_v2 = vcombine.high %v1352_v59, %v1356_v60  ;;  %v7344_v14 = vcombine.high %v1247_v0, %v1251_v1  ;;  %v7343_v18 = vcombine.low %v1247_v0, %v1251_v1  ;;  %v1295_v51 = vld [vmem:[%s9645_s27 + $0x588] sm:$0xff]  ;;  %v1420_v0 = vld [vmem:[%s9645_s27 + $0x970] sm:$0xff] }
 0x187   : > { %v1299_v52 = vld [vmem:[%s9645_s27 + $0x5a8] sm:$0xff] }
 0x188   : > { %3806 = vmatpush1.bf16.msra.mxu0 %v7385_v6  ;;  %v1364_v6 = vld [vmem:[%s9645_s27 + $0x7b0] sm:$0xff] }
 0x189   : > { %3638 = vmatpush1.bf16.msra.mxu1 %v7271_v7  ;;  %3807 = vmatprep.subr.bf16.mxu0 %v7394_v11  ;;  %v7449_v7 = vcombine.low %v1352_v59, %v1356_v60  ;;  %v1259_v11 = vld [vmem:[%s9645_s27 + $0x468] sm:$0xff] }
 0x18a   : > { %3639 = vmatprep.subr.bf16.mxu1 %v7280_v12  ;;  %v7458_v12 = vcombine.high %v1360_v3, %v1364_v6  ;;  %v7352_v23 = vcombine.high %v1255_v10, %v1259_v11  ;;  %v7351_v27 = vcombine.low %v1255_v10, %v1259_v11  ;;  %v1303_v59 = vld [vmem:[%s9645_s27 + $0x5c8] sm:$0xff]  ;;  %v1428_v10 = vld [vmem:[%s9645_s27 + $0x9b0] sm:$0xff] }
 0x18b   : > { %v1307_v60 = vld [vmem:[%s9645_s27 + $0x5e8] sm:$0xff] }
 0x18c   : > { %3808 = vmatpush1.bf16.msra.mxu0 %v7393_v16  ;;  %v1372_v16 = vld [vmem:[%s9645_s27 + $0x7f0] sm:$0xff] }
 0x18d   : > { %3640 = vmatpush1.bf16.msra.mxu1 %v7279_v17  ;;  %3809 = vmatprep.subr.bf16.mxu0 %v7402_v20  ;;  %v7457_v17 = vcombine.low %v1360_v3, %v1364_v6  ;;  %v1267_v20 = vld [vmem:[%s9645_s27 + $0x4a8] sm:$0xff]  ;;  %v7465_v26 = vcombine.low %v1368_v13, %v1372_v16 }
 0x18e   : > { %3641 = vmatprep.subr.bf16.mxu1 %v7288_v21  ;;  %v7466_v21 = vcombine.high %v1368_v13, %v1372_v16  ;;  %v1311_v3 = vld [vmem:[%s9645_s27 + $0x608] sm:$0xff] }
 0x18f   : > { %v1319_v13 = vld [vmem:[%s9645_s27 + $0x648] sm:$0xff] }
 0x190   : > { %3810 = vmatpush1.bf16.msra.mxu0 %v7401_v24  ;;  %v1380_v24 = vld [vmem:[%s9645_s27 + $0x830] sm:$0xff] }
 0x191   : > { %3642 = vmatpush1.bf16.msra.mxu1 %v7287_v25  ;;  %3811 = vmatprep.subr.bf16.mxu0 %v7410_v28  ;;  %v8733_v25 = vld [vmem:[%s10695_s0] ss:$24 sps:$4 sm:$0xff]   ;;  %v1271_v28 = vld [vmem:[%s9645_s27 + $0x4c8] sm:$0xff]  ;;  %v7474_v30 = vcombine.high %v1376_v22, %v1380_v24  ;;  %v7473_v35 = vcombine.low %v1376_v22, %v1380_v24 }
 0x192   : > { %3643 = vmatprep.subr.bf16.mxu1 %v7296_v29  ;;  %v1275_v29 = vld [vmem:[%s9645_s27 + $0x4e8] sm:$0xff] }
 0x193   : > { %v7367_v45 = vcombine.low %v1271_v28, %v1275_v29  ;;  %v1327_v22 = vld [vmem:[%s9645_s27 + $0x688] sm:$0xff] }
 0x194   : > { %3812 = vmatpush1.bf16.msra.mxu0 %v7409_v32  ;;  %v7360_v32 = vcombine.high %v1263_v19, %v1267_v20 }
 0x195   : > { %3644 = vmatpush1.bf16.msra.mxu1 %v7295_v33  ;;  %3813 = vmatprep.subr.bf16.mxu0 %v7418_v37  ;;  %v1388_v33 = vld [vmem:[%s9645_s27 + $0x870] sm:$0xff]  ;;  %v7359_v37 = vcombine.low %v1263_v19, %v1267_v20 }
 0x196   : > { %3645 = vmatprep.subr.bf16.mxu1 %v7304_v40  ;;  %v7482_v40 = vcombine.high %v1384_v31, %v1388_v33  ;;  %v7481_v36 = vcombine.low %v1384_v31, %v1388_v33  ;;  %v1436_v19 = vld [vmem:[%s9645_s27 + $0x9f0] sm:$0xff]  ;;  %v1339_v31 = vld [vmem:[%s9645_s27 + $0x6e8] sm:$0xff] }
 0x197   : > { %v1448_v33 = vld [vmem:[%s9645_s27 + $0xa50] sm:$0xff] }
 0x198   : > { %3814 = vmatpush1.bf16.msra.mxu0 %v7417_v41  ;;  %v1392_v41 = vld [vmem:[%s9645_s27 + $0x890] sm:$0xff] }
 0x199   : > { %3646 = vmatpush1.bf16.msra.mxu1 %v7303_v42  ;;  %3815 = vmatprep.subr.bf16.mxu0 %v7426_v44  ;;  %v7368_v42 = vcombine.high %v1271_v28, %v1275_v29  ;;  %v9902_v44 = vld [vmem:[%s10695_s0 + $0x14] ss:$24 sps:$4 sm:$0xff]   ;;  %v7489_v49 = vcombine.low %v1392_v41, %v1396_v43 }
 0x19a   : > { %3647 = vmatprep.subr.bf16.mxu1 %v7312_v4  ;;  %v1291_v4 = vld [vmem:[%s9645_s27 + $0x568] sm:$0xff] }
 0x19c   : > { %3816 = vmatpush1.bf16.msra.mxu0 %v7425_v47  ;;  %v7490_v47 = vcombine.high %v1392_v41, %v1396_v43 }
 0x19d   : > { %3648 = vmatpush1.bf16.msra.mxu1 %v7311_v15  ;;  %3817 = vmatprep.subr.bf16.mxu0 %v7434_v50  ;;  %v7376_v15 = vcombine.high %v1279_v38, %v1283_v39  ;;  %v7375_v50 = vcombine.low %v1279_v38, %v1283_v39  ;;  %v1343_v39 = vld [vmem:[%s9645_s27 + $0x708] sm:$0xff] }
 0x19e   : > { %3649 = vmatprep.subr.bf16.mxu1 %v7320_v53 }
 0x1a0   : > { %3818 = vmatpush1.bf16.msra.mxu0 %v7433_v54  ;;  %v1408_v54 = vld [vmem:[%s9645_s27 + $0x910] sm:$0xff] }
 0x1a1   : > { %3650 = vmatpush1.bf16.msra.mxu1 %v7319_v55  ;;  %3819 = vmatprep.subr.bf16.mxu0 %v7442_v58  ;;  %v7384_v55 = vcombine.high %v1287_v46, %v1291_v4  ;;  %v7383_v58 = vcombine.low %v1287_v46, %v1291_v4  ;;  %v7505_v1 = vcombine.low %v1408_v54, %v1412_v56  ;;  %v1351_v4 = vld [vmem:[%s9645_s27 + $0x748] sm:$0xff] }
 0x1a2   : > { %3651 = vmatprep.subr.bf16.mxu1 %v7328_v61  ;;  %v7506_v61 = vcombine.high %v1408_v54, %v1412_v56 }
 0x1a4   : > { %3820 = vmatpush1.bf16.msra.mxu0 %v7441_v62  ;;  %v7392_v62 = vcombine.high %v1295_v51, %v1299_v52 }
 0x1a5   : > { %3652 = vmatpush1.bf16.msra.mxu1 %v7327_v63  ;;  %3821 = vmatprep.subr.bf16.mxu0 %v7450_v2  ;;  %v1416_v63 = vld [vmem:[%s9645_s27 + $0x950] sm:$0xff]  ;;  %v7391_v2 = vcombine.low %v1295_v51, %v1299_v52  ;;  %v1359_v52 = vld [vmem:[%s9645_s27 + $0x788] sm:$0xff] }
 0x1a6   : > { %3653 = vmatprep.subr.bf16.mxu1 %v7336_v5  ;;  %v1315_v5 = vld [vmem:[%s9645_s27 + $0x628] sm:$0xff]  ;;  %v7514_v6 = vcombine.high %v1416_v63, %v1420_v0  ;;  %v7513_v11 = vcombine.low %v1416_v63, %v1420_v0  ;;  %v1480_v63 = vld [vmem:[%s9645_s27 + $0xb50] sm:$0xff] }
 0x1a8   : > { %3822 = vmatpush1.bf16.msra.mxu0 %v7449_v7  ;;  %v1424_v7 = vld [vmem:[%s9645_s27 + $0x990] sm:$0xff] }
 0x1a9   : > { %3654 = vmatpush1.bf16.msra.mxu1 %v7335_v8  ;;  %3823 = vmatprep.subr.bf16.mxu0 %v7458_v12  ;;  %v7400_v8 = vcombine.high %v1303_v59, %v1307_v60  ;;  %v7399_v12 = vcombine.low %v1303_v59, %v1307_v60  ;;  %v7522_v16 = vcombine.high %v1424_v7, %v1428_v10  ;;  %v1367_v60 = vld [vmem:[%s9645_s27 + $0x7c8] sm:$0xff] }
 0x1aa   : > { %3666 = vmatprep.subr.bf16.mxu1 %v7344_v14  ;;  %v1323_v14 = vld [vmem:[%s9645_s27 + $0x668] sm:$0xff]  ;;  %v7521_v20 = vcombine.low %v1424_v7, %v1428_v10  ;;  %v1488_v7 = vld [vmem:[%s9645_s27 + $0xb90] sm:$0xff] }
 0x1ab   : > { %v7415_v29 = vcombine.low %v1319_v13, %v1323_v14  ;;  %v1375_v10 = vld [vmem:[%s9645_s27 + $0x808] sm:$0xff] }
 0x1ac   : > { %3656 = vmatmul.mubr.bf16.vlgmr.msra.gmra.mrb[4].mxu1 %v8733_v25  ;;  %3824 = vmatpush1.bf16.msra.mxu0 %v7457_v17  ;;  %v1432_v17 = vld [vmem:[%s9645_s27 + $0x9d0] sm:$0xff] }
 0x1ad   : > { %3667 = vmatpush1.bf16.msra.mxu1 %v7343_v18  ;;  %3825 = vmatprep.subr.bf16.mxu0 %v7466_v21  ;;  %v7408_v18 = vcombine.high %v1311_v3, %v1315_v5  ;;  %v7407_v21 = vcombine.low %v1311_v3, %v1315_v5  ;;  %v7530_v24 = vcombine.high %v1432_v17, %v1436_v19  ;;  %v1440_v25 = vld [vmem:[%s9645_s27 + $0xa10] sm:$0xff] }
 0x1ae   : > { %3668 = vmatprep.subr.bf16.mxu1 %v7352_v23  ;;  %3698 = vmatprep.mubr.bf16.mxu1 %v8734_v34  ;;  %v1331_v23 = vld [vmem:[%s9645_s27 + $0x6a8] sm:$0xff]  ;;  %v7529_v28 = vcombine.low %v1432_v17, %v1436_v19  ;;  %v1496_v17 = vld [vmem:[%s9645_s27 + $0xbd0] sm:$0xff] }
 0x1af   : > { %v7424_v34 = vcombine.high %v1327_v22, %v1331_v23  ;;  %v7423_v38 = vcombine.low %v1327_v22, %v1331_v23  ;;  %v1383_v19 = vld [vmem:[%s9645_s27 + $0x848] sm:$0xff] }
 0x1b0   : > { %3826 = vmatpush1.bf16.msra.mxu0 %v7465_v26  ;;  %v7416_v26 = vcombine.high %v1319_v13, %v1323_v14 }
 0x1b1   : > { %3669 = vmatpush1.bf16.msra.mxu1 %v7351_v27  ;;  %3838 = vmatprep.subr.bf16.mxu0 %v7474_v30  ;;  %v1444_v27 = vld [vmem:[%s9645_s27 + $0xa30] sm:$0xff]  ;;  %v1335_v30 = vld [vmem:[%s9645_s27 + $0x6c8] sm:$0xff] }
 0x1b2   : > { %3670 = vmatprep.subr.bf16.mxu1 %v7360_v32  ;;  %v7538_v32 = vcombine.high %v1440_v25, %v1444_v27  ;;  %v7432_v43 = vcombine.high %v1335_v30, %v1339_v31  ;;  %v7431_v46 = vcombine.low %v1335_v30, %v1339_v31  ;;  %v8126_v30 = vld [vmem:[%s9643_s25 + $0x4] ss:$24 sps:$4 sm:$0xff]  }
 0x1b3   : > { %3828 = vmatmul.mubr.bf16.vlgmr.msra.gmra.mrb[4].mxu0 %v9806_v9  ;;  %v1400_v9 = vld [vmem:[%s9645_s27 + $0x8d0] sm:$0xff] }
 0x1b4   : > { %3839 = vmatpush1.bf16.msra.mxu0 %v7473_v35  ;;  %3870 = vmatprep.mubr.bf16.mxu0 %v9902_v44  ;;  %v7498_v53 = vcombine.high %v1400_v9, %v1404_v48  ;;  %v7497_v57 = vcombine.low %v1400_v9, %v1404_v48  ;;  %v1452_v35 = vld [vmem:[%s9645_s27 + $0xa70] sm:$0xff] }
 0x1b5   : > { %3671 = vmatpush1.bf16.msra.mxu1 %v7359_v37  ;;  %3840 = vmatprep.subr.bf16.mxu0 %v7482_v40  ;;  %v7537_v37 = vcombine.low %v1440_v25, %v1444_v27  ;;  %v1347_v40 = vld [vmem:[%s9645_s27 + $0x728] sm:$0xff]  ;;  %v7546_v41 = vcombine.high %v1448_v33, %v1452_v35 }
 0x1b6   : > { %3672 = vmatprep.subr.bf16.mxu1 %v7368_v42  ;;  %v1456_v42 = vld [vmem:[%s9645_s27 + $0xa90] sm:$0xff]  ;;  %v7440_v48 = vcombine.high %v1343_v39, %v1347_v40  ;;  %v7439_v51 = vcombine.low %v1343_v39, %v1347_v40  ;;  %v1391_v25 = vld [vmem:[%s9645_s27 + $0x888] sm:$0xff] }
 0x1b7   : > { %v9962_v27 = vld [vmem:[%s10695_s0 + $0x8] ss:$24 sps:$4 sm:$0xff]  }
 0x1b8   : > { %3841 = vmatpush1.bf16.msra.mxu0 %v7481_v36  ;;  %v1460_v36 = vld [vmem:[%s9645_s27 + $0xab0] sm:$0xff]  ;;  %v1407_v39 = vld [vmem:[%s9645_s27 + $0x908] sm:$0xff] }
 0x1b9   : > { %3673 = vmatpush1.bf16.msra.mxu1 %v7367_v45  ;;  %3842 = vmatprep.subr.bf16.mxu0 %v7490_v47  ;;  %v7545_v45 = vcombine.low %v1448_v33, %v1452_v35  ;;  %v1355_v47 = vld [vmem:[%s9645_s27 + $0x768] sm:$0xff]  ;;  %v7554_v9 = vcombine.high %v1456_v42, %v1460_v36 }
 0x1ba   : > { %3674 = vmatprep.subr.bf16.mxu1 %v7376_v15  ;;  %v1464_v15 = vld [vmem:[%s9645_s27 + $0xad0] sm:$0xff]  ;;  %v7448_v56 = vcombine.high %v1351_v4, %v1355_v47  ;;  %v7447_v59 = vcombine.low %v1351_v4, %v1355_v47  ;;  %v1403_v33 = vld [vmem:[%s9645_s27 + $0x8e8] sm:$0xff]  ;;  %v8130_v4 = vld [vmem:[%s9643_s25 + $0x60] ss:$24 sps:$4 sm:$0xff]  }
 0x1bb   : > { %v1411_v40 = vld [vmem:[%s9645_s27 + $0x928] sm:$0xff] }
 0x1bc   : > { %3843 = vmatpush1.bf16.msra.mxu0 %v7489_v49  ;;  %v1468_v49 = vld [vmem:[%s9645_s27 + $0xaf0] sm:$0xff]  ;;  %v7503_v47 = vcombine.low %v1407_v39, %v1411_v40 }
 0x1bd   : > { %3675 = vmatpush1.bf16.msra.mxu1 %v7375_v50  ;;  %3844 = vmatprep.subr.bf16.mxu0 %v7498_v53  ;;  %v7553_v50 = vcombine.low %v1456_v42, %v1460_v36  ;;  %v1363_v53 = vld [vmem:[%s9645_s27 + $0x7a8] sm:$0xff]  ;;  %v7562_v54 = vcombine.high %v1464_v15, %v1468_v49  ;;  %v7504_v36 = vcombine.high %v1407_v39, %v1411_v40 }
 0x1be   : > { %3676 = vmatprep.subr.bf16.mxu1 %v7384_v55  ;;  %v1472_v55 = vld [vmem:[%s9645_s27 + $0xb10] sm:$0xff]  ;;  %v7456_v0 = vcombine.high %v1359_v52, %v1363_v53  ;;  %v7455_v3 = vcombine.low %v1359_v52, %v1363_v53  ;;  %v8138_v52 = vld [vmem:[%s9643_s25 + $0xc4] ss:$24 sps:$4 sm:$0xff]  }
 0x1bf   : > { %v8159_v39 = vld [vmem:[%s9643_s25 + $0x214] ss:$24 sps:$4 sm:$0xff]  }
 0x1c0   : > { %3845 = vmatpush1.bf16.msra.mxu0 %v7497_v57  ;;  %v1476_v57 = vld [vmem:[%s9645_s27 + $0xb30] sm:$0xff] }
 0x1c1   : > { %3677 = vmatpush1.bf16.msra.mxu1 %v7383_v58  ;;  %3846 = vmatprep.subr.bf16.mxu0 %v7506_v61  ;;  %v7561_v58 = vcombine.low %v1464_v15, %v1468_v49  ;;  %v1371_v61 = vld [vmem:[%s9645_s27 + $0x7e8] sm:$0xff] }
 0x1c2   : > { %3678 = vmatprep.subr.bf16.mxu1 %v7392_v62  ;;  %v7570_v62 = vcombine.high %v1472_v55, %v1476_v57  ;;  %v7463_v13 = vcombine.low %v1367_v60, %v1371_v61  ;;  %v1427_v49 = vld [vmem:[%s9645_s27 + $0x9a8] sm:$0xff] }
 0x1c4   : > { %3847 = vmatpush1.bf16.msra.mxu0 %v7505_v1  ;;  %v1484_v1 = vld [vmem:[%s9645_s27 + $0xb70] sm:$0xff] }
 0x1c5   : > { %3679 = vmatpush1.bf16.msra.mxu1 %v7391_v2  ;;  %3848 = vmatprep.subr.bf16.mxu0 %v7514_v6  ;;  %v7569_v2 = vcombine.low %v1472_v55, %v1476_v57  ;;  %v7578_v5 = vcombine.high %v1480_v63, %v1484_v1  ;;  %v7464_v6 = vcombine.high %v1367_v60, %v1371_v61  ;;  %v1435_v55 = vld [vmem:[%s9645_s27 + $0x9e8] sm:$0xff] }
 0x1c6   : > { %3680 = vmatprep.subr.bf16.mxu1 %v7400_v8  ;;  %v1492_v8 = vld [vmem:[%s9645_s27 + $0xbb0] sm:$0xff]  ;;  %v1439_v60 = vld [vmem:[%s9645_s27 + $0xa08] sm:$0xff] }
 0x1c7   : > { %v7586_v14 = vcombine.high %v1488_v7, %v1492_v8  ;;  %v1443_v61 = vld [vmem:[%s9645_s27 + $0xa28] sm:$0xff] }
 0x1c8   : > { %3849 = vmatpush1.bf16.msra.mxu0 %v7513_v11  ;;  %v1379_v11 = vld [vmem:[%s9645_s27 + $0x828] sm:$0xff] }
 0x1c9   : > { %3681 = vmatpush1.bf16.msra.mxu1 %v7399_v12  ;;  %3850 = vmatprep.subr.bf16.mxu0 %v7522_v16  ;;  %v7577_v12 = vcombine.low %v1480_v63, %v1484_v1  ;;  %v7472_v16 = vcombine.high %v1375_v10, %v1379_v11  ;;  %v7471_v22 = vcombine.low %v1375_v10, %v1379_v11  ;;  %v8147_v11 = vld [vmem:[%s9643_s25 + $0x154] ss:$24 sps:$4 sm:$0xff]  }
 0x1ca   : > { %3682 = vmatprep.subr.bf16.mxu1 %v7408_v18  ;;  %v1500_v18 = vld [vmem:[%s9645_s27 + $0xbf0] sm:$0xff]  ;;  %v7536_v1 = vcombine.high %v1439_v60, %v1443_v61  ;;  %v7535_v10 = vcombine.low %v1439_v60, %v1443_v61 }
 0x1cb   : > { %v7594_v23 = vcombine.high %v1496_v17, %v1500_v18  ;;  %v8171_v60 = vld [vmem:[%s9643_s25 + $0x2d4] ss:$24 sps:$4 sm:$0xff]  }
 0x1cc   : > { %3851 = vmatpush1.bf16.msra.mxu0 %v7521_v20  ;;  %v1387_v20 = vld [vmem:[%s9645_s27 + $0x868] sm:$0xff] }
 0x1cd   : > { %3683 = vmatpush1.bf16.msra.mxu1 %v7407_v21  ;;  %3852 = vmatprep.subr.bf16.mxu0 %v7530_v24  ;;  %v7585_v21 = vcombine.low %v1488_v7, %v1492_v8  ;;  %v7480_v24 = vcombine.high %v1383_v19, %v1387_v20  ;;  %v8142_v7 = vld [vmem:[%s9643_s25 + $0x120] ss:$24 sps:$4 sm:$0xff]  }
 0x1ce   : > { %3684 = vmatprep.subr.bf16.mxu1 %v7416_v26  ;;  %v1395_v26 = vld [vmem:[%s9645_s27 + $0x8a8] sm:$0xff] }
 0x1cf   : > { %v7488_v31 = vcombine.high %v1391_v25, %v1395_v26  ;;  %v7487_v35 = vcombine.low %v1391_v25, %v1395_v26  ;;  %v8153_v25 = vld [vmem:[%s9643_s25 + $0x1b4] ss:$24 sps:$4 sm:$0xff]  }
 0x1d0   : > { %3853 = vmatpush1.bf16.msra.mxu0 %v7529_v28  ;;  %v7593_v28 = vcombine.low %v1496_v17, %v1500_v18  ;;  %v8145_v17 = vld [vmem:[%s9643_s25 + $0x150] ss:$24 sps:$4 sm:$0xff]  }
 0x1d1   : > { %3685 = vmatpush1.bf16.msra.mxu1 %v7415_v29  ;;  %3854 = vmatprep.subr.bf16.mxu0 %v7538_v32  ;;  %v7479_v29 = vcombine.low %v1383_v19, %v1387_v20  ;;  %v1399_v32 = vld [vmem:[%s9645_s27 + $0x8c8] sm:$0xff]  ;;  %v8150_v19 = vld [vmem:[%s9643_s25 + $0x184] ss:$24 sps:$4 sm:$0xff]  }
 0x1d2   : > { %3686 = vmatprep.subr.bf16.mxu1 %v7424_v34  ;;  %v8124_v34 = vld [vmem:[%s9643_s25] ss:$24 sps:$4 sm:$0xff]   ;;  %v7495_v42 = vcombine.low %v1399_v32, %v1403_v33 }
 0x1d4   : > { %3855 = vmatpush1.bf16.msra.mxu0 %v7537_v37  ;;  %v8129_v37 = vld [vmem:[%s9643_s25 + $0x34] ss:$24 sps:$4 sm:$0xff]  }
 0x1d5   : > { %3687 = vmatpush1.bf16.msra.mxu1 %v7423_v38  ;;  %3856 = vmatprep.subr.bf16.mxu0 %v7546_v41  ;;  %v7496_v38 = vcombine.high %v1399_v32, %v1403_v33  ;;  %v8127_v41 = vld [vmem:[%s9643_s25 + $0x30] ss:$24 sps:$4 sm:$0xff]   ;;  %v8156_v32 = vld [vmem:[%s9643_s25 + $0x1e4] ss:$24 sps:$4 sm:$0xff]  }
 0x1d6   : > { %3688 = vmatprep.subr.bf16.mxu1 %v7432_v43  ;;  %v8132_v43 = vld [vmem:[%s9643_s25 + $0x64] ss:$24 sps:$4 sm:$0xff]  }
 0x1d8   : > { %3857 = vmatpush1.bf16.msra.mxu0 %v7545_v45  ;;  %v1415_v45 = vld [vmem:[%s9645_s27 + $0x948] sm:$0xff] }
 0x1d9   : > { %3689 = vmatpush1.bf16.msra.mxu1 %v7431_v46  ;;  %3858 = vmatprep.subr.bf16.mxu0 %v7554_v9  ;;  %v1419_v46 = vld [vmem:[%s9645_s27 + $0x968] sm:$0xff] }
 0x1da   : > { %3690 = vmatprep.subr.bf16.mxu1 %v7440_v48  ;;  %v8135_v9 = vld [vmem:[%s9643_s25 + $0x94] ss:$24 sps:$4 sm:$0xff]   ;;  %v7512_v15 = vcombine.high %v1415_v45, %v1419_v46 }
 0x1db   : > { %v1423_v48 = vld [vmem:[%s9645_s27 + $0x988] sm:$0xff] }
 0x1dc   : > { %3859 = vmatpush1.bf16.msra.mxu0 %v7553_v50  ;;  %v8133_v50 = vld [vmem:[%s9643_s25 + $0x90] ss:$24 sps:$4 sm:$0xff]   ;;  %v7520_v53 = vcombine.high %v1423_v48, %v1427_v49  ;;  %v7519_v57 = vcombine.low %v1423_v48, %v1427_v49  ;;  %v8165_v48 = vld [vmem:[%s9643_s25 + $0x274] ss:$24 sps:$4 sm:$0xff]  }
 0x1dd   : > { %3691 = vmatpush1.bf16.msra.mxu1 %v7439_v51  ;;  %3860 = vmatprep.subr.bf16.mxu0 %v7562_v54  ;;  %v7511_v51 = vcombine.low %v1415_v45, %v1419_v46  ;;  %v1431_v54 = vld [vmem:[%s9645_s27 + $0x9c8] sm:$0xff]  ;;  %v8162_v45 = vld [vmem:[%s9643_s25 + $0x244] ss:$24 sps:$4 sm:$0xff]  }
 0x1de   : > { %3692 = vmatprep.subr.bf16.mxu1 %v7448_v56  ;;  %v8136_v56 = vld [vmem:[%s9643_s25 + $0xc0] ss:$24 sps:$4 sm:$0xff]   ;;  %v7527_v63 = vcombine.low %v1431_v54, %v1435_v55 }
 0x1e0   : > { %3861 = vmatpush1.bf16.msra.mxu0 %v7561_v58  ;;  %v8141_v58 = vld [vmem:[%s9643_s25 + $0xf4] ss:$24 sps:$4 sm:$0xff]  }
 0x1e1   : > { %3693 = vmatpush1.bf16.msra.mxu1 %v7447_v59  ;;  %3862 = vmatprep.subr.bf16.mxu0 %v7570_v62  ;;  %v7528_v59 = vcombine.high %v1431_v54, %v1435_v55  ;;  %v8139_v62 = vld [vmem:[%s9643_s25 + $0xf0] ss:$24 sps:$4 sm:$0xff]   ;;  %v8168_v54 = vld [vmem:[%s9643_s25 + $0x2a4] ss:$24 sps:$4 sm:$0xff]  }
 0x1e2   : > { %3694 = vmatprep.subr.bf16.mxu1 %v7456_v0  ;;  %v8144_v0 = vld [vmem:[%s9643_s25 + $0x124] ss:$24 sps:$4 sm:$0xff]  }
 0x1e4   : > { %3863 = vmatpush1.bf16.msra.mxu0 %v7569_v2 }
 0x1e5   : > { %3695 = vmatpush1.bf16.msra.mxu1 %v7455_v3  ;;  %3864 = vmatprep.subr.bf16.mxu0 %v7578_v5  ;;  %v1447_v3 = vld [vmem:[%s9645_s27 + $0xa48] sm:$0xff] }
 0x1e6   : > { %3696 = vmatprep.subr.bf16.mxu1 %v7464_v6  ;;  %v1451_v5 = vld [vmem:[%s9645_s27 + $0xa68] sm:$0xff] }
 0x1e7   : > { %v7543_v18 = vcombine.low %v1447_v3, %v1451_v5 }
 0x1e8   : > { %3865 = vmatpush1.bf16.msra.mxu0 %v7577_v12 }
 0x1e9   : > { %3697 = vmatpush1.bf16.msra.mxu1 %v7463_v13  ;;  %3866 = vmatprep.subr.bf16.mxu0 %v7586_v14  ;;  %v7544_v13 = vcombine.high %v1447_v3, %v1451_v5  ;;  %v1455_v14 = vld [vmem:[%s9645_s27 + $0xa88] sm:$0xff]  ;;  %v8738_v5 = vld [vmem:[%s10695_s0 + $0x4] ss:$24 sps:$4 sm:$0xff]  }
 0x1ea   : > { %3709 = vmatprep.subr.bf16.mxu1 %v7472_v16  ;;  %v1459_v16 = vld [vmem:[%s9645_s27 + $0xaa8] sm:$0xff] }
 0x1eb   : > { %v7552_v20 = vcombine.high %v1455_v14, %v1459_v16 }
 0x1ec   : > { %3699 = vmatmul.mubr.bf16.vlgmr.msra.gmra.mrb[4].mxu1 %v9962_v27  ;;  %3867 = vmatpush1.bf16.msra.mxu0 %v7585_v21  ;;  %v1463_v21 = vld [vmem:[%s9645_s27 + $0xac8] sm:$0xff] }
 0x1ed   : > { %3710 = vmatpush1.bf16.msra.mxu1 %v7471_v22  ;;  %3868 = vmatprep.subr.bf16.mxu0 %v7594_v23  ;;  %v1467_v22 = vld [vmem:[%s9645_s27 + $0xae8] sm:$0xff]  ;;  %v8148_v23 = vld [vmem:[%s9643_s25 + $0x180] ss:$24 sps:$4 sm:$0xff]  }
 0x1ee   : > { %3711 = vmatprep.subr.bf16.mxu1 %v7480_v24  ;;  %3741 = vmatprep.mubr.bf16.mxu1 %v9902_v44  ;;  %v9976_v44 = vld [vmem:[%s10695_s0 + $0x10] ss:$24 sps:$4 sm:$0xff]   ;;  %v7551_v24 = vcombine.low %v1455_v14, %v1459_v16  ;;  %v7560_v26 = vcombine.high %v1463_v21, %v1467_v22  ;;  %v1153_v14 = vld [vmem:[%s9645_s27 + $0x118] sm:$0xff] }
 0x1ef   : > { %v1157_v16 = vld [vmem:[%s9645_s27 + $0x138] sm:$0xff] }
 0x1f0   : > { %3869 = vmatpush1.bf16.msra.mxu0 %v7593_v28  ;;  %v1471_v28 = vld [vmem:[%s9645_s27 + $0xb08] sm:$0xff] }
 0x1f1   : > { %3712 = vmatpush1.bf16.msra.mxu1 %v7479_v29  ;;  %6478 = vmatprep.subr.bf16.mxu0 %v8126_v30  ;;  %v1475_v29 = vld [vmem:[%s9645_s27 + $0xb28] sm:$0xff] }
 0x1f2   : > { %3713 = vmatprep.subr.bf16.mxu1 %v7488_v31  ;;  %v8151_v30 = vld [vmem:[%s9643_s25 + $0x1b0] ss:$24 sps:$4 sm:$0xff]   ;;  %v7559_v31 = vcombine.low %v1463_v21, %v1467_v22  ;;  %v7568_v33 = vcombine.high %v1471_v28, %v1475_v29  ;;  %v1165_v21 = vld [vmem:[%s9645_s27 + $0x178] sm:$0xff] }
 0x1f3   : > { %3871 = vmatmul.mubr.bf16.vlgmr.msra.gmra.mrb[4].mxu0 %v9976_v44 }
 0x1f4   : > { %6479 = vmatpush1.bf16.msra.mxu0 %v8124_v34  ;;  %v1479_v34 = vld [vmem:[%s9645_s27 + $0xb48] sm:$0xff] }
 0x1f5   : > { %3714 = vmatpush1.bf16.msra.mxu1 %v7487_v35  ;;  %6480 = vmatprep.subr.bf16.mxu0 %v8129_v37  ;;  %v1483_v35 = vld [vmem:[%s9645_s27 + $0xb68] sm:$0xff]  ;;  %v8154_v37 = vld [vmem:[%s9643_s25 + $0x1e0] ss:$24 sps:$4 sm:$0xff]  }
 0x1f6   : > { %3715 = vmatprep.subr.bf16.mxu1 %v7496_v38  ;;  %v7567_v38 = vcombine.low %v1471_v28, %v1475_v29  ;;  %v7576_v40 = vcombine.high %v1479_v34, %v1483_v35  ;;  %v1169_v28 = vld [vmem:[%s9645_s27 + $0x198] sm:$0xff] }
 0x1f7   : > { %v1173_v29 = vld [vmem:[%s9645_s27 + $0x1b8] sm:$0xff] }
 0x1f8   : > { %6481 = vmatpush1.bf16.msra.mxu0 %v8127_v41  ;;  %v1487_v41 = vld [vmem:[%s9645_s27 + $0xb88] sm:$0xff] }
 0x1f9   : > { %3716 = vmatpush1.bf16.msra.mxu1 %v7495_v42  ;;  %6482 = vmatprep.subr.bf16.mxu0 %v8132_v43  ;;  %v1491_v42 = vld [vmem:[%s9645_s27 + $0xba8] sm:$0xff] }
 0x1fa   : > { %3717 = vmatprep.subr.bf16.mxu1 %v7504_v36  ;;  %v8157_v43 = vld [vmem:[%s9643_s25 + $0x210] ss:$24 sps:$4 sm:$0xff]   ;;  %v7575_v36 = vcombine.low %v1479_v34, %v1483_v35  ;;  %v7584_v46 = vcombine.high %v1487_v41, %v1491_v42  ;;  %v1177_v35 = vld [vmem:[%s9645_s27 + $0x1d8] sm:$0xff] }
 0x1fc   : > { %6483 = vmatpush1.bf16.msra.mxu0 %v8130_v4  ;;  %v1495_v4 = vld [vmem:[%s9645_s27 + $0xbc8] sm:$0xff] }
 0x1fd   : > { %3718 = vmatpush1.bf16.msra.mxu1 %v7503_v47  ;;  %6484 = vmatprep.subr.bf16.mxu0 %v8135_v9  ;;  %v1499_v47 = vld [vmem:[%s9645_s27 + $0xbe8] sm:$0xff]  ;;  %v8160_v9 = vld [vmem:[%s9643_s25 + $0x240] ss:$24 sps:$4 sm:$0xff]  }
 0x1fe   : > { %3719 = vmatprep.subr.bf16.mxu1 %v7512_v15  ;;  %v7583_v15 = vcombine.low %v1487_v41, %v1491_v42  ;;  %v7592_v49 = vcombine.high %v1495_v4, %v1499_v47  ;;  %v7267_v42 = vcombine.low %v1169_v28, %v1173_v29 }
 0x200   : > { %6485 = vmatpush1.bf16.msra.mxu0 %v8133_v50  ;;  %v1121_v50 = vld [vmem:[%s9645_s27 + $0x18] sm:$0xff] }
 0x201   : > { %3720 = vmatpush1.bf16.msra.mxu1 %v7511_v51  ;;  %6486 = vmatprep.subr.bf16.mxu0 %v8138_v52  ;;  %v1125_v51 = vld [vmem:[%s9645_s27 + $0x38] sm:$0xff]  ;;  %v8163_v52 = vld [vmem:[%s9643_s25 + $0x270] ss:$24 sps:$4 sm:$0xff]  }
 0x202   : > { %3721 = vmatprep.subr.bf16.mxu1 %v7520_v53  ;;  %v7591_v53 = vcombine.low %v1495_v4, %v1499_v47  ;;  %v7220_v55 = vcombine.high %v1121_v50, %v1125_v51 }
 0x204   : > { %6487 = vmatpush1.bf16.msra.mxu0 %v8136_v56  ;;  %v1129_v56 = vld [vmem:[%s9645_s27 + $0x58] sm:$0xff] }
 0x205   : > { %3722 = vmatpush1.bf16.msra.mxu1 %v7519_v57  ;;  %6488 = vmatprep.subr.bf16.mxu0 %v8141_v58  ;;  %v1133_v57 = vld [vmem:[%s9645_s27 + $0x78] sm:$0xff] }
 0x206   : > { %3723 = vmatprep.subr.bf16.mxu1 %v7528_v59  ;;  %v9997_v2 = vpop.f32.mrb[0].mxu0  ;;  %v8166_v58 = vld [vmem:[%s9643_s25 + $0x2a0] ss:$24 sps:$4 sm:$0xff]   ;;  %v7219_v59 = vcombine.low %v1121_v50, %v1125_v51  ;;  %v7228_v61 = vcombine.high %v1129_v56, %v1133_v57 }
 0x207   : > { %v10001_v6 = vpop.f32.mrb[1].mxu0 }
 0x208   : > { %6489 = vmatpush1.bf16.msra.mxu0 %v8139_v62  ;;  %v10004_v8 = vpop.f32.mrb[2].mxu0  ;;  %v1137_v62 = vld [vmem:[%s9645_s27 + $0x98] sm:$0xff] }
 0x209   : > { %3724 = vmatpush1.bf16.msra.mxu1 %v7527_v63  ;;  %6490 = vmatprep.subr.bf16.mxu0 %v8144_v0  ;;  %v10007_v12 = vpop.f32.mrb[3].mxu0  ;;  %v1141_v63 = vld [vmem:[%s9645_s27 + $0xb8] sm:$0xff]  ;;  %v8169_v0 = vld [vmem:[%s9643_s25 + $0x2d0] ss:$24 sps:$4 sm:$0xff]  }
 0x20a   : > { %3725 = vmatprep.subr.bf16.mxu1 %v7536_v1  ;;  %v7227_v1 = vcombine.low %v1129_v56, %v1133_v57  ;;  %v7236_v3 = vcombine.high %v1137_v62, %v1141_v63  ;;  %v1197_v56 = vld [vmem:[%s9645_s27 + $0x278] sm:$0xff] }
 0x20c   : > { %6491 = vmatpush1.bf16.msra.mxu0 %v8142_v7  ;;  %v1145_v7 = vld [vmem:[%s9645_s27 + $0xd8] sm:$0xff] }
 0x20d   : > { %3726 = vmatpush1.bf16.msra.mxu1 %v7535_v10  ;;  %6492 = vmatprep.subr.bf16.mxu0 %v8147_v11  ;;  %v1149_v10 = vld [vmem:[%s9645_s27 + $0xf8] sm:$0xff]  ;;  %v1504_v11 = vlaneseq }
 0x20e   : > { %3727 = vmatprep.subr.bf16.mxu1 %v7544_v13  ;;  %v7244_v13 = vcombine.high %v1145_v7, %v1149_v10 }
 0x210   : > { %6493 = vmatpush1.bf16.msra.mxu0 %v8145_v17  ;;  %v10052_v17 = vshrl.u32 %v1504_v11, 7 }
 0x211   : > { %3728 = vmatpush1.bf16.msra.mxu1 %v7543_v18  ;;  %6494 = vmatprep.subr.bf16.mxu0 %v8150_v19  ;;  %v7243_v18 = vcombine.low %v1145_v7, %v1149_v10  ;;  %v7252_v19 = vcombine.high %v1153_v14, %v1157_v16 }
 0x212   : > { %3729 = vmatprep.subr.bf16.mxu1 %v7552_v20  ;;  %v1161_v20 = vld [vmem:[%s9645_s27 + $0x158] sm:$0xff]  ;;  %v1506_v22 = vsub.s32 0, %v10052_v17 }
 0x214   : > { %6495 = vmatpush1.bf16.msra.mxu0 %v8148_v23  ;;  %v7251_v23 = vcombine.low %v1153_v14, %v1157_v16 }
 0x215   : > { %3730 = vmatpush1.bf16.msra.mxu1 %v7551_v24  ;;  %6496 = vmatprep.subr.bf16.mxu0 %v8153_v25  ;;  %v10058_v24 = vld [vmem:[%s9638_s15] sm:$0xff]  ;;  %v1510_v25 = vsub.s32 1, %v10052_v17 }
 0x216   : > { %3731 = vmatprep.subr.bf16.mxu1 %v7560_v26  ;;  %v7260_v26 = vcombine.high %v1161_v20, %v1165_v21 }
 0x218   : > { %6497 = vmatpush1.bf16.msra.mxu0 %v8151_v30  ;;  %v1507_v30 = vrot.slane %v10058_v24, %v1506_v22 }
 0x219   : > { %3732 = vmatpush1.bf16.msra.mxu1 %v7559_v31  ;;  %6498 = vmatprep.subr.bf16.mxu0 %v8156_v32  ;;  %v1511_v31 = vrot.slane %v10058_v24, %v1510_v25  ;;  %v7259_v32 = vcombine.low %v1161_v20, %v1165_v21  ;;  %v1213_v20 = vld [vmem:[%s9645_s27 + $0x2f8] sm:$0xff] }
 0x21a   : > { %3733 = vmatprep.subr.bf16.mxu1 %v7568_v33  ;;  %v7268_v33 = vcombine.high %v1169_v28, %v1173_v29  ;;  %v1221_v28 = vld [vmem:[%s9645_s27 + $0x338] sm:$0xff] }
 0x21c   : > { %6499 = vmatpush1.bf16.msra.mxu0 %v8154_v37  ;;  %v1181_v37 = vld [vmem:[%s9645_s27 + $0x1f8] sm:$0xff] }
 0x21d   : > { %3734 = vmatpush1.bf16.msra.mxu1 %v7567_v38  ;;  %6500 = vmatprep.subr.bf16.mxu0 %v8159_v39  ;;  %v7275_v51 = vcombine.low %v1177_v35, %v1181_v37 }
 0x21e   : > { %3735 = vmatprep.subr.bf16.mxu1 %v7576_v40 }
 0x220   : > { %6501 = vmatpush1.bf16.msra.mxu0 %v8157_v43 }
 0x221   : > { %3736 = vmatpush1.bf16.msra.mxu1 %v7575_v36  ;;  %6502 = vmatprep.subr.bf16.mxu0 %v8162_v45 }
 0x222   : > { %3737 = vmatprep.subr.bf16.mxu1 %v7584_v46  ;;  %v7276_v46 = vcombine.high %v1177_v35, %v1181_v37 }
 0x224   : > { %6503 = vmatpush1.bf16.msra.mxu0 %v8160_v9  ;;  %v1185_v9 = vld [vmem:[%s9645_s27 + $0x218] sm:$0xff] }
 0x225   : > { %3738 = vmatpush1.bf16.msra.mxu1 %v7583_v15  ;;  %6504 = vmatprep.subr.bf16.mxu0 %v8165_v48  ;;  %v1189_v15 = vld [vmem:[%s9645_s27 + $0x238] sm:$0xff] }
 0x226   : > { %3739 = vmatprep.subr.bf16.mxu1 %v7592_v49 }
 0x228   : > { %6505 = vmatpush1.bf16.msra.mxu0 %v8163_v52 }
 0x229   : > { %3740 = vmatpush1.bf16.msra.mxu1 %v7591_v53  ;;  %6506 = vmatprep.subr.bf16.mxu0 %v8168_v54  ;;  %v7284_v53 = vcombine.high %v1185_v9, %v1189_v15 }
 0x22a   : > { %3881 = vmatprep.subr.bf16.mxu1 %v7220_v55  ;;  %v1193_v55 = vld [vmem:[%s9645_s27 + $0x258] sm:$0xff] }
 0x22c   : > { %3742 = vmatmul.mubr.bf16.vlgmr.msra.gmra.mrb[4].mxu1 %v9976_v44  ;;  %6507 = vmatpush1.bf16.msra.mxu0 %v8166_v58  ;;  %v7235_v44 = vcombine.low %v1137_v62, %v1141_v63  ;;  %v7292_v63 = vcombine.high %v1193_v55, %v1197_v56 }
 0x22d   : > { %3882 = vmatpush1.bf16.msra.mxu1 %v7219_v59  ;;  %6508 = vmatprep.subr.bf16.mxu0 %v8171_v60  ;;  %v7283_v60 = vcombine.low %v1185_v9, %v1189_v15 }
 0x22e   : > { %3883 = vmatprep.subr.bf16.mxu1 %v7228_v61  ;;  %3913 = vmatprep.mubr.bf16.mxu1 %v8738_v5  ;;  %v1205_v5 = vld [vmem:[%s9645_s27 + $0x2b8] sm:$0xff] }
 0x230   : > { %6509 = vmatpush1.bf16.msra.mxu0 %v8169_v0 }
 0x231   : > { %3884 = vmatpush1.bf16.msra.mxu1 %v7227_v1 }
 0x232   : > { %3885 = vmatprep.subr.bf16.mxu1 %v7236_v3  ;;  %v1201_v3 = vld [vmem:[%s9645_s27 + $0x298] sm:$0xff] }
 0x233   : > { %v7300_v16 = vcombine.high %v1201_v3, %v1205_v5  ;;  %v7299_v21 = vcombine.low %v1201_v3, %v1205_v5  ;;  %v8178_v3 = vld [vmem:[%s9643_s25 + $0x360] ss:$24 sps:$4 sm:$0xff]  }
 0x235   : > { %3886 = vmatpush1.bf16.msra.mxu1 %v7235_v44 }
 0x236   : > { %3887 = vmatprep.subr.bf16.mxu1 %v7244_v13  ;;  %v7291_v13 = vcombine.low %v1193_v55, %v1197_v56 }
 0x239   : > { %3888 = vmatpush1.bf16.msra.mxu1 %v7243_v18 }
 0x23a   : > { %3889 = vmatprep.subr.bf16.mxu1 %v7252_v19  ;;  %v1209_v19 = vld [vmem:[%s9645_s27 + $0x2d8] sm:$0xff] }
 0x23b   : > { %v7307_v29 = vcombine.low %v1209_v19, %v1213_v20 }
 0x23d   : > { %3890 = vmatpush1.bf16.msra.mxu1 %v7251_v23  ;;  %v7308_v23 = vcombine.high %v1209_v19, %v1213_v20  ;;  %v8189_v19 = vld [vmem:[%s9643_s25 + $0x3c4] ss:$24 sps:$4 sm:$0xff]  }
 0x23e   : > { %3891 = vmatprep.subr.bf16.mxu1 %v7260_v26  ;;  %v1217_v26 = vld [vmem:[%s9645_s27 + $0x318] sm:$0xff] }
 0x23f   : > { %v3571_v34 = vpop.f32.mrb[0].mxu1  ;;  %v7315_v35 = vcombine.low %v1217_v26, %v1221_v28 }
 0x240   : > { %v7987_v38 = vadd.f32 %v3571_v34, %v1507_v30  ;;  %v3573_v39 = vpop.f32.mrb[1].mxu1 }
 0x241   : > { %v7989_v40 = vadd.f32 %v3573_v39, %v1511_v31  ;;  %v3575_v41 = vpop.f32.mrb[2].mxu1  ;;  %3892 = vmatpush1.bf16.msra.mxu1 %v7259_v32  ;;  %v1229_v32 = vld [vmem:[%s9645_s27 + $0x378] sm:$0xff] }
 0x242   : > { %v7991_v43 = vadd.f32 %v3575_v41, %v1507_v30  ;;  %v10072_v36 = vadd.f32 %v7987_v38, %v9997_v2  ;;  %v3577_v45 = vpop.f32.mrb[3].mxu1  ;;  %3893 = vmatprep.subr.bf16.mxu1 %v7268_v33  ;;  %v7316_v30 = vcombine.high %v1217_v26, %v1221_v28  ;;  %v8187_v26 = vld [vmem:[%s9643_s25 + $0x3c0] ss:$24 sps:$4 sm:$0xff]  }
 0x243   : > { %v7993_v4 = vadd.f32 %v3577_v45, %v1511_v31  ;;  %v10075_v47 = vadd.f32 %v7989_v40, %v10001_v6  ;;  %v1225_v31 = vld [vmem:[%s9645_s27 + $0x358] sm:$0xff] }
 0x244   : > { %v4010_v48 = vmul.f32 %v10072_v36, %v10072_v36  ;;  %v10082_v49 = vadd.f32 %v7991_v43, %v10004_v8  ;;  %v7324_v39 = vcombine.high %v1225_v31, %v1229_v32 }
 0x245   : > { %v4011_v2 = vmul.f32 %v10075_v47, %v10075_v47  ;;  %v10087_v50 = vadd.f32 %v7993_v4, %v10007_v12  ;;  %3894 = vmatpush1.bf16.msra.mxu1 %v7267_v42  ;;  %v4074_v42 = vmul.f32 0.5, %v10072_v36  ;;  %v1237_v4 = vld [vmem:[%s9645_s27 + $0x3b8] sm:$0xff]  ;;  %v4075_v9 = vmul.f32 0.5, %v10075_v47 }
 0x246   : > { %v4026_v6 = vmul.f32 %v10072_v36, %v4010_v48  ;;  %v4018_v52 = vmul.f32 %v10082_v49, %v10082_v49  ;;  %3895 = vmatprep.subr.bf16.mxu1 %v7276_v46  ;;  %v4082_v43 = vmul.f32 0.5, %v10082_v49  ;;  %v1233_v46 = vld [vmem:[%s9645_s27 + $0x398] sm:$0xff] }
 0x247   : > { %v4027_v54 = vmul.f32 %v10075_v47, %v4011_v2  ;;  %v4019_v8 = vmul.f32 %v10087_v50, %v10087_v50  ;;  %v4083_v15 = vmul.f32 0.5, %v10087_v50  ;;  %v7323_v2 = vcombine.low %v1225_v31, %v1229_v32  ;;  %v1281_v31 = vld [vmem:[%s9645_s27 + $0x518] sm:$0xff] }
 0x248   : > { %v4042_v12 = vmul.f32 0.044715, %v4026_v6  ;;  %v4034_v57 = vmul.f32 %v10082_v49, %v4018_v52  ;;  %v7331_v56 = vcombine.low %v1233_v46, %v1237_v4  ;;  %v1285_v32 = vld [vmem:[%s9645_s27 + $0x538] sm:$0xff] }
 0x249   : > { %v4043_v58 = vmul.f32 0.044715, %v4027_v54  ;;  %v4035_v59 = vmul.f32 %v10087_v50, %v4019_v8  ;;  %3896 = vmatpush1.bf16.msra.mxu1 %v7275_v51  ;;  %v1245_v8 = vld [vmem:[%s9645_s27 + $0x3f8] sm:$0xff] }
 0x24a   : > { %v4058_v61 = vadd.f32 %v10072_v36, %v4042_v12  ;;  %v4050_v62 = vmul.f32 0.044715, %v4034_v57  ;;  %3897 = vmatprep.subr.bf16.mxu1 %v7284_v53  ;;  %v8174_v53 = vld [vmem:[%s9643_s25 + $0x304] ss:$24 sps:$4 sm:$0xff]   ;;  %v8177_v57 = vld [vmem:[%s9643_s25 + $0x334] ss:$24 sps:$4 sm:$0xff]  }
 0x24b   : > { %v4059_v0 = vadd.f32 %v10075_v47, %v4043_v58  ;;  %v4051_v1 = vmul.f32 0.044715, %v4035_v59  ;;  %v1241_v47 = vld [vmem:[%s9645_s27 + $0x3d8] sm:$0xff]  ;;  %6521 = vmatprep.subr.bf16.mxu0 %v8174_v53 }
 0x24c   : > { %v4090_v7 = vmul.f32 0.7978846, %v4058_v61  ;;  %v4066_v10 = vadd.f32 %v10082_v49, %v4050_v62  ;;  %v7332_v49 = vcombine.high %v1233_v46, %v1237_v4  ;;  %v7340_v12 = vcombine.high %v1241_v47, %v1245_v8  ;;  %v1249_v58 = vld [vmem:[%s9645_s27 + $0x418] sm:$0xff]  ;;  %v8205_v4 = vld [vmem:[%s9643_s25 + $0x450] ss:$24 sps:$4 sm:$0xff]  }
 0x24d   : > { %v4091_v11 = vmul.f32 0.7978846, %v4059_v0  ;;  %v4067_v44 = vadd.f32 %v10087_v50, %v4051_v1  ;;  %3898 = vmatpush1.bf16.msra.mxu1 %v7283_v60  ;;  %v8172_v50 = vld [vmem:[%s9643_s25 + $0x300] ss:$24 sps:$4 sm:$0xff]   ;;  %v8175_v60 = vld [vmem:[%s9643_s25 + $0x330] ss:$24 sps:$4 sm:$0xff]   ;;  %v7339_v61 = vcombine.low %v1241_v47, %v1245_v8 }
 0x24e   : > { %8700 = vtanh.f32 %v4090_v7  ;;  %v4098_v14 = vmul.f32 0.7978846, %v4066_v10  ;;  %3899 = vmatprep.subr.bf16.mxu1 %v7292_v63  ;;  %v1253_v59 = vld [vmem:[%s9645_s27 + $0x438] sm:$0xff]  ;;  %v8183_v10 = vld [vmem:[%s9643_s25 + $0x394] ss:$24 sps:$4 sm:$0xff]  }
 0x24f   : > { %8702 = vtanh.f32 %v4091_v11  ;;  %v4099_v18 = vmul.f32 0.7978846, %v4067_v44  ;;  %v7348_v62 = vcombine.high %v1249_v58, %v1253_v59  ;;  %v8180_v63 = vld [vmem:[%s9643_s25 + $0x364] ss:$24 sps:$4 sm:$0xff]   ;;  %v7347_v5 = vcombine.low %v1249_v58, %v1253_v59  ;;  %v8217_v8 = vld [vmem:[%s9643_s25 + $0x4b0] ss:$24 sps:$4 sm:$0xff]  }
 0x250   : > { %8704 = vtanh.f32 %v4098_v14  ;;  %v1257_v0 = vld [vmem:[%s9645_s27 + $0x458] sm:$0xff]  ;;  %v8181_v14 = vld [vmem:[%s9643_s25 + $0x390] ss:$24 sps:$4 sm:$0xff]  }
 0x251   : > { %8706 = vtanh.f32 %v4099_v18  ;;  %3900 = vmatpush1.bf16.msra.mxu1 %v7291_v13  ;;  %v1261_v1 = vld [vmem:[%s9645_s27 + $0x478] sm:$0xff]  ;;  %v8740_v18 = vld [vmem:[%s10695_s0 + $0xc] ss:$24 sps:$4 sm:$0xff]  }
 0x252   : > { %3901 = vmatprep.subr.bf16.mxu1 %v7300_v16  ;;  %v7356_v7 = vcombine.high %v1257_v0, %v1261_v1  ;;  %v1265_v11 = vld [vmem:[%s9645_s27 + $0x498] sm:$0xff]  ;;  %v7355_v16 = vcombine.low %v1257_v0, %v1261_v1  ;;  %v8229_v1 = vld [vmem:[%s9643_s25 + $0x510] ss:$24 sps:$4 sm:$0xff]  }
 0x253   : > { %v1269_v44 = vld [vmem:[%s9645_s27 + $0x4b8] sm:$0xff] }
 0x254   : > { %v8739_v13 = vld [vmem:[%s10695_s0] ss:$24 sps:$4 sm:$0xff]   ;;  %v7364_v20 = vcombine.high %v1265_v11, %v1269_v44  ;;  %v7363_v28 = vcombine.low %v1265_v11, %v1269_v44 }
 0x255   : > { %3902 = vmatpush1.bf16.msra.mxu1 %v7299_v21  ;;  %v1273_v21 = vld [vmem:[%s9645_s27 + $0x4d8] sm:$0xff] }
 0x256   : > { %3903 = vmatprep.subr.bf16.mxu1 %v7308_v23  ;;  %v1277_v23 = vld [vmem:[%s9645_s27 + $0x4f8] sm:$0xff] }
 0x257   : > { %v1301_v46 = vld [vmem:[%s9645_s27 + $0x5b8] sm:$0xff] }
 0x258   : > { %v8701_v33 = vpop.eup %8700  ;;  %v1313_v53 = vld [vmem:[%s9645_s27 + $0x618] sm:$0xff] }
 0x259   : > { %v8703_v34 = vpop.eup %8702  ;;  %3904 = vmatpush1.bf16.msra.mxu1 %v7307_v29  ;;  %v4122_v37 = vadd.f32 1.0, %v8701_v33  ;;  %v8195_v29 = vld [vmem:[%s9643_s25 + $0x3f4] ss:$24 sps:$4 sm:$0xff]   ;;  %v8193_v33 = vld [vmem:[%s9643_s25 + $0x3f0] ss:$24 sps:$4 sm:$0xff]   ;;  %v1317_v47 = vld [vmem:[%s9645_s27 + $0x638] sm:$0xff] }
 0x25a   : > { %v8705_v38 = vpop.eup %8704  ;;  %3905 = vmatprep.subr.bf16.mxu1 %v7316_v30  ;;  %v4123_v40 = vadd.f32 1.0, %v8703_v34  ;;  %v7372_v30 = vcombine.high %v1273_v21, %v1277_v23  ;;  %v7371_v34 = vcombine.low %v1273_v21, %v1277_v23  ;;  %v1325_v58 = vld [vmem:[%s9645_s27 + $0x678] sm:$0xff] }
 0x25b   : > { %v8707_v41 = vpop.eup %8706  ;;  %v4130_v45 = vadd.f32 1.0, %v8705_v38  ;;  %v4138_v51 = vmul.f32 %v4122_v37, %v4074_v42  ;;  %v7380_v37 = vcombine.high %v1281_v31, %v1285_v32  ;;  %v1289_v38 = vld [vmem:[%s9645_s27 + $0x558] sm:$0xff]  ;;  %v8207_v42 = vld [vmem:[%s9643_s25 + $0x454] ss:$24 sps:$4 sm:$0xff]  }
 0x25c   : > { %v4131_v48 = vadd.f32 1.0, %v8707_v41  ;;  %v4139_v36 = vmul.f32 %v4123_v40, %v4075_v9  ;;  %v8199_v40 = vld [vmem:[%s9643_s25 + $0x420] ss:$24 sps:$4 sm:$0xff]   ;;  %v7379_v41 = vcombine.low %v1281_v31, %v1285_v32  ;;  %v8249_v23 = vld [vmem:[%s9643_s25 + $0x5a4] ss:$24 sps:$4 sm:$0xff]  }
 0x25d   : > { %3906 = vmatpush1.bf16.msra.mxu1 %v7315_v35  ;;  %v4146_v6 = vmul.f32 %v4130_v45, %v4082_v43  ;;  %v8201_v35 = vld [vmem:[%s9643_s25 + $0x424] ss:$24 sps:$4 sm:$0xff]   ;;  %v8223_v59 = vld [vmem:[%s9643_s25 + $0x4e0] ss:$24 sps:$4 sm:$0xff]   ;;  %v8255_v32 = vld [vmem:[%s9643_s25 + $0x5d4] ss:$24 sps:$4 sm:$0xff]  }
 0x25e   : > { %3907 = vmatprep.subr.bf16.mxu1 %v7324_v39  ;;  %v4147_v52 = vmul.f32 %v4131_v48, %v4083_v15  ;;  %v1293_v39 = vld [vmem:[%s9645_s27 + $0x578] sm:$0xff] }
 0x25f   : > { %v10118_v54 = vpack.c.bf16 %v4146_v6, %v4138_v51  ;;  %v7388_v43 = vcombine.high %v1289_v38, %v1293_v39  ;;  %v1297_v45 = vld [vmem:[%s9645_s27 + $0x598] sm:$0xff]  ;;  %v7387_v9 = vcombine.low %v1289_v38, %v1293_v39 }
 0x260   : > { %v10122_v55 = vpack.c.bf16 %v4147_v52, %v4139_v36  ;;  %v7396_v15 = vcombine.high %v1297_v45, %v1301_v46  ;;  %v8213_v48 = vld [vmem:[%s9643_s25 + $0x484] ss:$24 sps:$4 sm:$0xff]   ;;  %v8211_v6 = vld [vmem:[%s9643_s25 + $0x480] ss:$24 sps:$4 sm:$0xff]   ;;  %v7395_v36 = vcombine.low %v1297_v45, %v1301_v46 }
 0x261   : > { %3908 = vmatpush1.bf16.msra.mxu1 %v7323_v2  ;;  %v1305_v2 = vld [vmem:[%s9645_s27 + $0x5d8] sm:$0xff] }
 0x262   : > { %6510 = vmatprep.mubr.bf16.mxu0 %v10122_v55  ;;  %3909 = vmatprep.subr.bf16.mxu1 %v7332_v49  ;;  %v1309_v51 = vld [vmem:[%s9645_s27 + $0x5f8] sm:$0xff]  ;;  %v8219_v49 = vld [vmem:[%s9643_s25 + $0x4b4] ss:$24 sps:$4 sm:$0xff]  }
 0x263   : > { %6511 = vmatmul.mubr.bf16.vlgmr.msra.gmra.mrb[8].mxu0 %v10118_v54  ;;  %v7404_v52 = vcombine.high %v1305_v2, %v1309_v51  ;;  %v1333_v0 = vld [vmem:[%s9645_s27 + $0x6b8] sm:$0xff] }
 0x264   : > { %6522 = vmatpush1.bf16.msra.mxu0 %v8172_v50  ;;  %v7403_v50 = vcombine.low %v1305_v2, %v1309_v51  ;;  %v1341_v11 = vld [vmem:[%s9645_s27 + $0x6f8] sm:$0xff] }
 0x265   : > { %3910 = vmatpush1.bf16.msra.mxu1 %v7331_v56  ;;  %6523 = vmatprep.subr.bf16.mxu0 %v8177_v57  ;;  %v7412_v56 = vcombine.high %v1313_v53, %v1317_v47  ;;  %v1321_v57 = vld [vmem:[%s9645_s27 + $0x658] sm:$0xff] }
 0x266   : > { %3911 = vmatprep.subr.bf16.mxu1 %v7340_v12  ;;  %v8225_v12 = vld [vmem:[%s9643_s25 + $0x4e4] ss:$24 sps:$4 sm:$0xff]   ;;  %v8235_v44 = vld [vmem:[%s9643_s25 + $0x540] ss:$24 sps:$4 sm:$0xff]  }
 0x267   : > { %v1377_v46 = vld [vmem:[%s9645_s27 + $0x818] sm:$0xff] }
 0x268   : > { %6524 = vmatpush1.bf16.msra.mxu0 %v8175_v60  ;;  %v7411_v60 = vcombine.low %v1313_v53, %v1317_v47  ;;  %v1389_v2 = vld [vmem:[%s9645_s27 + $0x878] sm:$0xff]  ;;  %v8741_v53 = vld [vmem:[%s10695_s0 + $0x14] ss:$24 sps:$4 sm:$0xff]  }
 0x269   : > { %3912 = vmatpush1.bf16.msra.mxu1 %v7339_v61  ;;  %6525 = vmatprep.subr.bf16.mxu0 %v8180_v63  ;;  %v7420_v61 = vcombine.high %v1321_v57, %v1325_v58  ;;  %v1329_v63 = vld [vmem:[%s9645_s27 + $0x698] sm:$0xff] }
 0x26a   : > { %3924 = vmatprep.subr.bf16.mxu1 %v7348_v62  ;;  %v8231_v62 = vld [vmem:[%s9643_s25 + $0x514] ss:$24 sps:$4 sm:$0xff]  }
 0x26c   : > { %3914 = vmatmul.mubr.bf16.vlgmr.msra.gmra.mrb[8].mxu1 %v8739_v13  ;;  %6526 = vmatpush1.bf16.msra.mxu0 %v8178_v3  ;;  %v7419_v3 = vcombine.low %v1321_v57, %v1325_v58  ;;  %v7427_v13 = vcombine.low %v1329_v63, %v1333_v0  ;;  %v1413_v57 = vld [vmem:[%s9645_s27 + $0x938] sm:$0xff] }
 0x26d   : > { %3925 = vmatpush1.bf16.msra.mxu1 %v7347_v5  ;;  %3956 = vmatprep.mubr.bf16.mxu1 %v8740_v18  ;;  %v7428_v5 = vcombine.high %v1329_v63, %v1333_v0  ;;  %v1345_v18 = vld [vmem:[%s9645_s27 + $0x718] sm:$0xff] }
 0x26e   : > { %3926 = vmatprep.subr.bf16.mxu1 %v7356_v7  ;;  %6527 = vmatprep.subr.bf16.mxu0 %v8183_v10  ;;  %v8237_v7 = vld [vmem:[%s9643_s25 + $0x544] ss:$24 sps:$4 sm:$0xff]  }
 0x26f   : > { %v1337_v10 = vld [vmem:[%s9645_s27 + $0x6d8] sm:$0xff] }
 0x270   : > { %6528 = vmatpush1.bf16.msra.mxu0 %v8181_v14  ;;  %v8243_v14 = vld [vmem:[%s9643_s25 + $0x574] ss:$24 sps:$4 sm:$0xff]   ;;  %v7435_v21 = vcombine.low %v1337_v10, %v1341_v11  ;;  %v1425_v0 = vld [vmem:[%s9645_s27 + $0x998] sm:$0xff] }
 0x271   : > { %3927 = vmatpush1.bf16.msra.mxu1 %v7355_v16  ;;  %6529 = vmatprep.subr.bf16.mxu0 %v8189_v19  ;;  %v7436_v16 = vcombine.high %v1337_v10, %v1341_v11  ;;  %v1349_v19 = vld [vmem:[%s9645_s27 + $0x738] sm:$0xff]  ;;  %v1522_v11 = vsub.s32 4, %v10052_v17 }
 0x272   : > { %3928 = vmatprep.subr.bf16.mxu1 %v7364_v20  ;;  %v8241_v20 = vld [vmem:[%s9643_s25 + $0x570] ss:$24 sps:$4 sm:$0xff]   ;;  %v7443_v31 = vcombine.low %v1345_v18, %v1349_v19  ;;  %v1437_v10 = vld [vmem:[%s9645_s27 + $0x9f8] sm:$0xff] }
 0x274   : > { %6530 = vmatpush1.bf16.msra.mxu0 %v8187_v26  ;;  %v7444_v26 = vcombine.high %v1345_v18, %v1349_v19  ;;  %v1445_v18 = vld [vmem:[%s9645_s27 + $0xa38] sm:$0xff]  ;;  %v1523_v19 = vrot.slane %v10058_v24, %v1522_v11 }
 0x275   : > { %3929 = vmatpush1.bf16.msra.mxu1 %v7363_v28  ;;  %6531 = vmatprep.subr.bf16.mxu0 %v8195_v29  ;;  %v1353_v28 = vld [vmem:[%s9645_s27 + $0x758] sm:$0xff] }
 0x276   : > { %3930 = vmatprep.subr.bf16.mxu1 %v7372_v30  ;;  %v1357_v29 = vld [vmem:[%s9645_s27 + $0x778] sm:$0xff] }
 0x277   : > { %v8247_v30 = vld [vmem:[%s9643_s25 + $0x5a0] ss:$24 sps:$4 sm:$0xff]   ;;  %v7451_v38 = vcombine.low %v1353_v28, %v1357_v29 }
 0x278   : > { %6532 = vmatpush1.bf16.msra.mxu0 %v8193_v33  ;;  %v7452_v33 = vcombine.high %v1353_v28, %v1357_v29  ;;  %v1449_v28 = vld [vmem:[%s9645_s27 + $0xa58] sm:$0xff] }
 0x279   : > { %3931 = vmatpush1.bf16.msra.mxu1 %v7371_v34  ;;  %6533 = vmatprep.subr.bf16.mxu0 %v8201_v35  ;;  %v1361_v34 = vld [vmem:[%s9645_s27 + $0x798] sm:$0xff] }
 0x27a   : > { %3932 = vmatprep.subr.bf16.mxu1 %v7380_v37  ;;  %v1365_v35 = vld [vmem:[%s9645_s27 + $0x7b8] sm:$0xff]  ;;  %v8253_v37 = vld [vmem:[%s9643_s25 + $0x5d0] ss:$24 sps:$4 sm:$0xff]  }
 0x27b   : > { %v7460_v39 = vcombine.high %v1361_v34, %v1365_v35  ;;  %v1453_v29 = vld [vmem:[%s9645_s27 + $0xa78] sm:$0xff] }
 0x27c   : > { %6534 = vmatpush1.bf16.msra.mxu0 %v8199_v40  ;;  %v8261_v40 = vld [vmem:[%s9643_s25 + $0x604] ss:$24 sps:$4 sm:$0xff]  }
 0x27d   : > { %3933 = vmatpush1.bf16.msra.mxu1 %v7379_v41  ;;  %6535 = vmatprep.subr.bf16.mxu0 %v8207_v42  ;;  %v1369_v41 = vld [vmem:[%s9645_s27 + $0x7d8] sm:$0xff] }
 0x27e   : > { %3934 = vmatprep.subr.bf16.mxu1 %v7388_v43  ;;  %v1373_v42 = vld [vmem:[%s9645_s27 + $0x7f8] sm:$0xff]  ;;  %v7459_v43 = vcombine.low %v1361_v34, %v1365_v35 }
 0x27f   : > { %v7468_v45 = vcombine.high %v1369_v41, %v1373_v42 }
 0x280   : > { %6536 = vmatpush1.bf16.msra.mxu0 %v8205_v4  ;;  %v1381_v4 = vld [vmem:[%s9645_s27 + $0x838] sm:$0xff] }
 0x281   : > { %3935 = vmatpush1.bf16.msra.mxu1 %v7387_v9  ;;  %6537 = vmatprep.subr.bf16.mxu0 %v8213_v48  ;;  %v7467_v9 = vcombine.low %v1369_v41, %v1373_v42  ;;  %v1385_v48 = vld [vmem:[%s9645_s27 + $0x858] sm:$0xff]  ;;  %v7475_v51 = vcombine.low %v1377_v46, %v1381_v4 }
 0x282   : > { %3936 = vmatprep.subr.bf16.mxu1 %v7396_v15  ;;  %v7476_v15 = vcombine.high %v1377_v46, %v1381_v4  ;;  %v1457_v42 = vld [vmem:[%s9645_s27 + $0xa98] sm:$0xff] }
 0x284   : > { %6538 = vmatpush1.bf16.msra.mxu0 %v8211_v6  ;;  %v7484_v6 = vcombine.high %v1385_v48, %v1389_v2 }
 0x285   : > { %3937 = vmatpush1.bf16.msra.mxu1 %v7395_v36  ;;  %6539 = vmatprep.subr.bf16.mxu0 %v8219_v49  ;;  %v1393_v36 = vld [vmem:[%s9645_s27 + $0x898] sm:$0xff]  ;;  %v7483_v49 = vcombine.low %v1385_v48, %v1389_v2 }
 0x286   : > { %3938 = vmatprep.subr.bf16.mxu1 %v7404_v52  ;;  %v1397_v52 = vld [vmem:[%s9645_s27 + $0x8b8] sm:$0xff] }
 0x287   : > { %v7492_v47 = vcombine.high %v1393_v36, %v1397_v52 }
 0x288   : > { %6540 = vmatpush1.bf16.msra.mxu0 %v8217_v8  ;;  %v1401_v8 = vld [vmem:[%s9645_s27 + $0x8d8] sm:$0xff] }
 0x289   : > { %3939 = vmatpush1.bf16.msra.mxu1 %v7403_v50  ;;  %6541 = vmatprep.subr.bf16.mxu0 %v8225_v12  ;;  %v1405_v50 = vld [vmem:[%s9645_s27 + $0x8f8] sm:$0xff] }
 0x28a   : > { %3940 = vmatprep.subr.bf16.mxu1 %v7412_v56  ;;  %v7491_v56 = vcombine.low %v1393_v36, %v1397_v52  ;;  %v7500_v12 = vcombine.high %v1401_v8, %v1405_v50  ;;  %v7499_v58 = vcombine.low %v1401_v8, %v1405_v50  ;;  %v1465_v52 = vld [vmem:[%s9645_s27 + $0xad8] sm:$0xff] }
 0x28c   : > { %6542 = vmatpush1.bf16.msra.mxu0 %v8223_v59 }
 0x28d   : > { %3941 = vmatpush1.bf16.msra.mxu1 %v7411_v60  ;;  %6543 = vmatprep.subr.bf16.mxu0 %v8231_v62  ;;  %v1417_v60 = vld [vmem:[%s9645_s27 + $0x958] sm:$0xff] }
 0x28e   : > { %3942 = vmatprep.subr.bf16.mxu1 %v7420_v61  ;;  %v1421_v61 = vld [vmem:[%s9645_s27 + $0x978] sm:$0xff] }
 0x28f   : > { %v7516_v63 = vcombine.high %v1417_v60, %v1421_v61 }
 0x290   : > { %6544 = vmatpush1.bf16.msra.mxu0 %v8229_v1  ;;  %v1429_v1 = vld [vmem:[%s9645_s27 + $0x9b8] sm:$0xff] }
 0x291   : > { %3943 = vmatpush1.bf16.msra.mxu1 %v7419_v3  ;;  %6545 = vmatprep.subr.bf16.mxu0 %v8237_v7  ;;  %v7515_v3 = vcombine.low %v1417_v60, %v1421_v61  ;;  %v1433_v7 = vld [vmem:[%s9645_s27 + $0x9d8] sm:$0xff] }
 0x292   : > { %3944 = vmatprep.subr.bf16.mxu1 %v7428_v5  ;;  %v7524_v5 = vcombine.high %v1425_v0, %v1429_v1  ;;  %v1473_v60 = vld [vmem:[%s9645_s27 + $0xb18] sm:$0xff] }
 0x293   : > { %v1477_v61 = vld [vmem:[%s9645_s27 + $0xb38] sm:$0xff] }
 0x294   : > { %6546 = vmatpush1.bf16.msra.mxu0 %v8235_v44  ;;  %v1526_v44 = vsub.s32 5, %v10052_v17 }
 0x295   : > { %3945 = vmatpush1.bf16.msra.mxu1 %v7427_v13  ;;  %6547 = vmatprep.subr.bf16.mxu0 %v8243_v14  ;;  %v7523_v13 = vcombine.low %v1425_v0, %v1429_v1  ;;  %v7532_v14 = vcombine.high %v1433_v7, %v1437_v10  ;;  %v7572_v1 = vcombine.high %v1473_v60, %v1477_v61 }
 0x296   : > { %3946 = vmatprep.subr.bf16.mxu1 %v7436_v16  ;;  %v1441_v16 = vld [vmem:[%s9645_s27 + $0xa18] sm:$0xff] }
 0x297   : > { %v7539_v34 = vcombine.low %v1441_v16, %v1445_v18 }
 0x298   : > { %6548 = vmatpush1.bf16.msra.mxu0 %v8241_v20  ;;  %v1527_v20 = vrot.slane %v10058_v24, %v1526_v44 }
 0x299   : > { %3947 = vmatpush1.bf16.msra.mxu1 %v7435_v21  ;;  %6549 = vmatprep.subr.bf16.mxu0 %v8249_v23  ;;  %v7531_v21 = vcombine.low %v1433_v7, %v1437_v10  ;;  %v7540_v23 = vcombine.high %v1441_v16, %v1445_v18  ;;  %v7571_v7 = vcombine.low %v1473_v60, %v1477_v61 }
 0x29a   : > { %3948 = vmatprep.subr.bf16.mxu1 %v7444_v26 }
 0x29c   : > { %6550 = vmatpush1.bf16.msra.mxu0 %v8247_v30 }
 0x29d   : > { %3949 = vmatpush1.bf16.msra.mxu1 %v7443_v31  ;;  %6551 = vmatprep.subr.bf16.mxu0 %v8255_v32 }
 0x29e   : > { %3950 = vmatprep.subr.bf16.mxu1 %v7452_v33 }
 0x2a0   : > { %6552 = vmatpush1.bf16.msra.mxu0 %v8253_v37 }
 0x2a1   : > { %3951 = vmatpush1.bf16.msra.mxu1 %v7451_v38  ;;  %6564 = vmatprep.subr.bf16.mxu0 %v8261_v40 }
 0x2a2   : > { %3952 = vmatprep.subr.bf16.mxu1 %v7460_v39  ;;  %v7548_v39 = vcombine.high %v1449_v28, %v1453_v29 }
 0x2a5   : > { %3953 = vmatpush1.bf16.msra.mxu1 %v7459_v43  ;;  %v1461_v43 = vld [vmem:[%s9645_s27 + $0xab8] sm:$0xff] }
 0x2a6   : > { %3954 = vmatprep.subr.bf16.mxu1 %v7468_v45 }
 0x2a9   : > { %3955 = vmatpush1.bf16.msra.mxu1 %v7467_v9 }
 0x2aa   : > { %3967 = vmatprep.subr.bf16.mxu1 %v7476_v15  ;;  %v7547_v15 = vcombine.low %v1449_v28, %v1453_v29 }
 0x2ac   : > { %3957 = vmatmul.mubr.bf16.vlgmr.msra.gmra.mrb[8].mxu1 %v9962_v27  ;;  %v1409_v27 = vld [vmem:[%s9645_s27 + $0x918] sm:$0xff] }
 0x2ad   : > { %3968 = vmatpush1.bf16.msra.mxu1 %v7475_v51  ;;  %3999 = vmatprep.mubr.bf16.mxu1 %v8741_v53  ;;  %v7508_v59 = vcombine.high %v1409_v27, %v1413_v57  ;;  %v7507_v62 = vcombine.low %v1409_v27, %v1413_v57  ;;  %v7556_v51 = vcombine.high %v1457_v42, %v1461_v43 }
 0x2ae   : > { %3969 = vmatprep.subr.bf16.mxu1 %v7484_v6 }
 0x2b1   : > { %3970 = vmatpush1.bf16.msra.mxu1 %v7483_v49  ;;  %v1469_v49 = vld [vmem:[%s9645_s27 + $0xaf8] sm:$0xff] }
 0x2b2   : > { %3971 = vmatprep.subr.bf16.mxu1 %v7492_v47  ;;  %v7564_v57 = vcombine.high %v1465_v52, %v1469_v49  ;;  %v7563_v0 = vcombine.low %v1465_v52, %v1469_v49  ;;  %v8204_v52 = vld [vmem:[%s9643_s25 + $0x9c] ss:$24 sps:$4 sm:$0xff]   ;;  %v8202_v49 = vld [vmem:[%s9643_s25 + $0x98] ss:$24 sps:$4 sm:$0xff]  }
 0x2b5   : > { %3972 = vmatpush1.bf16.msra.mxu1 %v7491_v56  ;;  %v7555_v56 = vcombine.low %v1457_v42, %v1461_v43 }
 0x2b6   : > { %3973 = vmatprep.subr.bf16.mxu1 %v7500_v12 }
 0x2b9   : > { %3974 = vmatpush1.bf16.msra.mxu1 %v7499_v58 }
 0x2ba   : > { %3975 = vmatprep.subr.bf16.mxu1 %v7508_v59 }
 0x2bd   : > { %3976 = vmatpush1.bf16.msra.mxu1 %v7507_v62 }
 0x2be   : > { %3977 = vmatprep.subr.bf16.mxu1 %v7516_v63 }
 0x2c1   : > { %3978 = vmatpush1.bf16.msra.mxu1 %v7515_v3  ;;  %v1481_v3 = vld [vmem:[%s9645_s27 + $0xb58] sm:$0xff] }
 0x2c2   : > { %3979 = vmatprep.subr.bf16.mxu1 %v7524_v5  ;;  %v1485_v5 = vld [vmem:[%s9645_s27 + $0xb78] sm:$0xff] }
 0x2c3   : > { %v7580_v10 = vcombine.high %v1481_v3, %v1485_v5 }
 0x2c5   : > { %3980 = vmatpush1.bf16.msra.mxu1 %v7523_v13  ;;  %v1489_v13 = vld [vmem:[%s9645_s27 + $0xb98] sm:$0xff] }
 0x2c6   : > { %3981 = vmatprep.subr.bf16.mxu1 %v7532_v14  ;;  %v3872_v26 = vpop.f32.mrb[4].mxu0  ;;  %v1493_v14 = vld [vmem:[%s9645_s27 + $0xbb8] sm:$0xff] }
 0x2c7   : > { %v7999_v30 = vadd.f32 %v3872_v26, %v1523_v19  ;;  %v3874_v31 = vpop.f32.mrb[5].mxu0 }
 0x2c8   : > { %v10228_v32 = vadd.f32 %v3874_v31, %v1527_v20  ;;  %v3876_v33 = vpop.f32.mrb[6].mxu0  ;;  %v1497_v31 = vld [vmem:[%s9645_s27 + $0xbd8] sm:$0xff] }
 0x2c9   : > { %3982 = vmatpush1.bf16.msra.mxu1 %v7531_v21  ;;  %v4014_v35 = vmul.f32 %v7999_v30, %v7999_v30  ;;  %v8001_v37 = vadd.f32 %v3876_v33, %v1523_v19  ;;  %v3878_v38 = vpop.f32.mrb[7].mxu0  ;;  %v4078_v16 = vmul.f32 0.5, %v7999_v30  ;;  %v7579_v19 = vcombine.low %v1481_v3, %v1485_v5  ;;  %v1501_v33 = vld [vmem:[%s9645_s27 + $0xbf8] sm:$0xff] }
 0x2ca   : > { %3983 = vmatprep.subr.bf16.mxu1 %v7540_v23  ;;  %v4015_v40 = vmul.f32 %v10228_v32, %v10228_v32  ;;  %v8002_v41 = vadd.f32 %v3878_v38, %v1527_v20  ;;  %v4079_v20 = vmul.f32 0.5, %v10228_v32  ;;  %v7588_v23 = vcombine.high %v1489_v13, %v1493_v14 }
 0x2cb   : > { %v4030_v45 = vmul.f32 %v7999_v30, %v4014_v35  ;;  %v4022_v46 = vmul.f32 %v8001_v37, %v8001_v37  ;;  %v4086_v26 = vmul.f32 0.5, %v8001_v37  ;;  %v7596_v43 = vcombine.high %v1497_v31, %v1501_v33 }
 0x2cc   : > { %v4031_v4 = vmul.f32 %v10228_v32, %v4015_v40  ;;  %v4023_v9 = vmul.f32 %v8002_v41, %v8002_v41 }
 0x2cd   : > { %3984 = vmatpush1.bf16.msra.mxu1 %v7539_v34  ;;  %v4046_v48 = vmul.f32 0.044715, %v4030_v45  ;;  %v4038_v2 = vmul.f32 %v8001_v37, %v4022_v46  ;;  %v4087_v34 = vmul.f32 0.5, %v8002_v41 }
 0x2ce   : > { %3985 = vmatprep.subr.bf16.mxu1 %v7548_v39  ;;  %v4047_v6 = vmul.f32 0.044715, %v4031_v4  ;;  %v4039_v36 = vmul.f32 %v8002_v41, %v4023_v9  ;;  %v8186_v9 = vld [vmem:[%s9643_s25 + $0xc] ss:$24 sps:$4 sm:$0xff]  }
 0x2cf   : > { %v4062_v53 = vadd.f32 %v7999_v30, %v4046_v48  ;;  %v4054_v47 = vmul.f32 0.044715, %v4038_v2  ;;  %v7587_v30 = vcombine.low %v1489_v13, %v1493_v14  ;;  %v8192_v48 = vld [vmem:[%s9643_s25 + $0x3c] ss:$24 sps:$4 sm:$0xff]   ;;  %v8742_v2 = vld [vmem:[%s10695_s0 + $0x10] ss:$24 sps:$4 sm:$0xff]  }
 0x2d0   : > { %v4063_v8 = vadd.f32 %v10228_v32, %v4047_v6  ;;  %v4055_v50 = vmul.f32 0.044715, %v4039_v36  ;;  %v8198_v6 = vld [vmem:[%s9643_s25 + $0x6c] ss:$24 sps:$4 sm:$0xff]   ;;  %v8196_v36 = vld [vmem:[%s9643_s25 + $0x68] ss:$24 sps:$4 sm:$0xff]  }
 0x2d1   : > { %3986 = vmatpush1.bf16.msra.mxu1 %v7547_v15  ;;  %v4094_v12 = vmul.f32 0.7978846, %v4062_v53  ;;  %v4070_v27 = vadd.f32 %v8001_v37, %v4054_v47  ;;  %v8184_v15 = vld [vmem:[%s9643_s25 + $0x8] ss:$24 sps:$4 sm:$0xff]   ;;  %v8210_v53 = vld [vmem:[%s9643_s25 + $0xcc] ss:$24 sps:$4 sm:$0xff]  }
 0x2d2   : > { %3987 = vmatprep.subr.bf16.mxu1 %v7556_v51  ;;  %v4095_v58 = vmul.f32 0.7978846, %v4063_v8  ;;  %v4071_v59 = vadd.f32 %v8002_v41, %v4055_v50  ;;  %v7595_v41 = vcombine.low %v1497_v31, %v1501_v33  ;;  %v8190_v51 = vld [vmem:[%s9643_s25 + $0x38] ss:$24 sps:$4 sm:$0xff]   ;;  %v1514_v47 = vsub.s32 2, %v10052_v17 }
 0x2d3   : > { %8708 = vtanh.f32 %v4094_v12  ;;  %v4102_v62 = vmul.f32 0.7978846, %v4070_v27  ;;  %v8208_v8 = vld [vmem:[%s9643_s25 + $0xc8] ss:$24 sps:$4 sm:$0xff]   ;;  %v1518_v50 = vsub.s32 3, %v10052_v17 }
 0x2d4   : > { %8710 = vtanh.f32 %v4095_v58  ;;  %v4103_v63 = vmul.f32 0.7978846, %v4071_v59  ;;  %v1515_v12 = vrot.slane %v10058_v24, %v1514_v47  ;;  %v8222_v58 = vld [vmem:[%s9643_s25 + $0x12c] ss:$24 sps:$4 sm:$0xff]  }
 0x2d5   : > { %3988 = vmatpush1.bf16.msra.mxu1 %v7555_v56  ;;  %8712 = vtanh.f32 %v4102_v62  ;;  %v8216_v56 = vld [vmem:[%s9643_s25 + $0xfc] ss:$24 sps:$4 sm:$0xff]   ;;  %v1519_v27 = vrot.slane %v10058_v24, %v1518_v50 }
 0x2d6   : > { %3989 = vmatprep.subr.bf16.mxu1 %v7564_v57  ;;  %8714 = vtanh.f32 %v4103_v63  ;;  %v8214_v57 = vld [vmem:[%s9643_s25 + $0xf8] ss:$24 sps:$4 sm:$0xff]  }
 0x2d9   : > { %3990 = vmatpush1.bf16.msra.mxu1 %v7563_v0  ;;  %v8220_v0 = vld [vmem:[%s9643_s25 + $0x128] ss:$24 sps:$4 sm:$0xff]  }
 0x2da   : > { %3991 = vmatprep.subr.bf16.mxu1 %v7572_v1 }
 0x2dd   : > { %v8709_v18 = vpop.eup %8708  ;;  %3992 = vmatpush1.bf16.msra.mxu1 %v7571_v7  ;;  %v8228_v7 = vld [vmem:[%s9643_s25 + $0x15c] ss:$24 sps:$4 sm:$0xff]  }
 0x2de   : > { %v8711_v21 = vpop.eup %8710  ;;  %3993 = vmatprep.subr.bf16.mxu1 %v7580_v10  ;;  %v4126_v28 = vadd.f32 1.0, %v8709_v18 }
 0x2df   : > { %v8713_v29 = vpop.eup %8712  ;;  %v4127_v35 = vadd.f32 1.0, %v8711_v21 }
 0x2e0   : > { %v8715_v38 = vpop.eup %8714  ;;  %v4134_v39 = vadd.f32 1.0, %v8713_v29  ;;  %v4142_v40 = vmul.f32 %v4126_v28, %v4078_v16 }
 0x2e1   : > { %3994 = vmatpush1.bf16.msra.mxu1 %v7579_v19  ;;  %v4135_v42 = vadd.f32 1.0, %v8715_v38  ;;  %v4143_v32 = vmul.f32 %v4127_v35, %v4079_v20  ;;  %v8226_v19 = vld [vmem:[%s9643_s25 + $0x158] ss:$24 sps:$4 sm:$0xff]   ;;  %v8232_v35 = vld [vmem:[%s9643_s25 + $0x188] ss:$24 sps:$4 sm:$0xff]  }
 0x2e2   : > { %3995 = vmatprep.subr.bf16.mxu1 %v7588_v23  ;;  %v4150_v45 = vmul.f32 %v4134_v39, %v4086_v26  ;;  %v8234_v23 = vld [vmem:[%s9643_s25 + $0x18c] ss:$24 sps:$4 sm:$0xff]  }
 0x2e3   : > { %v4151_v37 = vmul.f32 %v4135_v42, %v4087_v34 }
 0x2e4   : > { %v10247_v46 = vpack.c.bf16 %v4150_v45, %v4142_v40  ;;  %v8240_v40 = vld [vmem:[%s9643_s25 + $0x1bc] ss:$24 sps:$4 sm:$0xff]   ;;  %v8238_v45 = vld [vmem:[%s9643_s25 + $0x1b8] ss:$24 sps:$4 sm:$0xff]  }
 0x2e5   : > { %3996 = vmatpush1.bf16.msra.mxu1 %v7587_v30  ;;  %v10249_v4 = vpack.c.bf16 %v4151_v37, %v4143_v32  ;;  %v8246_v37 = vld [vmem:[%s9643_s25 + $0x1ec] ss:$24 sps:$4 sm:$0xff]  }
 0x2e6   : > { %3997 = vmatprep.subr.bf16.mxu1 %v7596_v43 }
 0x2e9   : > { %3998 = vmatpush1.bf16.msra.mxu1 %v7595_v41  ;;  %v8244_v41 = vld [vmem:[%s9643_s25 + $0x1e8] ss:$24 sps:$4 sm:$0xff]  }
 0x2ea   : > { %6650 = vmatprep.subr.bf16.mxu1 %v8186_v9  ;;  %v8252_v9 = vld [vmem:[%s9643_s25 + $0x21c] ss:$24 sps:$4 sm:$0xff]  }
 0x2ec   : > { %4000 = vmatmul.mubr.bf16.vlgmr.msra.gmra.mrb[8].mxu1 %v8742_v2  ;;  %v8258_v2 = vld [vmem:[%s9643_s25 + $0x24c] ss:$24 sps:$4 sm:$0xff]  }
 0x2ed   : > { %6651 = vmatpush1.bf16.msra.mxu1 %v8184_v15  ;;  %6682 = vmatprep.mubr.bf16.mxu1 %v10122_v55  ;;  %v8250_v15 = vld [vmem:[%s9643_s25 + $0x218] ss:$24 sps:$4 sm:$0xff]  }
 0x2ee   : > { %6652 = vmatprep.subr.bf16.mxu1 %v8192_v48 }
 0x2f1   : > { %6653 = vmatpush1.bf16.msra.mxu1 %v8190_v51 }
 0x2f2   : > { %6654 = vmatprep.subr.bf16.mxu1 %v8198_v6 }
 0x2f5   : > { %6655 = vmatpush1.bf16.msra.mxu1 %v8196_v36 }
 0x2f6   : > { %6656 = vmatprep.subr.bf16.mxu1 %v8204_v52 }
 0x2f9   : > { %6657 = vmatpush1.bf16.msra.mxu1 %v8202_v49 }
 0x2fa   : > { %6658 = vmatprep.subr.bf16.mxu1 %v8210_v53 }
 0x2fd   : > { %6659 = vmatpush1.bf16.msra.mxu1 %v8208_v8 }
 0x2fe   : > { %6660 = vmatprep.subr.bf16.mxu1 %v8216_v56  ;;  %v8256_v56 = vld [vmem:[%s9643_s25 + $0x248] ss:$24 sps:$4 sm:$0xff]  }
 0x2ff   : > { %v3743_v59 = vpop.f32.mrb[4].mxu1 }
 0x300   : > { %v7995_v60 = vadd.f32 %v3743_v59, %v1515_v12  ;;  %v3745_v61 = vpop.f32.mrb[5].mxu1  ;;  %v8264_v59 = vld [vmem:[%s9643_s25 + $0x27c] ss:$24 sps:$4 sm:$0xff]  }
 0x301   : > { %v10276_v62 = vadd.f32 %v3745_v61, %v1519_v27  ;;  %v3747_v63 = vpop.f32.mrb[6].mxu1  ;;  %6661 = vmatpush1.bf16.msra.mxu1 %v8214_v57 }
 0x302   : > { %v4012_v1 = vmul.f32 %v7995_v60, %v7995_v60  ;;  %v7997_v3 = vadd.f32 %v3747_v63, %v1515_v12  ;;  %v3749_v5 = vpop.f32.mrb[7].mxu1  ;;  %6662 = vmatprep.subr.bf16.mxu1 %v8222_v58  ;;  %v4076_v53 = vmul.f32 0.5, %v7995_v60 }
 0x303   : > { %v4013_v24 = vmul.f32 %v10276_v62, %v10276_v62  ;;  %v7998_v10 = vadd.f32 %v3749_v5, %v1519_v27  ;;  %v4077_v27 = vmul.f32 0.5, %v10276_v62 }
 0x304   : > { %v4028_v13 = vmul.f32 %v7995_v60, %v4012_v1  ;;  %v4020_v14 = vmul.f32 %v7997_v3, %v7997_v3  ;;  %v4084_v8 = vmul.f32 0.5, %v7997_v3 }
 0x305   : > { %v4029_v16 = vmul.f32 %v10276_v62, %v4013_v24  ;;  %v4021_v18 = vmul.f32 %v7998_v10, %v7998_v10  ;;  %6663 = vmatpush1.bf16.msra.mxu1 %v8220_v0  ;;  %v4085_v57 = vmul.f32 0.5, %v7998_v10  ;;  %v8270_v24 = vld [vmem:[%s9643_s25 + $0x2ac] ss:$24 sps:$4 sm:$0xff]  }
 0x306   : > { %v4044_v20 = vmul.f32 0.044715, %v4028_v13  ;;  %v4036_v21 = vmul.f32 %v7997_v3, %v4020_v14  ;;  %6664 = vmatprep.subr.bf16.mxu1 %v8228_v7  ;;  %v8259_v7 = vld [vmem:[%s9643_s25 + $0x600] ss:$24 sps:$4 sm:$0xff]   ;;  %v8265_v13 = vld [vmem:[%s9643_s25 + $0x630] ss:$24 sps:$4 sm:$0xff]  }
 0x307   : > { %v4045_v26 = vmul.f32 0.044715, %v4029_v16  ;;  %v4037_v28 = vmul.f32 %v7998_v10, %v4021_v18  ;;  %v8276_v14 = vld [vmem:[%s9643_s25 + $0x2dc] ss:$24 sps:$4 sm:$0xff]   ;;  %v8274_v18 = vld [vmem:[%s9643_s25 + $0x2d8] ss:$24 sps:$4 sm:$0xff]  }
 0x308   : > { %v4060_v29 = vadd.f32 %v7995_v60, %v4044_v20  ;;  %v4052_v31 = vmul.f32 0.044715, %v4036_v21  ;;  %v8262_v60 = vld [vmem:[%s9643_s25 + $0x278] ss:$24 sps:$4 sm:$0xff]   ;;  %v8273_v16 = vld [vmem:[%s9643_s25 + $0x664] ss:$24 sps:$4 sm:$0xff]  }
 0x309   : > { %v4061_v33 = vadd.f32 %v10276_v62, %v4045_v26  ;;  %v4053_v34 = vmul.f32 0.044715, %v4037_v28  ;;  %6665 = vmatpush1.bf16.msra.mxu1 %v8226_v19  ;;  %v8267_v62 = vld [vmem:[%s9643_s25 + $0x634] ss:$24 sps:$4 sm:$0xff]   ;;  %v8271_v19 = vld [vmem:[%s9643_s25 + $0x660] ss:$24 sps:$4 sm:$0xff]  }
 0x30a   : > { %v4092_v38 = vmul.f32 0.7978846, %v4060_v29  ;;  %v4068_v39 = vadd.f32 %v7997_v3, %v4052_v31  ;;  %6666 = vmatprep.subr.bf16.mxu1 %v8234_v23  ;;  %v8282_v20 = vld [vmem:[%s9643_s25 + $0x30c] ss:$24 sps:$4 sm:$0xff]   ;;  %v8280_v23 = vld [vmem:[%s9643_s25 + $0x308] ss:$24 sps:$4 sm:$0xff]  }
 0x30b   : > { %v4093_v30 = vmul.f32 0.7978846, %v4061_v33  ;;  %v4069_v42 = vadd.f32 %v7998_v10, %v4053_v34  ;;  %v8268_v10 = vld [vmem:[%s9643_s25 + $0x2a8] ss:$24 sps:$4 sm:$0xff]   ;;  %v8279_v21 = vld [vmem:[%s9643_s25 + $0x694] ss:$24 sps:$4 sm:$0xff]  }
 0x30c   : > { %8716 = vtanh.f32 %v4092_v38  ;;  %v4100_v32 = vmul.f32 0.7978846, %v4068_v39  ;;  %v8277_v26 = vld [vmem:[%s9643_s25 + $0x690] ss:$24 sps:$4 sm:$0xff]   ;;  %v8288_v28 = vld [vmem:[%s9643_s25 + $0x33c] ss:$24 sps:$4 sm:$0xff]  }
 0x30d   : > { %8718 = vtanh.f32 %v4093_v30  ;;  %v4101_v43 = vmul.f32 0.7978846, %v4069_v42  ;;  %6667 = vmatpush1.bf16.msra.mxu1 %v8232_v35  ;;  %v8285_v29 = vld [vmem:[%s9643_s25 + $0x6c4] ss:$24 sps:$4 sm:$0xff]   ;;  %v8286_v31 = vld [vmem:[%s9643_s25 + $0x338] ss:$24 sps:$4 sm:$0xff]  }
 0x30e   : > { %8720 = vtanh.f32 %v4100_v32  ;;  %6668 = vmatprep.subr.bf16.mxu1 %v8240_v40  ;;  %v8283_v33 = vld [vmem:[%s9643_s25 + $0x6c0] ss:$24 sps:$4 sm:$0xff]   ;;  %v8294_v34 = vld [vmem:[%s9643_s25 + $0x36c] ss:$24 sps:$4 sm:$0xff]   ;;  %v8289_v39 = vld [vmem:[%s9643_s25 + $0x6f0] ss:$24 sps:$4 sm:$0xff]  }
 0x30f   : > { %8722 = vtanh.f32 %v4101_v43  ;;  %v8291_v35 = vld [vmem:[%s9643_s25 + $0x6f4] ss:$24 sps:$4 sm:$0xff]   ;;  %v8292_v38 = vld [vmem:[%s9643_s25 + $0x368] ss:$24 sps:$4 sm:$0xff]   ;;  %v8297_v30 = vld [vmem:[%s9643_s25 + $0x724] ss:$24 sps:$4 sm:$0xff]  }
 0x310   : > { %v8300_v40 = vld [vmem:[%s9643_s25 + $0x39c] ss:$24 sps:$4 sm:$0xff]   ;;  %v8298_v42 = vld [vmem:[%s9643_s25 + $0x398] ss:$24 sps:$4 sm:$0xff]   ;;  %v8306_v43 = vld [vmem:[%s9643_s25 + $0x3cc] ss:$24 sps:$4 sm:$0xff]  }
 0x311   : > { %6669 = vmatpush1.bf16.msra.mxu1 %v8238_v45  ;;  %v8295_v32 = vld [vmem:[%s9643_s25 + $0x720] ss:$24 sps:$4 sm:$0xff]   ;;  %v8303_v45 = vld [vmem:[%s9643_s25 + $0x754] ss:$24 sps:$4 sm:$0xff]  }
 0x312   : > { %6670 = vmatprep.subr.bf16.mxu1 %v8246_v37  ;;  %v8304_v37 = vld [vmem:[%s9643_s25 + $0x3c8] ss:$24 sps:$4 sm:$0xff]  }
 0x315   : > { %6671 = vmatpush1.bf16.msra.mxu1 %v8244_v41  ;;  %v8301_v41 = vld [vmem:[%s9643_s25 + $0x750] ss:$24 sps:$4 sm:$0xff]  }
 0x316   : > { %v8717_v48 = vpop.eup %8716  ;;  %6672 = vmatprep.subr.bf16.mxu1 %v8252_v9  ;;  %v8312_v9 = vld [vmem:[%s9643_s25 + $0x3fc] ss:$24 sps:$4 sm:$0xff]  }
 0x317   : > { %v8719_v51 = vpop.eup %8718  ;;  %v4124_v6 = vadd.f32 1.0, %v8717_v48  ;;  %v8310_v48 = vld [vmem:[%s9643_s25 + $0x3f8] ss:$24 sps:$4 sm:$0xff]  }
 0x318   : > { %v8721_v36 = vpop.eup %8720  ;;  %v4125_v52 = vadd.f32 1.0, %v8719_v51  ;;  %v8318_v51 = vld [vmem:[%s9643_s25 + $0x42c] ss:$24 sps:$4 sm:$0xff]  }
 0x319   : > { %v8723_v49 = vpop.eup %8722  ;;  %6673 = vmatpush1.bf16.msra.mxu1 %v8250_v15  ;;  %v4132_v12 = vadd.f32 1.0, %v8721_v36  ;;  %v4140_v61 = vmul.f32 %v4124_v6, %v4076_v53  ;;  %v8309_v15 = vld [vmem:[%s9643_s25 + $0x784] ss:$24 sps:$4 sm:$0xff]   ;;  %v8315_v6 = vld [vmem:[%s9643_s25 + $0x7b4] ss:$24 sps:$4 sm:$0xff]  }
 0x31a   : > { %6674 = vmatprep.subr.bf16.mxu1 %v8258_v2  ;;  %v4133_v58 = vadd.f32 1.0, %v8723_v49  ;;  %v4141_v0 = vmul.f32 %v4125_v52, %v4077_v27  ;;  %v8307_v2 = vld [vmem:[%s9643_s25 + $0x780] ss:$24 sps:$4 sm:$0xff]   ;;  %v8313_v52 = vld [vmem:[%s9643_s25 + $0x7b0] ss:$24 sps:$4 sm:$0xff]  }
 0x31b   : > { %v4148_v63 = vmul.f32 %v4132_v12, %v4084_v8  ;;  %v8316_v36 = vld [vmem:[%s9643_s25 + $0x428] ss:$24 sps:$4 sm:$0xff]   ;;  %v8324_v49 = vld [vmem:[%s9643_s25 + $0x45c] ss:$24 sps:$4 sm:$0xff]   ;;  %v8322_v8 = vld [vmem:[%s9643_s25 + $0x458] ss:$24 sps:$4 sm:$0xff]  }
 0x31c   : > { %v4149_v1 = vmul.f32 %v4133_v58, %v4085_v57  ;;  %v8321_v53 = vld [vmem:[%s9643_s25 + $0x7e4] ss:$24 sps:$4 sm:$0xff]   ;;  %v8327_v27 = vld [vmem:[%s9643_s25 + $0x814] ss:$24 sps:$4 sm:$0xff]   ;;  %v8328_v57 = vld [vmem:[%s9643_s25 + $0x488] ss:$24 sps:$4 sm:$0xff]  }
 0x31d   : > { %6675 = vmatpush1.bf16.msra.mxu1 %v8256_v56  ;;  %v10298_v3 = vpack.c.bf16 %v4148_v63, %v4140_v61  ;;  %v8319_v56 = vld [vmem:[%s9643_s25 + $0x7e0] ss:$24 sps:$4 sm:$0xff]   ;;  %v8330_v12 = vld [vmem:[%s9643_s25 + $0x48c] ss:$24 sps:$4 sm:$0xff]   ;;  %v8325_v58 = vld [vmem:[%s9643_s25 + $0x810] ss:$24 sps:$4 sm:$0xff]  }
 0x31e   : > { %v10300_v5 = vpack.c.bf16 %v4149_v1, %v4141_v0  ;;  %6676 = vmatprep.subr.bf16.mxu1 %v8264_v59  ;;  %v8336_v59 = vld [vmem:[%s9643_s25 + $0x4bc] ss:$24 sps:$4 sm:$0xff]   ;;  %v8334_v63 = vld [vmem:[%s9643_s25 + $0x4b8] ss:$24 sps:$4 sm:$0xff]   ;;  %v8342_v1 = vld [vmem:[%s9643_s25 + $0x4ec] ss:$24 sps:$4 sm:$0xff]  }
 0x31f   : > { %v8333_v61 = vld [vmem:[%s9643_s25 + $0x844] ss:$24 sps:$4 sm:$0xff]   ;;  %v8331_v0 = vld [vmem:[%s9643_s25 + $0x840] ss:$24 sps:$4 sm:$0xff]  }
 0x320   : > { %6553 = vmatprep.mubr.bf16.mxu0 %v10300_v5 }
 0x321   : > { %6554 = vmatmul.mubr.bf16.vlgmr.msra.gmra.mrb[8].mxu0 %v10298_v3  ;;  %6677 = vmatpush1.bf16.msra.mxu1 %v8262_v60  ;;  %v8339_v60 = vld [vmem:[%s9643_s25 + $0x874] ss:$24 sps:$4 sm:$0xff]  }
 0x322   : > { %6565 = vmatpush1.bf16.msra.mxu0 %v8259_v7  ;;  %6596 = vmatprep.mubr.bf16.mxu0 %v10249_v4  ;;  %v8340_v7 = vld [vmem:[%s9643_s25 + $0x4e8] ss:$24 sps:$4 sm:$0xff]  }
 0x323   : > { %6566 = vmatprep.subr.bf16.mxu0 %v8267_v62  ;;  %6678 = vmatprep.subr.bf16.mxu1 %v8270_v24  ;;  %v8337_v62 = vld [vmem:[%s9643_s25 + $0x870] ss:$24 sps:$4 sm:$0xff]   ;;  %v8348_v24 = vld [vmem:[%s9643_s25 + $0x51c] ss:$24 sps:$4 sm:$0xff]  }
 0x325   : > { %6679 = vmatpush1.bf16.msra.mxu1 %v8268_v10  ;;  %v8345_v10 = vld [vmem:[%s9643_s25 + $0x8a4] ss:$24 sps:$4 sm:$0xff]  }
 0x326   : > { %6567 = vmatpush1.bf16.msra.mxu0 %v8265_v13  ;;  %6680 = vmatprep.subr.bf16.mxu1 %v8276_v14  ;;  %v8346_v13 = vld [vmem:[%s9643_s25 + $0x518] ss:$24 sps:$4 sm:$0xff]  }
 0x327   : > { %6568 = vmatprep.subr.bf16.mxu0 %v8273_v16  ;;  %v8343_v14 = vld [vmem:[%s9643_s25 + $0x8a0] ss:$24 sps:$4 sm:$0xff]   ;;  %v8354_v16 = vld [vmem:[%s9643_s25 + $0x54c] ss:$24 sps:$4 sm:$0xff]  }
 0x329   : > { %6681 = vmatpush1.bf16.msra.mxu1 %v8274_v18  ;;  %v8351_v18 = vld [vmem:[%s9643_s25 + $0x8d4] ss:$24 sps:$4 sm:$0xff]  }
 0x32a   : > { %6569 = vmatpush1.bf16.msra.mxu0 %v8271_v19  ;;  %6693 = vmatprep.subr.bf16.mxu1 %v8282_v20  ;;  %v8352_v19 = vld [vmem:[%s9643_s25 + $0x548] ss:$24 sps:$4 sm:$0xff]  }
 0x32b   : > { %6570 = vmatprep.subr.bf16.mxu0 %v8279_v21  ;;  %v8349_v20 = vld [vmem:[%s9643_s25 + $0x8d0] ss:$24 sps:$4 sm:$0xff]   ;;  %v8357_v21 = vld [vmem:[%s9643_s25 + $0x57c] ss:$24 sps:$4 sm:$0xff]  }
 0x32c   : > { %6683 = vmatmul.mubr.bf16.vlgmr.msra.gmra.mrb[12].mxu1 %v10118_v54 }
 0x32d   : > { %6694 = vmatpush1.bf16.msra.mxu1 %v8280_v23  ;;  %6725 = vmatprep.mubr.bf16.mxu1 %v10300_v5  ;;  %v8405_v23 = vld [vmem:[%s9643_s25 + $0x904] ss:$24 sps:$4 sm:$0xff]  }
 0x32e   : > { %6571 = vmatpush1.bf16.msra.mxu0 %v8277_v26  ;;  %6695 = vmatprep.subr.bf16.mxu1 %v8288_v28  ;;  %v8355_v26 = vld [vmem:[%s9643_s25 + $0x578] ss:$24 sps:$4 sm:$0xff]   ;;  %v8360_v28 = vld [vmem:[%s9643_s25 + $0x5ac] ss:$24 sps:$4 sm:$0xff]  }
 0x32f   : > { %6572 = vmatprep.subr.bf16.mxu0 %v8285_v29  ;;  %v8403_v29 = vld [vmem:[%s9643_s25 + $0x900] ss:$24 sps:$4 sm:$0xff]  }
 0x331   : > { %6696 = vmatpush1.bf16.msra.mxu1 %v8286_v31  ;;  %v8411_v31 = vld [vmem:[%s9643_s25 + $0x934] ss:$24 sps:$4 sm:$0xff]  }
 0x332   : > { %6573 = vmatpush1.bf16.msra.mxu0 %v8283_v33  ;;  %6697 = vmatprep.subr.bf16.mxu1 %v8294_v34  ;;  %v8358_v33 = vld [vmem:[%s9643_s25 + $0x5a8] ss:$24 sps:$4 sm:$0xff]   ;;  %v8363_v34 = vld [vmem:[%s9643_s25 + $0x5dc] ss:$24 sps:$4 sm:$0xff]  }
 0x333   : > { %6574 = vmatprep.subr.bf16.mxu0 %v8291_v35  ;;  %v8409_v35 = vld [vmem:[%s9643_s25 + $0x930] ss:$24 sps:$4 sm:$0xff]  }
 0x335   : > { %6698 = vmatpush1.bf16.msra.mxu1 %v8292_v38  ;;  %v8417_v38 = vld [vmem:[%s9643_s25 + $0x964] ss:$24 sps:$4 sm:$0xff]  }
 0x336   : > { %6575 = vmatpush1.bf16.msra.mxu0 %v8289_v39  ;;  %6699 = vmatprep.subr.bf16.mxu1 %v8300_v40  ;;  %v8361_v39 = vld [vmem:[%s9643_s25 + $0x5d8] ss:$24 sps:$4 sm:$0xff]   ;;  %v8366_v40 = vld [vmem:[%s9643_s25 + $0x60c] ss:$24 sps:$4 sm:$0xff]  }
 0x337   : > { %6576 = vmatprep.subr.bf16.mxu0 %v8297_v30  ;;  %v8415_v30 = vld [vmem:[%s9643_s25 + $0x960] ss:$24 sps:$4 sm:$0xff]  }
 0x339   : > { %6700 = vmatpush1.bf16.msra.mxu1 %v8298_v42  ;;  %v8423_v42 = vld [vmem:[%s9643_s25 + $0x994] ss:$24 sps:$4 sm:$0xff]  }
 0x33a   : > { %6577 = vmatpush1.bf16.msra.mxu0 %v8295_v32  ;;  %6701 = vmatprep.subr.bf16.mxu1 %v8306_v43  ;;  %v8364_v32 = vld [vmem:[%s9643_s25 + $0x608] ss:$24 sps:$4 sm:$0xff]   ;;  %v8369_v43 = vld [vmem:[%s9643_s25 + $0x63c] ss:$24 sps:$4 sm:$0xff]  }
 0x33b   : > { %6578 = vmatprep.subr.bf16.mxu0 %v8303_v45  ;;  %v8421_v45 = vld [vmem:[%s9643_s25 + $0x990] ss:$24 sps:$4 sm:$0xff]  }
 0x33d   : > { %6702 = vmatpush1.bf16.msra.mxu1 %v8304_v37  ;;  %v8429_v37 = vld [vmem:[%s9643_s25 + $0x9c4] ss:$24 sps:$4 sm:$0xff]  }
 0x33e   : > { %6579 = vmatpush1.bf16.msra.mxu0 %v8301_v41  ;;  %6703 = vmatprep.subr.bf16.mxu1 %v8312_v9  ;;  %v8367_v41 = vld [vmem:[%s9643_s25 + $0x638] ss:$24 sps:$4 sm:$0xff]   ;;  %v8372_v9 = vld [vmem:[%s9643_s25 + $0x66c] ss:$24 sps:$4 sm:$0xff]  }
 0x33f   : > { %6580 = vmatprep.subr.bf16.mxu0 %v8309_v15  ;;  %v8427_v15 = vld [vmem:[%s9643_s25 + $0x9c0] ss:$24 sps:$4 sm:$0xff]  }
 0x341   : > { %6704 = vmatpush1.bf16.msra.mxu1 %v8310_v48  ;;  %v8435_v48 = vld [vmem:[%s9643_s25 + $0x9f4] ss:$24 sps:$4 sm:$0xff]  }
 0x342   : > { %6581 = vmatpush1.bf16.msra.mxu0 %v8307_v2  ;;  %6705 = vmatprep.subr.bf16.mxu1 %v8318_v51  ;;  %v8370_v2 = vld [vmem:[%s9643_s25 + $0x668] ss:$24 sps:$4 sm:$0xff]   ;;  %v8375_v51 = vld [vmem:[%s9643_s25 + $0x69c] ss:$24 sps:$4 sm:$0xff]  }
 0x343   : > { %6582 = vmatprep.subr.bf16.mxu0 %v8315_v6  ;;  %v8433_v6 = vld [vmem:[%s9643_s25 + $0x9f0] ss:$24 sps:$4 sm:$0xff]  }
 0x345   : > { %6706 = vmatpush1.bf16.msra.mxu1 %v8316_v36  ;;  %v8441_v36 = vld [vmem:[%s9643_s25 + $0xa24] ss:$24 sps:$4 sm:$0xff]  }
 0x346   : > { %6583 = vmatpush1.bf16.msra.mxu0 %v8313_v52  ;;  %6707 = vmatprep.subr.bf16.mxu1 %v8324_v49  ;;  %v8373_v52 = vld [vmem:[%s9643_s25 + $0x698] ss:$24 sps:$4 sm:$0xff]   ;;  %v8378_v49 = vld [vmem:[%s9643_s25 + $0x6cc] ss:$24 sps:$4 sm:$0xff]  }
 0x347   : > { %6584 = vmatprep.subr.bf16.mxu0 %v8321_v53  ;;  %v8439_v53 = vld [vmem:[%s9643_s25 + $0xa20] ss:$24 sps:$4 sm:$0xff]  }
 0x349   : > { %6708 = vmatpush1.bf16.msra.mxu1 %v8322_v8  ;;  %v8447_v8 = vld [vmem:[%s9643_s25 + $0xa54] ss:$24 sps:$4 sm:$0xff]  }
 0x34a   : > { %6585 = vmatpush1.bf16.msra.mxu0 %v8319_v56  ;;  %6709 = vmatprep.subr.bf16.mxu1 %v8330_v12  ;;  %v8376_v56 = vld [vmem:[%s9643_s25 + $0x6c8] ss:$24 sps:$4 sm:$0xff]   ;;  %v8381_v12 = vld [vmem:[%s9643_s25 + $0x6fc] ss:$24 sps:$4 sm:$0xff]  }
 0x34b   : > { %6586 = vmatprep.subr.bf16.mxu0 %v8327_v27  ;;  %v8445_v27 = vld [vmem:[%s9643_s25 + $0xa50] ss:$24 sps:$4 sm:$0xff]  }
 0x34d   : > { %6710 = vmatpush1.bf16.msra.mxu1 %v8328_v57  ;;  %v8453_v57 = vld [vmem:[%s9643_s25 + $0xa84] ss:$24 sps:$4 sm:$0xff]  }
 0x34e   : > { %6587 = vmatpush1.bf16.msra.mxu0 %v8325_v58  ;;  %6711 = vmatprep.subr.bf16.mxu1 %v8336_v59  ;;  %v8379_v58 = vld [vmem:[%s9643_s25 + $0x6f8] ss:$24 sps:$4 sm:$0xff]   ;;  %v8384_v59 = vld [vmem:[%s9643_s25 + $0x72c] ss:$24 sps:$4 sm:$0xff]  }
 0x34f   : > { %6588 = vmatprep.subr.bf16.mxu0 %v8333_v61  ;;  %v8451_v61 = vld [vmem:[%s9643_s25 + $0xa80] ss:$24 sps:$4 sm:$0xff]  }
 0x351   : > { %6712 = vmatpush1.bf16.msra.mxu1 %v8334_v63  ;;  %v8459_v63 = vld [vmem:[%s9643_s25 + $0xab4] ss:$24 sps:$4 sm:$0xff]  }
 0x352   : > { %6589 = vmatpush1.bf16.msra.mxu0 %v8331_v0  ;;  %6713 = vmatprep.subr.bf16.mxu1 %v8342_v1  ;;  %v8382_v0 = vld [vmem:[%s9643_s25 + $0x728] ss:$24 sps:$4 sm:$0xff]   ;;  %v8387_v1 = vld [vmem:[%s9643_s25 + $0x75c] ss:$24 sps:$4 sm:$0xff]  }
 0x353   : > { %6590 = vmatprep.subr.bf16.mxu0 %v8339_v60  ;;  %v8457_v60 = vld [vmem:[%s9643_s25 + $0xab0] ss:$24 sps:$4 sm:$0xff]  }
 0x355   : > { %6714 = vmatpush1.bf16.msra.mxu1 %v8340_v7  ;;  %v8465_v7 = vld [vmem:[%s9643_s25 + $0xae4] ss:$24 sps:$4 sm:$0xff]  }
 0x356   : > { %6591 = vmatpush1.bf16.msra.mxu0 %v8337_v62  ;;  %6715 = vmatprep.subr.bf16.mxu1 %v8348_v24  ;;  %v8385_v62 = vld [vmem:[%s9643_s25 + $0x758] ss:$24 sps:$4 sm:$0xff]   ;;  %v8390_v24 = vld [vmem:[%s9643_s25 + $0x78c] ss:$24 sps:$4 sm:$0xff]  }
 0x357   : > { %6592 = vmatprep.subr.bf16.mxu0 %v8345_v10  ;;  %v8463_v10 = vld [vmem:[%s9643_s25 + $0xae0] ss:$24 sps:$4 sm:$0xff]  }
 0x359   : > { %6716 = vmatpush1.bf16.msra.mxu1 %v8346_v13  ;;  %v8471_v13 = vld [vmem:[%s9643_s25 + $0xb14] ss:$24 sps:$4 sm:$0xff]  }
 0x35a   : > { %6593 = vmatpush1.bf16.msra.mxu0 %v8343_v14  ;;  %6717 = vmatprep.subr.bf16.mxu1 %v8354_v16  ;;  %v8388_v14 = vld [vmem:[%s9643_s25 + $0x788] ss:$24 sps:$4 sm:$0xff]   ;;  %v8393_v16 = vld [vmem:[%s9643_s25 + $0x7bc] ss:$24 sps:$4 sm:$0xff]  }
 0x35b   : > { %6594 = vmatprep.subr.bf16.mxu0 %v8351_v18  ;;  %v8469_v18 = vld [vmem:[%s9643_s25 + $0xb10] ss:$24 sps:$4 sm:$0xff]  }
 0x35d   : > { %6718 = vmatpush1.bf16.msra.mxu1 %v8352_v19  ;;  %v8477_v19 = vld [vmem:[%s9643_s25 + $0xb44] ss:$24 sps:$4 sm:$0xff]  }
 0x35e   : > { %6595 = vmatpush1.bf16.msra.mxu0 %v8349_v20  ;;  %6719 = vmatprep.subr.bf16.mxu1 %v8357_v21  ;;  %v8391_v20 = vld [vmem:[%s9643_s25 + $0x7b8] ss:$24 sps:$4 sm:$0xff]   ;;  %v8396_v21 = vld [vmem:[%s9643_s25 + $0x7ec] ss:$24 sps:$4 sm:$0xff]  }
 0x35f   : > { %6607 = vmatprep.subr.bf16.mxu0 %v8405_v23  ;;  %v8475_v23 = vld [vmem:[%s9643_s25 + $0xb40] ss:$24 sps:$4 sm:$0xff]  }
 0x361   : > { %6597 = vmatmul.mubr.bf16.vlgmr.msra.gmra.mrb[8].mxu0 %v10247_v46  ;;  %6720 = vmatpush1.bf16.msra.mxu1 %v8355_v26  ;;  %v8483_v26 = vld [vmem:[%s9643_s25 + $0xb74] ss:$24 sps:$4 sm:$0xff]  }
 0x362   : > { %6721 = vmatprep.subr.bf16.mxu1 %v8360_v28  ;;  %6608 = vmatpush1.bf16.msra.mxu0 %v8403_v29  ;;  %v8394_v28 = vld [vmem:[%s9643_s25 + $0x7e8] ss:$24 sps:$4 sm:$0xff]   ;;  %v8399_v29 = vld [vmem:[%s9643_s25 + $0x81c] ss:$24 sps:$4 sm:$0xff]  }
 0x363   : > { %6609 = vmatprep.subr.bf16.mxu0 %v8411_v31  ;;  %v8481_v31 = vld [vmem:[%s9643_s25 + $0xb70] ss:$24 sps:$4 sm:$0xff]  }
 0x365   : > { %6722 = vmatpush1.bf16.msra.mxu1 %v8358_v33  ;;  %v8489_v33 = vld [vmem:[%s9643_s25 + $0xba4] ss:$24 sps:$4 sm:$0xff]  }
 0x366   : > { %6723 = vmatprep.subr.bf16.mxu1 %v8363_v34  ;;  %6610 = vmatpush1.bf16.msra.mxu0 %v8409_v35  ;;  %v8397_v34 = vld [vmem:[%s9643_s25 + $0x818] ss:$24 sps:$4 sm:$0xff]   ;;  %v8402_v35 = vld [vmem:[%s9643_s25 + $0x84c] ss:$24 sps:$4 sm:$0xff]  }
 0x367   : > { %6611 = vmatprep.subr.bf16.mxu0 %v8417_v38  ;;  %v8487_v38 = vld [vmem:[%s9643_s25 + $0xba0] ss:$24 sps:$4 sm:$0xff]  }
 0x369   : > { %6724 = vmatpush1.bf16.msra.mxu1 %v8361_v39  ;;  %v8495_v39 = vld [vmem:[%s9643_s25 + $0xbd4] ss:$24 sps:$4 sm:$0xff]  }
 0x36a   : > { %6736 = vmatprep.subr.bf16.mxu1 %v8366_v40  ;;  %6612 = vmatpush1.bf16.msra.mxu0 %v8415_v30  ;;  %v8400_v40 = vld [vmem:[%s9643_s25 + $0x848] ss:$24 sps:$4 sm:$0xff]   ;;  %v8408_v30 = vld [vmem:[%s9643_s25 + $0x87c] ss:$24 sps:$4 sm:$0xff]  }
 0x36b   : > { %6613 = vmatprep.subr.bf16.mxu0 %v8423_v42  ;;  %v8493_v42 = vld [vmem:[%s9643_s25 + $0xbd0] ss:$24 sps:$4 sm:$0xff]  }
 0x36c   : > { %6726 = vmatmul.mubr.bf16.vlgmr.msra.gmra.mrb[12].mxu1 %v10298_v3 }
 0x36d   : > { %6737 = vmatpush1.bf16.msra.mxu1 %v8364_v32  ;;  %6768 = vmatprep.mubr.bf16.mxu1 %v10249_v4  ;;  %v8504_v32 = vld [vmem:[%s9643_s25 + $0x14] ss:$24 sps:$4 sm:$0xff]  }
 0x36e   : > { %6738 = vmatprep.subr.bf16.mxu1 %v8369_v43  ;;  %6614 = vmatpush1.bf16.msra.mxu0 %v8421_v45  ;;  %v8406_v43 = vld [vmem:[%s9643_s25 + $0x878] ss:$24 sps:$4 sm:$0xff]   ;;  %v8414_v45 = vld [vmem:[%s9643_s25 + $0x8ac] ss:$24 sps:$4 sm:$0xff]  }
 0x36f   : > { %6615 = vmatprep.subr.bf16.mxu0 %v8429_v37  ;;  %v8412_v37 = vld [vmem:[%s9643_s25 + $0x8a8] ss:$24 sps:$4 sm:$0xff]  }
 0x371   : > { %6739 = vmatpush1.bf16.msra.mxu1 %v8367_v41  ;;  %v8420_v41 = vld [vmem:[%s9643_s25 + $0x8dc] ss:$24 sps:$4 sm:$0xff]  }
 0x372   : > { %6740 = vmatprep.subr.bf16.mxu1 %v8372_v9  ;;  %6616 = vmatpush1.bf16.msra.mxu0 %v8427_v15  ;;  %v8418_v9 = vld [vmem:[%s9643_s25 + $0x8d8] ss:$24 sps:$4 sm:$0xff]   ;;  %v8426_v15 = vld [vmem:[%s9643_s25 + $0x90c] ss:$24 sps:$4 sm:$0xff]  }
 0x373   : > { %6617 = vmatprep.subr.bf16.mxu0 %v8435_v48  ;;  %v8424_v48 = vld [vmem:[%s9643_s25 + $0x908] ss:$24 sps:$4 sm:$0xff]  }
 0x375   : > { %6741 = vmatpush1.bf16.msra.mxu1 %v8370_v2  ;;  %v8432_v2 = vld [vmem:[%s9643_s25 + $0x93c] ss:$24 sps:$4 sm:$0xff]  }
 0x376   : > { %6742 = vmatprep.subr.bf16.mxu1 %v8375_v51  ;;  %6618 = vmatpush1.bf16.msra.mxu0 %v8433_v6  ;;  %v8430_v51 = vld [vmem:[%s9643_s25 + $0x938] ss:$24 sps:$4 sm:$0xff]   ;;  %v8438_v6 = vld [vmem:[%s9643_s25 + $0x96c] ss:$24 sps:$4 sm:$0xff]  }
 0x377   : > { %6619 = vmatprep.subr.bf16.mxu0 %v8441_v36  ;;  %v8436_v36 = vld [vmem:[%s9643_s25 + $0x968] ss:$24 sps:$4 sm:$0xff]  }
 0x379   : > { %6743 = vmatpush1.bf16.msra.mxu1 %v8373_v52  ;;  %v8444_v52 = vld [vmem:[%s9643_s25 + $0x99c] ss:$24 sps:$4 sm:$0xff]  }
 0x37a   : > { %6744 = vmatprep.subr.bf16.mxu1 %v8378_v49  ;;  %6620 = vmatpush1.bf16.msra.mxu0 %v8439_v53  ;;  %v8442_v49 = vld [vmem:[%s9643_s25 + $0x998] ss:$24 sps:$4 sm:$0xff]   ;;  %v8450_v53 = vld [vmem:[%s9643_s25 + $0x9cc] ss:$24 sps:$4 sm:$0xff]  }
 0x37b   : > { %6621 = vmatprep.subr.bf16.mxu0 %v8447_v8  ;;  %v1530_v8 = vsub.s32 6, %v10052_v17 }
 0x37d   : > { %6745 = vmatpush1.bf16.msra.mxu1 %v8376_v56  ;;  %v8448_v56 = vld [vmem:[%s9643_s25 + $0x9c8] ss:$24 sps:$4 sm:$0xff]  }
 0x37e   : > { %6746 = vmatprep.subr.bf16.mxu1 %v8381_v12  ;;  %6622 = vmatpush1.bf16.msra.mxu0 %v8445_v27  ;;  %v1534_v12 = vsub.s32 7, %v10052_v17  ;;  %v8456_v27 = vld [vmem:[%s9643_s25 + $0x9fc] ss:$24 sps:$4 sm:$0xff]  }
 0x37f   : > { %6623 = vmatprep.subr.bf16.mxu0 %v8453_v57  ;;  %v8743_v57 = vld [vmem:[%s9638_s15] sm:$0xff] }
 0x381   : > { %6747 = vmatpush1.bf16.msra.mxu1 %v8379_v58  ;;  %v1531_v58 = vrot.slane %v8743_v57, %v1530_v8 }
 0x382   : > { %6748 = vmatprep.subr.bf16.mxu1 %v8384_v59  ;;  %6624 = vmatpush1.bf16.msra.mxu0 %v8451_v61  ;;  %v1535_v59 = vrot.slane %v8743_v57, %v1534_v12  ;;  %v8454_v61 = vld [vmem:[%s9643_s25 + $0x9f8] ss:$24 sps:$4 sm:$0xff]  }
 0x383   : > { %6625 = vmatprep.subr.bf16.mxu0 %v8459_v63  ;;  %v8462_v63 = vld [vmem:[%s9643_s25 + $0xa2c] ss:$24 sps:$4 sm:$0xff]  }
 0x385   : > { %6749 = vmatpush1.bf16.msra.mxu1 %v8382_v0 }
 0x386   : > { %6750 = vmatprep.subr.bf16.mxu1 %v8387_v1  ;;  %6626 = vmatpush1.bf16.msra.mxu0 %v8457_v60 }
 0x387   : > { %6627 = vmatprep.subr.bf16.mxu0 %v8465_v7 }
 0x389   : > { %6751 = vmatpush1.bf16.msra.mxu1 %v8385_v62 }
 0x38a   : > { %6752 = vmatprep.subr.bf16.mxu1 %v8390_v24  ;;  %6628 = vmatpush1.bf16.msra.mxu0 %v8463_v10  ;;  %v8460_v24 = vld [vmem:[%s9643_s25 + $0xa28] ss:$24 sps:$4 sm:$0xff]  }
 0x38b   : > { %6629 = vmatprep.subr.bf16.mxu0 %v8471_v13 }
 0x38d   : > { %6753 = vmatpush1.bf16.msra.mxu1 %v8388_v14 }
 0x38e   : > { %6754 = vmatprep.subr.bf16.mxu1 %v8393_v16  ;;  %6630 = vmatpush1.bf16.msra.mxu0 %v8469_v18  ;;  %v8468_v16 = vld [vmem:[%s9643_s25 + $0xa5c] ss:$24 sps:$4 sm:$0xff]  }
 0x38f   : > { %6631 = vmatprep.subr.bf16.mxu0 %v8477_v19 }
 0x391   : > { %6755 = vmatpush1.bf16.msra.mxu1 %v8391_v20 }
 0x392   : > { %6756 = vmatprep.subr.bf16.mxu1 %v8396_v21  ;;  %6632 = vmatpush1.bf16.msra.mxu0 %v8475_v23 }
 0x393   : > { %6633 = vmatprep.subr.bf16.mxu0 %v8483_v26 }
 0x395   : > { %6757 = vmatpush1.bf16.msra.mxu1 %v8394_v28  ;;  %v8466_v28 = vld [vmem:[%s9643_s25 + $0xa58] ss:$24 sps:$4 sm:$0xff]  }
 0x396   : > { %6758 = vmatprep.subr.bf16.mxu1 %v8399_v29  ;;  %6634 = vmatpush1.bf16.msra.mxu0 %v8481_v31 }
 0x397   : > { %6635 = vmatprep.subr.bf16.mxu0 %v8489_v33  ;;  %v8474_v33 = vld [vmem:[%s9643_s25 + $0xa8c] ss:$24 sps:$4 sm:$0xff]  }
 0x399   : > { %6759 = vmatpush1.bf16.msra.mxu1 %v8397_v34 }
 0x39a   : > { %6760 = vmatprep.subr.bf16.mxu1 %v8402_v35  ;;  %6636 = vmatpush1.bf16.msra.mxu0 %v8487_v38 }
 0x39b   : > { %6637 = vmatprep.subr.bf16.mxu0 %v8495_v39 }
 0x39d   : > { %6761 = vmatpush1.bf16.msra.mxu1 %v8400_v40 }
 0x39e   : > { %6762 = vmatprep.subr.bf16.mxu1 %v8408_v30  ;;  %6638 = vmatpush1.bf16.msra.mxu0 %v8493_v42  ;;  %v8472_v42 = vld [vmem:[%s9643_s25 + $0xa88] ss:$24 sps:$4 sm:$0xff]  }
 0x39f   : > { %6822 = vmatprep.subr.bf16.mxu0 %v8504_v32 }
 0x3a1   : > { %6763 = vmatpush1.bf16.msra.mxu1 %v8406_v43 }
 0x3a2   : > { %6764 = vmatprep.subr.bf16.mxu1 %v8414_v45  ;;  %v8480_v45 = vld [vmem:[%s9643_s25 + $0xabc] ss:$24 sps:$4 sm:$0xff]  }
 0x3a5   : > { %6765 = vmatpush1.bf16.msra.mxu1 %v8412_v37 }
 0x3a6   : > { %6766 = vmatprep.subr.bf16.mxu1 %v8420_v41 }
 0x3a9   : > { %6767 = vmatpush1.bf16.msra.mxu1 %v8418_v9 }
 0x3aa   : > { %6779 = vmatprep.subr.bf16.mxu1 %v8426_v15 }
 0x3ac   : > { %6769 = vmatmul.mubr.bf16.vlgmr.msra.gmra.mrb[12].mxu1 %v10247_v46 }
 0x3ad   : > { %6780 = vmatpush1.bf16.msra.mxu1 %v8424_v48  ;;  %v8478_v48 = vld [vmem:[%s9643_s25 + $0xab8] ss:$24 sps:$4 sm:$0xff]  }
 0x3ae   : > { %6781 = vmatprep.subr.bf16.mxu1 %v8432_v2  ;;  %v8486_v2 = vld [vmem:[%s9643_s25 + $0xaec] ss:$24 sps:$4 sm:$0xff]  }
 0x3b1   : > { %6782 = vmatpush1.bf16.msra.mxu1 %v8430_v51  ;;  %v8484_v51 = vld [vmem:[%s9643_s25 + $0xae8] ss:$24 sps:$4 sm:$0xff]  }
 0x3b2   : > { %6783 = vmatprep.subr.bf16.mxu1 %v8438_v6  ;;  %v8492_v6 = vld [vmem:[%s9643_s25 + $0xb1c] ss:$24 sps:$4 sm:$0xff]  }
 0x3b5   : > { %6784 = vmatpush1.bf16.msra.mxu1 %v8436_v36  ;;  %v8490_v36 = vld [vmem:[%s9643_s25 + $0xb18] ss:$24 sps:$4 sm:$0xff]  }
 0x3b6   : > { %6785 = vmatprep.subr.bf16.mxu1 %v8444_v52 }
 0x3b9   : > { %6786 = vmatpush1.bf16.msra.mxu1 %v8442_v49  ;;  %v8498_v49 = vld [vmem:[%s9643_s25 + $0xb4c] ss:$24 sps:$4 sm:$0xff]  }
 0x3ba   : > { %6787 = vmatprep.subr.bf16.mxu1 %v8450_v53 }
 0x3bd   : > { %6788 = vmatpush1.bf16.msra.mxu1 %v8448_v56 }
 0x3be   : > { %6789 = vmatprep.subr.bf16.mxu1 %v8456_v27 }
 0x3bf   : > { %v4001_v0 = vpop.f32.mrb[8].mxu1 }
 0x3c0   : > { %v8003_v1 = vadd.f32 %v4001_v0, %v1531_v58  ;;  %v4003_v60 = vpop.f32.mrb[9].mxu1 }
 0x3c1   : > { %v10459_v7 = vadd.f32 %v4003_v60, %v1535_v59  ;;  %v4005_v62 = vpop.f32.mrb[10].mxu1  ;;  %6790 = vmatpush1.bf16.msra.mxu1 %v8454_v61 }
 0x3c2   : > { %v4016_v10 = vmul.f32 %v8003_v1, %v8003_v1  ;;  %v8005_v13 = vadd.f32 %v4005_v62, %v1531_v58  ;;  %v4007_v14 = vpop.f32.mrb[11].mxu1  ;;  %6791 = vmatprep.subr.bf16.mxu1 %v8462_v63  ;;  %v4080_v57 = vmul.f32 0.5, %v8003_v1  ;;  %v8501_v62 = vld [vmem:[%s9643_s25 + $0xb7c] ss:$24 sps:$4 sm:$0xff]  }
 0x3c3   : > { %v4017_v18 = vmul.f32 %v10459_v7, %v10459_v7  ;;  %v8006_v19 = vadd.f32 %v4007_v14, %v1535_v59  ;;  %v8496_v59 = vld [vmem:[%s9643_s25 + $0xb48] ss:$24 sps:$4 sm:$0xff]   ;;  %v4081_v63 = vmul.f32 0.5, %v10459_v7 }
 0x3c4   : > { %v4032_v20 = vmul.f32 %v8003_v1, %v4016_v10  ;;  %v4024_v21 = vmul.f32 %v8005_v13, %v8005_v13  ;;  %v4088_v58 = vmul.f32 0.5, %v8005_v13 }
 0x3c5   : > { %v4033_v23 = vmul.f32 %v10459_v7, %v4017_v18  ;;  %v4025_v26 = vmul.f32 %v8006_v19, %v8006_v19  ;;  %6792 = vmatpush1.bf16.msra.mxu1 %v8460_v24  ;;  %v4089_v0 = vmul.f32 0.5, %v8006_v19 }
 0x3c6   : > { %v4048_v29 = vmul.f32 0.044715, %v4032_v20  ;;  %v4040_v31 = vmul.f32 %v8005_v13, %v4024_v21  ;;  %6793 = vmatprep.subr.bf16.mxu1 %v8468_v16  ;;  %v8502_v20 = vld [vmem:[%s9643_s25 + $0x10] ss:$24 sps:$4 sm:$0xff]  }
 0x3c7   : > { %v4049_v34 = vmul.f32 0.044715, %v4033_v23  ;;  %v4041_v35 = vmul.f32 %v8006_v19, %v4025_v26  ;;  %v8505_v21 = vld [vmem:[%s9643_s25 + $0xba8] ss:$24 sps:$4 sm:$0xff]   ;;  %v8513_v26 = vld [vmem:[%s9643_s25 + $0xbdc] ss:$24 sps:$4 sm:$0xff]  }
 0x3c8   : > { %v4064_v38 = vadd.f32 %v8003_v1, %v4048_v29  ;;  %v4056_v39 = vmul.f32 0.044715, %v4040_v31  ;;  %v8499_v1 = vld [vmem:[%s9643_s25 + $0xb78] ss:$24 sps:$4 sm:$0xff]  }
 0x3c9   : > { %v4065_v40 = vadd.f32 %v10459_v7, %v4049_v34  ;;  %v4057_v30 = vmul.f32 0.044715, %v4041_v35  ;;  %6794 = vmatpush1.bf16.msra.mxu1 %v8466_v28  ;;  %v8507_v7 = vld [vmem:[%s9643_s25 + $0xbac] ss:$24 sps:$4 sm:$0xff]   ;;  %v8508_v23 = vld [vmem:[%s9643_s25 + $0x40] ss:$24 sps:$4 sm:$0xff]  }
 0x3ca   : > { %v4096_v32 = vmul.f32 0.7978846, %v4064_v38  ;;  %v4072_v43 = vadd.f32 %v8005_v13, %v4056_v39  ;;  %6795 = vmatprep.subr.bf16.mxu1 %v8474_v33  ;;  %v8516_v28 = vld [vmem:[%s9643_s25 + $0x74] ss:$24 sps:$4 sm:$0xff]   ;;  %v8511_v29 = vld [vmem:[%s9643_s25 + $0xbd8] ss:$24 sps:$4 sm:$0xff]  }
 0x3cb   : > { %v4097_v37 = vmul.f32 0.7978846, %v4065_v40  ;;  %v4073_v41 = vadd.f32 %v8006_v19, %v4057_v30  ;;  %v8510_v19 = vld [vmem:[%s9643_s25 + $0x44] ss:$24 sps:$4 sm:$0xff]   ;;  %v8514_v31 = vld [vmem:[%s9643_s25 + $0x70] ss:$24 sps:$4 sm:$0xff]  }
 0x3cc   : > { %8724 = vtanh.f32 %v4096_v32  ;;  %v4104_v9 = vmul.f32 0.7978846, %v4072_v43  ;;  %v8519_v33 = vld [vmem:[%s9643_s25 + $0xa4] ss:$24 sps:$4 sm:$0xff]   ;;  %v8522_v34 = vld [vmem:[%s9643_s25 + $0xd4] ss:$24 sps:$4 sm:$0xff]  }
 0x3cd   : > { %8726 = vtanh.f32 %v4097_v37  ;;  %v4105_v15 = vmul.f32 0.7978846, %v4073_v41  ;;  %6796 = vmatpush1.bf16.msra.mxu1 %v8472_v42  ;;  %v8520_v35 = vld [vmem:[%s9643_s25 + $0xd0] ss:$24 sps:$4 sm:$0xff]   ;;  %v8525_v38 = vld [vmem:[%s9643_s25 + $0x104] ss:$24 sps:$4 sm:$0xff]  }
 0x3ce   : > { %8728 = vtanh.f32 %v4104_v9  ;;  %6797 = vmatprep.subr.bf16.mxu1 %v8480_v45  ;;  %v8523_v39 = vld [vmem:[%s9643_s25 + $0x100] ss:$24 sps:$4 sm:$0xff]   ;;  %v8528_v40 = vld [vmem:[%s9643_s25 + $0x134] ss:$24 sps:$4 sm:$0xff]   ;;  %v8526_v30 = vld [vmem:[%s9643_s25 + $0x130] ss:$24 sps:$4 sm:$0xff]  }
 0x3cf   : > { %8730 = vtanh.f32 %v4105_v15  ;;  %v8531_v42 = vld [vmem:[%s9643_s25 + $0x164] ss:$24 sps:$4 sm:$0xff]   ;;  %v8529_v32 = vld [vmem:[%s9643_s25 + $0x160] ss:$24 sps:$4 sm:$0xff]   ;;  %v8534_v43 = vld [vmem:[%s9643_s25 + $0x194] ss:$24 sps:$4 sm:$0xff]  }
 0x3d0   : > { %v8532_v45 = vld [vmem:[%s9643_s25 + $0x190] ss:$24 sps:$4 sm:$0xff]   ;;  %v8537_v37 = vld [vmem:[%s9643_s25 + $0x1c4] ss:$24 sps:$4 sm:$0xff]   ;;  %v8535_v41 = vld [vmem:[%s9643_s25 + $0x1c0] ss:$24 sps:$4 sm:$0xff]  }
 0x3d1   : > { %6798 = vmatpush1.bf16.msra.mxu1 %v8478_v48  ;;  %v8540_v9 = vld [vmem:[%s9643_s25 + $0x1f4] ss:$24 sps:$4 sm:$0xff]   ;;  %v8538_v15 = vld [vmem:[%s9643_s25 + $0x1f0] ss:$24 sps:$4 sm:$0xff]   ;;  %v8543_v48 = vld [vmem:[%s9643_s25 + $0x224] ss:$24 sps:$4 sm:$0xff]  }
 0x3d2   : > { %6799 = vmatprep.subr.bf16.mxu1 %v8486_v2  ;;  %v8541_v2 = vld [vmem:[%s9643_s25 + $0x220] ss:$24 sps:$4 sm:$0xff]  }
 0x3d5   : > { %6800 = vmatpush1.bf16.msra.mxu1 %v8484_v51  ;;  %v8546_v51 = vld [vmem:[%s9643_s25 + $0x254] ss:$24 sps:$4 sm:$0xff]  }
 0x3d6   : > { %v8725_v52 = vpop.eup %8724  ;;  %6801 = vmatprep.subr.bf16.mxu1 %v8492_v6  ;;  %v8544_v6 = vld [vmem:[%s9643_s25 + $0x250] ss:$24 sps:$4 sm:$0xff]  }
 0x3d7   : > { %v8727_v53 = vpop.eup %8726  ;;  %v4128_v8 = vadd.f32 1.0, %v8725_v52  ;;  %v8547_v52 = vld [vmem:[%s9643_s25 + $0x280] ss:$24 sps:$4 sm:$0xff]  }
 0x3d8   : > { %v8729_v56 = vpop.eup %8728  ;;  %v4129_v12 = vadd.f32 1.0, %v8727_v53  ;;  %v8550_v53 = vld [vmem:[%s9643_s25 + $0x2b0] ss:$24 sps:$4 sm:$0xff]  }
 0x3d9   : > { %v8731_v27 = vpop.eup %8730  ;;  %6802 = vmatpush1.bf16.msra.mxu1 %v8490_v36  ;;  %v4136_v61 = vadd.f32 1.0, %v8729_v56  ;;  %v4144_v24 = vmul.f32 %v4128_v8, %v4080_v57  ;;  %v8549_v36 = vld [vmem:[%s9643_s25 + $0x284] ss:$24 sps:$4 sm:$0xff]   ;;  %v8553_v56 = vld [vmem:[%s9643_s25 + $0x2e0] ss:$24 sps:$4 sm:$0xff]  }
 0x3da   : > { %6803 = vmatprep.subr.bf16.mxu1 %v8498_v49  ;;  %v4137_v60 = vadd.f32 1.0, %v8731_v27  ;;  %v4145_v14 = vmul.f32 %v4129_v12, %v4081_v63  ;;  %v8552_v49 = vld [vmem:[%s9643_s25 + $0x2b4] ss:$24 sps:$4 sm:$0xff]   ;;  %v8555_v8 = vld [vmem:[%s9643_s25 + $0x2e4] ss:$24 sps:$4 sm:$0xff]  }
 0x3db   : > { %v4152_v10 = vmul.f32 %v4136_v61, %v4088_v58  ;;  %v8558_v12 = vld [vmem:[%s9643_s25 + $0x314] ss:$24 sps:$4 sm:$0xff]   ;;  %v8556_v27 = vld [vmem:[%s9643_s25 + $0x310] ss:$24 sps:$4 sm:$0xff]   ;;  %v8561_v57 = vld [vmem:[%s9643_s25 + $0x344] ss:$24 sps:$4 sm:$0xff]  }
 0x3dc   : > { %v4153_v16 = vmul.f32 %v4137_v60, %v4089_v0  ;;  %v8559_v58 = vld [vmem:[%s9643_s25 + $0x340] ss:$24 sps:$4 sm:$0xff]   ;;  %v8562_v61 = vld [vmem:[%s9643_s25 + $0x370] ss:$24 sps:$4 sm:$0xff]   ;;  %v8567_v63 = vld [vmem:[%s9643_s25 + $0x3a4] ss:$24 sps:$4 sm:$0xff]  }
 0x3dd   : > { %6804 = vmatpush1.bf16.msra.mxu1 %v8496_v59  ;;  %v10481_v13 = vpack.c.bf16 %v4152_v10, %v4144_v24  ;;  %v8564_v59 = vld [vmem:[%s9643_s25 + $0x374] ss:$24 sps:$4 sm:$0xff]   ;;  %v8565_v0 = vld [vmem:[%s9643_s25 + $0x3a0] ss:$24 sps:$4 sm:$0xff]   ;;  %v8568_v60 = vld [vmem:[%s9643_s25 + $0x3d0] ss:$24 sps:$4 sm:$0xff]  }
 0x3de   : > { %v10483_v18 = vpack.c.bf16 %v4153_v16, %v4145_v14  ;;  %6805 = vmatprep.subr.bf16.mxu1 %v8501_v62  ;;  %v8571_v62 = vld [vmem:[%s9643_s25 + $0x400] ss:$24 sps:$4 sm:$0xff]   ;;  %v8576_v24 = vld [vmem:[%s9643_s25 + $0x434] ss:$24 sps:$4 sm:$0xff]   ;;  %v8574_v10 = vld [vmem:[%s9643_s25 + $0x430] ss:$24 sps:$4 sm:$0xff]  }
 0x3df   : > { %v8579_v14 = vld [vmem:[%s9643_s25 + $0x464] ss:$24 sps:$4 sm:$0xff]   ;;  %v8577_v16 = vld [vmem:[%s9643_s25 + $0x460] ss:$24 sps:$4 sm:$0xff]  }
 0x3e0   : > { %6639 = vmatprep.mubr.bf16.mxu0 %v10483_v18  ;;  %6811 = vmatprep.mubr.bf16.mxu1 %v10483_v18 }
 0x3e1   : > { %6640 = vmatmul.mubr.bf16.vlgmr.msra.gmra.mrb[8].mxu0 %v10481_v13  ;;  %6806 = vmatpush1.bf16.msra.mxu1 %v8499_v1  ;;  %v8582_v1 = vld [vmem:[%s9643_s25 + $0x494] ss:$24 sps:$4 sm:$0xff]  }
 0x3e2   : > { %6823 = vmatpush1.bf16.msra.mxu0 %v8502_v20  ;;  %6854 = vmatprep.mubr.bf16.mxu0 %v10122_v55  ;;  %v8517_v55 = vld [vmem:[%s9643_s25 + $0xa0] ss:$24 sps:$4 sm:$0xff]   ;;  %v8580_v20 = vld [vmem:[%s9643_s25 + $0x490] ss:$24 sps:$4 sm:$0xff]  }
 0x3e3   : > { %6807 = vmatprep.subr.bf16.mxu1 %v8507_v7  ;;  %6824 = vmatprep.subr.bf16.mxu0 %v8510_v19  ;;  %v8585_v7 = vld [vmem:[%s9643_s25 + $0x4c4] ss:$24 sps:$4 sm:$0xff]   ;;  %v8583_v19 = vld [vmem:[%s9643_s25 + $0x4c0] ss:$24 sps:$4 sm:$0xff]  }
 0x3e5   : > { %6808 = vmatpush1.bf16.msra.mxu1 %v8505_v21  ;;  %v8588_v21 = vld [vmem:[%s9643_s25 + $0x4f4] ss:$24 sps:$4 sm:$0xff]  }
 0x3e6   : > { %6825 = vmatpush1.bf16.msra.mxu0 %v8508_v23  ;;  %6809 = vmatprep.subr.bf16.mxu1 %v8513_v26  ;;  %v8586_v23 = vld [vmem:[%s9643_s25 + $0x4f0] ss:$24 sps:$4 sm:$0xff]   ;;  %v8591_v26 = vld [vmem:[%s9643_s25 + $0x524] ss:$24 sps:$4 sm:$0xff]  }
 0x3e7   : > { %6826 = vmatprep.subr.bf16.mxu0 %v8516_v28  ;;  %v8589_v28 = vld [vmem:[%s9643_s25 + $0x520] ss:$24 sps:$4 sm:$0xff]  }
 0x3e9   : > { %6810 = vmatpush1.bf16.msra.mxu1 %v8511_v29  ;;  %v8594_v29 = vld [vmem:[%s9643_s25 + $0x554] ss:$24 sps:$4 sm:$0xff]  }
 0x3ea   : > { %6827 = vmatpush1.bf16.msra.mxu0 %v8514_v31  ;;  %v8592_v31 = vld [vmem:[%s9643_s25 + $0x550] ss:$24 sps:$4 sm:$0xff]  }
 0x3eb   : > { %6828 = vmatprep.subr.bf16.mxu0 %v8519_v33  ;;  %v8597_v33 = vld [vmem:[%s9643_s25 + $0x584] ss:$24 sps:$4 sm:$0xff]  }
 0x3ec   : > { %6812 = vmatmul.mubr.bf16.vlgmr.msra.gmra.mrb[12].mxu1 %v10481_v13 }
 0x3ee   : > { %6829 = vmatpush1.bf16.msra.mxu0 %v8517_v55  ;;  %v8595_v55 = vld [vmem:[%s9643_s25 + $0x580] ss:$24 sps:$4 sm:$0xff]  }
 0x3ef   : > { %6830 = vmatprep.subr.bf16.mxu0 %v8522_v34  ;;  %v8600_v34 = vld [vmem:[%s9643_s25 + $0x5b4] ss:$24 sps:$4 sm:$0xff]  }
 0x3f2   : > { %6831 = vmatpush1.bf16.msra.mxu0 %v8520_v35  ;;  %v8598_v35 = vld [vmem:[%s9643_s25 + $0x5b0] ss:$24 sps:$4 sm:$0xff]  }
 0x3f3   : > { %6832 = vmatprep.subr.bf16.mxu0 %v8525_v38  ;;  %v8603_v38 = vld [vmem:[%s9643_s25 + $0x5e4] ss:$24 sps:$4 sm:$0xff]  }
 0x3f6   : > { %6833 = vmatpush1.bf16.msra.mxu0 %v8523_v39  ;;  %v8601_v39 = vld [vmem:[%s9643_s25 + $0x5e0] ss:$24 sps:$4 sm:$0xff]  }
 0x3f7   : > { %6834 = vmatprep.subr.bf16.mxu0 %v8528_v40  ;;  %v8606_v40 = vld [vmem:[%s9643_s25 + $0x614] ss:$24 sps:$4 sm:$0xff]  }
 0x3fa   : > { %6835 = vmatpush1.bf16.msra.mxu0 %v8526_v30  ;;  %v8604_v30 = vld [vmem:[%s9643_s25 + $0x610] ss:$24 sps:$4 sm:$0xff]  }
 0x3fb   : > { %6836 = vmatprep.subr.bf16.mxu0 %v8531_v42  ;;  %v8609_v42 = vld [vmem:[%s9643_s25 + $0x644] ss:$24 sps:$4 sm:$0xff]  }
 0x3fe   : > { %6837 = vmatpush1.bf16.msra.mxu0 %v8529_v32  ;;  %v8607_v32 = vld [vmem:[%s9643_s25 + $0x640] ss:$24 sps:$4 sm:$0xff]  }
 0x3ff   : > { %6838 = vmatprep.subr.bf16.mxu0 %v8534_v43  ;;  %v8612_v43 = vld [vmem:[%s9643_s25 + $0x674] ss:$24 sps:$4 sm:$0xff]  }
 0x402   : > { %6839 = vmatpush1.bf16.msra.mxu0 %v8532_v45  ;;  %v8610_v45 = vld [vmem:[%s9643_s25 + $0x670] ss:$24 sps:$4 sm:$0xff]  }
 0x403   : > { %6840 = vmatprep.subr.bf16.mxu0 %v8537_v37  ;;  %v8615_v37 = vld [vmem:[%s9643_s25 + $0x6a4] ss:$24 sps:$4 sm:$0xff]  }
 0x406   : > { %6841 = vmatpush1.bf16.msra.mxu0 %v8535_v41  ;;  %v8613_v41 = vld [vmem:[%s9643_s25 + $0x6a0] ss:$24 sps:$4 sm:$0xff]  }
 0x407   : > { %6842 = vmatprep.subr.bf16.mxu0 %v8540_v9  ;;  %v8616_v9 = vld [vmem:[%s9643_s25 + $0x6d0] ss:$24 sps:$4 sm:$0xff]  }
 0x40a   : > { %6843 = vmatpush1.bf16.msra.mxu0 %v8538_v15  ;;  %v8619_v15 = vld [vmem:[%s9643_s25 + $0x700] ss:$24 sps:$4 sm:$0xff]  }
 0x40b   : > { %6844 = vmatprep.subr.bf16.mxu0 %v8543_v48  ;;  %v8624_v48 = vld [vmem:[%s9643_s25 + $0x734] ss:$24 sps:$4 sm:$0xff]  }
 0x40e   : > { %6845 = vmatpush1.bf16.msra.mxu0 %v8541_v2  ;;  %v8622_v2 = vld [vmem:[%s9643_s25 + $0x730] ss:$24 sps:$4 sm:$0xff]  }
 0x40f   : > { %6846 = vmatprep.subr.bf16.mxu0 %v8546_v51  ;;  %v8627_v51 = vld [vmem:[%s9643_s25 + $0x764] ss:$24 sps:$4 sm:$0xff]  }
 0x412   : > { %6847 = vmatpush1.bf16.msra.mxu0 %v8544_v6  ;;  %v8625_v6 = vld [vmem:[%s9643_s25 + $0x760] ss:$24 sps:$4 sm:$0xff]  }
 0x413   : > { %6848 = vmatprep.subr.bf16.mxu0 %v8549_v36  ;;  %v8630_v36 = vld [vmem:[%s9643_s25 + $0x794] ss:$24 sps:$4 sm:$0xff]  }
 0x416   : > { %6849 = vmatpush1.bf16.msra.mxu0 %v8547_v52  ;;  %v8628_v52 = vld [vmem:[%s9643_s25 + $0x790] ss:$24 sps:$4 sm:$0xff]  }
 0x417   : > { %6850 = vmatprep.subr.bf16.mxu0 %v8552_v49  ;;  %v8633_v49 = vld [vmem:[%s9643_s25 + $0x7c4] ss:$24 sps:$4 sm:$0xff]  }
 0x41a   : > { %6851 = vmatpush1.bf16.msra.mxu0 %v8550_v53  ;;  %v8631_v53 = vld [vmem:[%s9643_s25 + $0x7c0] ss:$24 sps:$4 sm:$0xff]  }
 0x41b   : > { %6852 = vmatprep.subr.bf16.mxu0 %v8555_v8  ;;  %v8636_v8 = vld [vmem:[%s9643_s25 + $0x7f4] ss:$24 sps:$4 sm:$0xff]  }
 0x41e   : > { %6853 = vmatpush1.bf16.msra.mxu0 %v8553_v56  ;;  %v8634_v56 = vld [vmem:[%s9643_s25 + $0x7f0] ss:$24 sps:$4 sm:$0xff]  }
 0x41f   : > { %6865 = vmatprep.subr.bf16.mxu0 %v8558_v12  ;;  %v8639_v12 = vld [vmem:[%s9643_s25 + $0x824] ss:$24 sps:$4 sm:$0xff]  }
 0x421   : > { %6855 = vmatmul.mubr.bf16.vlgmr.msra.gmra.mrb[12].mxu0 %v10118_v54  ;;  %v8570_v54 = vld [vmem:[%s9643_s25 + $0x3d4] ss:$24 sps:$4 sm:$0xff]  }
 0x422   : > { %6866 = vmatpush1.bf16.msra.mxu0 %v8556_v27  ;;  %6897 = vmatprep.mubr.bf16.mxu0 %v10300_v5  ;;  %v8573_v5 = vld [vmem:[%s9643_s25 + $0x404] ss:$24 sps:$4 sm:$0xff]   ;;  %v8637_v27 = vld [vmem:[%s9643_s25 + $0x820] ss:$24 sps:$4 sm:$0xff]  }
 0x423   : > { %6867 = vmatprep.subr.bf16.mxu0 %v8561_v57  ;;  %v8642_v57 = vld [vmem:[%s9643_s25 + $0x854] ss:$24 sps:$4 sm:$0xff]  }
 0x426   : > { %6868 = vmatpush1.bf16.msra.mxu0 %v8559_v58  ;;  %v8640_v58 = vld [vmem:[%s9643_s25 + $0x850] ss:$24 sps:$4 sm:$0xff]  }
 0x427   : > { %6869 = vmatprep.subr.bf16.mxu0 %v8564_v59  ;;  %v8645_v59 = vld [vmem:[%s9643_s25 + $0x884] ss:$24 sps:$4 sm:$0xff]  }
 0x42a   : > { %6870 = vmatpush1.bf16.msra.mxu0 %v8562_v61  ;;  %v8643_v61 = vld [vmem:[%s9643_s25 + $0x880] ss:$24 sps:$4 sm:$0xff]  }
 0x42b   : > { %6871 = vmatprep.subr.bf16.mxu0 %v8567_v63  ;;  %v8648_v63 = vld [vmem:[%s9643_s25 + $0x8b4] ss:$24 sps:$4 sm:$0xff]  }
 0x42e   : > { %6872 = vmatpush1.bf16.msra.mxu0 %v8565_v0  ;;  %v8646_v0 = vld [vmem:[%s9643_s25 + $0x8b0] ss:$24 sps:$4 sm:$0xff]  }
 0x42f   : > { %6873 = vmatprep.subr.bf16.mxu0 %v8570_v54  ;;  %v8651_v54 = vld [vmem:[%s9643_s25 + $0x8e4] ss:$24 sps:$4 sm:$0xff]  }
 0x432   : > { %6874 = vmatpush1.bf16.msra.mxu0 %v8568_v60  ;;  %v8649_v60 = vld [vmem:[%s9643_s25 + $0x8e0] ss:$24 sps:$4 sm:$0xff]  }
 0x433   : > { %6875 = vmatprep.subr.bf16.mxu0 %v8573_v5  ;;  %v8654_v5 = vld [vmem:[%s9643_s25 + $0x914] ss:$24 sps:$4 sm:$0xff]  }
 0x436   : > { %6876 = vmatpush1.bf16.msra.mxu0 %v8571_v62  ;;  %v8652_v62 = vld [vmem:[%s9643_s25 + $0x910] ss:$24 sps:$4 sm:$0xff]  }
 0x437   : > { %6877 = vmatprep.subr.bf16.mxu0 %v8576_v24  ;;  %v8657_v24 = vld [vmem:[%s9643_s25 + $0x944] ss:$24 sps:$4 sm:$0xff]  }
 0x43a   : > { %6878 = vmatpush1.bf16.msra.mxu0 %v8574_v10  ;;  %v8655_v10 = vld [vmem:[%s9643_s25 + $0x940] ss:$24 sps:$4 sm:$0xff]  }
 0x43b   : > { %6879 = vmatprep.subr.bf16.mxu0 %v8579_v14  ;;  %v8660_v14 = vld [vmem:[%s9643_s25 + $0x974] ss:$24 sps:$4 sm:$0xff]  }
 0x43e   : > { %6880 = vmatpush1.bf16.msra.mxu0 %v8577_v16  ;;  %v8658_v16 = vld [vmem:[%s9643_s25 + $0x970] ss:$24 sps:$4 sm:$0xff]  }
 0x43f   : > { %6881 = vmatprep.subr.bf16.mxu0 %v8582_v1  ;;  %v8663_v1 = vld [vmem:[%s9643_s25 + $0x9a4] ss:$24 sps:$4 sm:$0xff]  }
 0x442   : > { %6882 = vmatpush1.bf16.msra.mxu0 %v8580_v20  ;;  %v8661_v20 = vld [vmem:[%s9643_s25 + $0x9a0] ss:$24 sps:$4 sm:$0xff]  }
 0x443   : > { %6883 = vmatprep.subr.bf16.mxu0 %v8585_v7  ;;  %v8666_v7 = vld [vmem:[%s9643_s25 + $0x9d4] ss:$24 sps:$4 sm:$0xff]  }
 0x446   : > { %6884 = vmatpush1.bf16.msra.mxu0 %v8583_v19  ;;  %v8664_v19 = vld [vmem:[%s9643_s25 + $0x9d0] ss:$24 sps:$4 sm:$0xff]  }
 0x447   : > { %6885 = vmatprep.subr.bf16.mxu0 %v8588_v21  ;;  %v8667_v21 = vld [vmem:[%s9643_s25 + $0xa00] ss:$24 sps:$4 sm:$0xff]  }
 0x44a   : > { %6886 = vmatpush1.bf16.msra.mxu0 %v8586_v23  ;;  %v4155_v23 = vld [vmem:[#allocation2 + $0x8] sm:$0xff] }
 0x44b   : > { %6887 = vmatprep.subr.bf16.mxu0 %v8591_v26  ;;  %v8672_v26 = vld [vmem:[%s9643_s25 + $0xa34] ss:$24 sps:$4 sm:$0xff]  }
 0x44e   : > { %6888 = vmatpush1.bf16.msra.mxu0 %v8589_v28 }
 0x44f   : > { %6889 = vmatprep.subr.bf16.mxu0 %v8594_v29  ;;  %v4160_v29 = vld [vmem:[#allocation2 + $0x30] sm:$0xff] }
 0x452   : > { %6890 = vmatpush1.bf16.msra.mxu0 %v8592_v31 }
 0x453   : > { %6891 = vmatprep.subr.bf16.mxu0 %v8597_v33 }
 0x456   : > { %6892 = vmatpush1.bf16.msra.mxu0 %v8595_v55  ;;  %v4161_v55 = vld [vmem:[#allocation2 + $0x38] sm:$0xff] }
 0x457   : > { %6893 = vmatprep.subr.bf16.mxu0 %v8600_v34 }
 0x45a   : > { %6894 = vmatpush1.bf16.msra.mxu0 %v8598_v35 }
 0x45b   : > { %6895 = vmatprep.subr.bf16.mxu0 %v8603_v38  ;;  %v8670_v38 = vld [vmem:[%s9643_s25 + $0xa30] ss:$24 sps:$4 sm:$0xff]  }
 0x45e   : > { %6896 = vmatpush1.bf16.msra.mxu0 %v8601_v39 }
 0x45f   : > { %6908 = vmatprep.subr.bf16.mxu0 %v8606_v40 }
 0x461   : > { %6898 = vmatmul.mubr.bf16.vlgmr.msra.gmra.mrb[12].mxu0 %v10298_v3  ;;  %v8618_v3 = vld [vmem:[%s9643_s25 + $0x6d4] ss:$24 sps:$4 sm:$0xff]  }
 0x462   : > { %6909 = vmatpush1.bf16.msra.mxu0 %v8604_v30  ;;  %6940 = vmatprep.mubr.bf16.mxu0 %v10249_v4  ;;  %v8621_v4 = vld [vmem:[%s9643_s25 + $0x704] ss:$24 sps:$4 sm:$0xff]  }
 0x463   : > { %6910 = vmatprep.subr.bf16.mxu0 %v8609_v42  ;;  %v8675_v30 = vld [vmem:[%s9643_s25 + $0xa64] ss:$24 sps:$4 sm:$0xff]  }
 0x466   : > { %6911 = vmatpush1.bf16.msra.mxu0 %v8607_v32  ;;  %v8673_v32 = vld [vmem:[%s9643_s25 + $0xa60] ss:$24 sps:$4 sm:$0xff]  }
 0x467   : > { %6912 = vmatprep.subr.bf16.mxu0 %v8612_v43  ;;  %v8678_v43 = vld [vmem:[%s9643_s25 + $0xa94] ss:$24 sps:$4 sm:$0xff]  }
 0x46a   : > { %6913 = vmatpush1.bf16.msra.mxu0 %v8610_v45  ;;  %v4156_v45 = vld [vmem:[#allocation2 + $0x10] sm:$0xff] }
 0x46b   : > { %6914 = vmatprep.subr.bf16.mxu0 %v8615_v37  ;;  %v4157_v37 = vld [vmem:[#allocation2 + $0x18] sm:$0xff] }
 0x46e   : > { %6915 = vmatpush1.bf16.msra.mxu0 %v8613_v41  ;;  %v8676_v41 = vld [vmem:[%s9643_s25 + $0xa90] ss:$24 sps:$4 sm:$0xff]  }
 0x46f   : > { %6916 = vmatprep.subr.bf16.mxu0 %v8618_v3 }
 0x472   : > { %6917 = vmatpush1.bf16.msra.mxu0 %v8616_v9  ;;  %v4162_v9 = vld [vmem:[#allocation2 + $0x40] sm:$0xff] }
 0x473   : > { %6918 = vmatprep.subr.bf16.mxu0 %v8621_v4  ;;  %v8681_v4 = vld [vmem:[%s9643_s25 + $0xac4] ss:$24 sps:$4 sm:$0xff]  }
 0x476   : > { %6919 = vmatpush1.bf16.msra.mxu0 %v8619_v15 }
 0x477   : > { %6920 = vmatprep.subr.bf16.mxu0 %v8624_v48 }
 0x47a   : > { %6921 = vmatpush1.bf16.msra.mxu0 %v8622_v2  ;;  %v4163_v2 = vld [vmem:[#allocation2 + $0x48] sm:$0xff] }
 0x47b   : > { %6922 = vmatprep.subr.bf16.mxu0 %v8627_v51 }
 0x47e   : > { %6923 = vmatpush1.bf16.msra.mxu0 %v8625_v6 }
 0x47f   : > { %6924 = vmatprep.subr.bf16.mxu0 %v8630_v36 }
 0x482   : > { %6925 = vmatpush1.bf16.msra.mxu0 %v8628_v52 }
 0x483   : > { %6926 = vmatprep.subr.bf16.mxu0 %v8633_v49  ;;  %v8679_v49 = vld [vmem:[%s9643_s25 + $0xac0] ss:$24 sps:$4 sm:$0xff]  }
 0x486   : > { %6927 = vmatpush1.bf16.msra.mxu0 %v8631_v53 }
 0x487   : > { %6928 = vmatprep.subr.bf16.mxu0 %v8636_v8  ;;  %v8684_v8 = vld [vmem:[%s9643_s25 + $0xaf4] ss:$24 sps:$4 sm:$0xff]  }
 0x48a   : > { %6929 = vmatpush1.bf16.msra.mxu0 %v8634_v56  ;;  %v8682_v56 = vld [vmem:[%s9643_s25 + $0xaf0] ss:$24 sps:$4 sm:$0xff]  }
 0x48b   : > { %6930 = vmatprep.subr.bf16.mxu0 %v8639_v12  ;;  %v8687_v12 = vld [vmem:[%s9643_s25 + $0xb24] ss:$24 sps:$4 sm:$0xff]  }
 0x48e   : > { %6931 = vmatpush1.bf16.msra.mxu0 %v8637_v27  ;;  %v8685_v27 = vld [vmem:[%s9643_s25 + $0xb20] ss:$24 sps:$4 sm:$0xff]  }
 0x48f   : > { %6932 = vmatprep.subr.bf16.mxu0 %v8642_v57  ;;  %v8690_v57 = vld [vmem:[%s9643_s25 + $0xb54] ss:$24 sps:$4 sm:$0xff]  }
 0x492   : > { %6933 = vmatpush1.bf16.msra.mxu0 %v8640_v58  ;;  %v8688_v58 = vld [vmem:[%s9643_s25 + $0xb50] ss:$24 sps:$4 sm:$0xff]  }
 0x493   : > { %6934 = vmatprep.subr.bf16.mxu0 %v8645_v59  ;;  %v8693_v59 = vld [vmem:[%s9643_s25 + $0xb84] ss:$24 sps:$4 sm:$0xff]  }
 0x496   : > { %6935 = vmatpush1.bf16.msra.mxu0 %v8643_v61  ;;  %v8691_v61 = vld [vmem:[%s9643_s25 + $0xb80] ss:$24 sps:$4 sm:$0xff]  }
 0x497   : > { %6936 = vmatprep.subr.bf16.mxu0 %v8648_v63  ;;  %v8696_v63 = vld [vmem:[%s9643_s25 + $0xbb4] ss:$24 sps:$4 sm:$0xff]  }
 0x49a   : > { %6937 = vmatpush1.bf16.msra.mxu0 %v8646_v0  ;;  %v8694_v0 = vld [vmem:[%s9643_s25 + $0xbb0] ss:$24 sps:$4 sm:$0xff]  }
 0x49b   : > { %6938 = vmatprep.subr.bf16.mxu0 %v8651_v54  ;;  %v8699_v54 = vld [vmem:[%s9643_s25 + $0xbe4] ss:$24 sps:$4 sm:$0xff]  }
 0x49e   : > { %6939 = vmatpush1.bf16.msra.mxu0 %v8649_v60  ;;  %v8697_v60 = vld [vmem:[%s9643_s25 + $0xbe0] ss:$24 sps:$4 sm:$0xff]  }
 0x49f   : > { %6951 = vmatprep.subr.bf16.mxu0 %v8654_v5  ;;  %v4158_v5 = vld [vmem:[#allocation2 + $0x20] sm:$0xff] }
 0x4a1   : > { %6941 = vmatmul.mubr.bf16.vlgmr.msra.gmra.mrb[12].mxu0 %v10247_v46  ;;  %v8669_v46 = vld [vmem:[%s9643_s25 + $0xa04] ss:$24 sps:$4 sm:$0xff]  }
 0x4a2   : > { %6952 = vmatpush1.bf16.msra.mxu0 %v8652_v62  ;;  %6983 = vmatprep.mubr.bf16.mxu0 %v10483_v18  ;;  %v4154_v18 = vld [vmem:[#allocation2] sm:$0xff]  ;;  %v4159_v62 = vld [vmem:[#allocation2 + $0x28] sm:$0xff] }
 0x4a3   : > { %6953 = vmatprep.subr.bf16.mxu0 %v8657_v24 }
 0x4a6   : > { %6954 = vmatpush1.bf16.msra.mxu0 %v8655_v10  ;;  %v4164_v10 = vld [vmem:[#allocation2 + $0x50] sm:$0xff] }
 0x4a7   : > { %6955 = vmatprep.subr.bf16.mxu0 %v8660_v14 }
 0x4aa   : > { %6956 = vmatpush1.bf16.msra.mxu0 %v8658_v16 }
 0x4ab   : > { %6957 = vmatprep.subr.bf16.mxu0 %v8663_v1  ;;  %v4165_v1 = vld [vmem:[#allocation2 + $0x58] sm:$0xff] }
 0x4ae   : > { %6958 = vmatpush1.bf16.msra.mxu0 %v8661_v20 }
 0x4af   : > { %6959 = vmatprep.subr.bf16.mxu0 %v8666_v7 }
 0x4b2   : > { %6960 = vmatpush1.bf16.msra.mxu0 %v8664_v19 }
 0x4b3   : > { %6961 = vmatprep.subr.bf16.mxu0 %v8669_v46 }
 0x4b4   : > { %v6641_v28 = vpop.f32.mrb[8].mxu0 }
 0x4b5   : > { %v6994_v31 = vadd.f32 %v6641_v28, %v4154_v18  ;;  %v6643_v33 = vpop.f32.mrb[9].mxu0 }
 0x4b6   : > { %v6995_v34 = vadd.f32 %v6643_v33, %v4155_v23  ;;  %6962 = vmatpush1.bf16.msra.mxu0 %v8667_v21  ;;  %v6645_v35 = vpop.f32.mrb[10].mxu0  ;;  %v7034_v21 = vld [vmem:[%s10699_s4] sm:$0x3f] (!%p7981_p12) }
 0x4b7   : > { %7006 = vst [vmem:[#allocation2] sm:$0xff] %v6994_v31  ;;  %v7000_v39 = vadd.f32 %v6645_v35, %v4160_v29  ;;  %v6647_v40 = vpop.f32.mrb[11].mxu0  ;;  %6963 = vmatprep.subr.bf16.mxu0 %v8672_v26  ;;  %v7039_v26 = vrot.slane (!%p7981_p12), %v7034_v21, %v1506_v22  ;;  %v7043_v28 = vrot.slane (!%p7981_p12), %v7034_v21, %v1510_v25 }
 0x4b8   : > { %7007 = vst [vmem:[#allocation2 + $0x8] sm:$0xff] %v6995_v34  ;;  %v7001_v42 = vadd.f32 %v6647_v40, %v4161_v55  ;;  %v7047_v31 = vrot.slane (!%p7981_p12), %v7034_v21, %v1514_v47  ;;  %v7051_v55 = vrot.slane (!%p7981_p12), %v7034_v21, %v1518_v50  ;;  %v7055_v35 = vrot.slane (!%p7981_p12), %v7034_v21, %v1522_v11 }
 0x4b9   : > { %7012 = vst [vmem:[#allocation2 + $0x30] sm:$0xff] %v7000_v39  ;;  %v7059_v39 = vrot.slane (!%p7981_p12), %v7034_v21, %v1526_v44 }
 0x4ba   : > { %7013 = vst [vmem:[#allocation2 + $0x38] sm:$0xff] %v7001_v42  ;;  %6964 = vmatpush1.bf16.msra.mxu0 %v8670_v38 }
 0x4bb   : > { %6965 = vmatprep.subr.bf16.mxu0 %v8675_v30 }
 0x4be   : > { %6966 = vmatpush1.bf16.msra.mxu0 %v8673_v32 }
 0x4bf   : > { %v6813_v3 = vpop.f32.mrb[12].mxu1  ;;  %6967 = vmatprep.subr.bf16.mxu0 %v8678_v43  ;;  %v7023_v23 = vld [vmem:[#allocation2 + $0x8] sm:$0xff] (!%p7981_p12) }
 0x4c0   : > { %v6996_v15 = vadd.f32 %v6813_v3, %v4156_v45  ;;  %v6815_v48 = vpop.f32.mrb[13].mxu1  ;;  %v7028_v22 = vld [vmem:[#allocation2 + $0x30] sm:$0xff] (!%p7981_p12)  ;;  %v7067_v25 = vadd.f32 (!%p7981_p12), %v7043_v28, %v7023_v23 }
 0x4c1   : > { %v6997_v51 = vadd.f32 %v6815_v48, %v4157_v37  ;;  %v6817_v6 = vpop.f32.mrb[14].mxu1  ;;  %v7029_v40 = vld [vmem:[#allocation2 + $0x38] sm:$0xff] (!%p7981_p12)  ;;  %v7072_v50 = vadd.f32 (!%p7981_p12), %v7039_v26, %v7028_v22 }
 0x4c2   : > { %7008 = vst [vmem:[#allocation2 + $0x10] sm:$0xff] %v6996_v15  ;;  %v7002_v36 = vadd.f32 %v6817_v6, %v4162_v9  ;;  %6968 = vmatpush1.bf16.msra.mxu0 %v8676_v41  ;;  %v6819_v52 = vpop.f32.mrb[15].mxu1  ;;  %v7073_v3 = vadd.f32 (!%p7981_p12), %v7043_v28, %v7029_v40  ;;  %7079 = vst [vmem:[%s10700_s5 + $0x8] sm:$0xff] (!%p7981_p12), %v7067_v25 }
 0x4c3   : > { %7009 = vst [vmem:[#allocation2 + $0x18] sm:$0xff] %v6997_v51  ;;  %v7003_v53 = vadd.f32 %v6819_v52, %v4163_v2  ;;  %6969 = vmatprep.subr.bf16.mxu0 %v8681_v4  ;;  %7084 = vst [vmem:[%s10700_s5 + $0x30] sm:$0xff] (!%p7981_p12), %v7072_v50 }
 0x4c4   : > { %7014 = vst [vmem:[#allocation2 + $0x40] sm:$0xff] %v7002_v36  ;;  %7085 = vst [vmem:[%s10700_s5 + $0x38] sm:$0xff] (!%p7981_p12), %v7073_v3 }
 0x4c5   : > { %7015 = vst [vmem:[#allocation2 + $0x48] sm:$0xff] %v7003_v53 }
 0x4c6   : > { %6970 = vmatpush1.bf16.msra.mxu0 %v8679_v49 }
 0x4c7   : > { %6971 = vmatprep.subr.bf16.mxu0 %v8684_v8 }
 0x4c9   : > { %v7024_v29 = vld [vmem:[#allocation2 + $0x10] sm:$0xff] (!%p7981_p12) }
 0x4ca   : > { %6972 = vmatpush1.bf16.msra.mxu0 %v8682_v56  ;;  %v7025_v33 = vld [vmem:[#allocation2 + $0x18] sm:$0xff] (!%p7981_p12)  ;;  %v7068_v42 = vadd.f32 (!%p7981_p12), %v7047_v31, %v7024_v29 }
 0x4cb   : > { %6973 = vmatprep.subr.bf16.mxu0 %v8687_v12  ;;  %v7069_v32 = vadd.f32 (!%p7981_p12), %v7051_v55, %v7025_v33  ;;  %v7030_v43 = vld [vmem:[#allocation2 + $0x40] sm:$0xff] (!%p7981_p12) }
 0x4cc   : > { %v7031_v47 = vld [vmem:[#allocation2 + $0x48] sm:$0xff] (!%p7981_p12)  ;;  %7080 = vst [vmem:[%s10700_s5 + $0x10] sm:$0xff] (!%p7981_p12), %v7068_v42  ;;  %v7074_v17 = vadd.f32 (!%p7981_p12), %v7047_v31, %v7030_v43 }
 0x4cd   : > { %7081 = vst [vmem:[%s10700_s5 + $0x18] sm:$0xff] (!%p7981_p12), %v7069_v32  ;;  %v7075_v11 = vadd.f32 (!%p7981_p12), %v7051_v55, %v7031_v47 }
 0x4ce   : > { %6974 = vmatpush1.bf16.msra.mxu0 %v8685_v27  ;;  %7086 = vst [vmem:[%s10700_s5 + $0x40] sm:$0xff] (!%p7981_p12), %v7074_v17 }
 0x4cf   : > { %6975 = vmatprep.subr.bf16.mxu0 %v8690_v57  ;;  %7087 = vst [vmem:[%s10700_s5 + $0x48] sm:$0xff] (!%p7981_p12), %v7075_v11 }
 0x4d2   : > { %6976 = vmatpush1.bf16.msra.mxu0 %v8688_v58 }
 0x4d3   : > { %6977 = vmatprep.subr.bf16.mxu0 %v8693_v59 }
 0x4d6   : > { %6978 = vmatpush1.bf16.msra.mxu0 %v8691_v61 }
 0x4d7   : > { %6979 = vmatprep.subr.bf16.mxu0 %v8696_v63 }
 0x4da   : > { %6980 = vmatpush1.bf16.msra.mxu0 %v8694_v0 }
 0x4db   : > { %6981 = vmatprep.subr.bf16.mxu0 %v8699_v54 }
 0x4de   : > { %6982 = vmatpush1.bf16.msra.mxu0 %v8697_v60 }
 0x4e1   : > { %6984 = vmatmul.mubr.bf16.vlgmr.msra.gmra.mrb[12].mxu0 %v10481_v13  ;;  %v7022_v13 = vld [vmem:[#allocation2] sm:$0xff] (!%p7981_p12) }
 0x4e2   : > { %v7066_v30 = vadd.f32 (!%p7981_p12), %v7039_v26, %v7022_v13 }
 0x4e4   : > { %7078 = vst [vmem:[%s10700_s5] sm:$0xff] (!%p7981_p12), %v7066_v30 }
 0x5b4   : > { %v6985_v24 = vpop.f32.mrb[12].mxu0  ;;  %7021 = sbr.rel (%p7981_p12) target bundleno = 1477 (0x5c5), region = 71 }
 0x5b5   : > { %v6998_v14 = vadd.f32 %v6985_v24, %v4158_v5  ;;  %v6987_v16 = vpop.f32.mrb[13].mxu0 }
 0x5b6   : > { %v6999_v20 = vadd.f32 %v6987_v16, %v4159_v62  ;;  %v6989_v7 = vpop.f32.mrb[14].mxu0 }
 0x5b7   : > { %7010 = vst [vmem:[#allocation2 + $0x20] sm:$0xff] %v6998_v14  ;;  %v7004_v19 = vadd.f32 %v6989_v7, %v4164_v10  ;;  %v6991_v46 = vpop.f32.mrb[15].mxu0 }
 0x5b8   : > { %7011 = vst [vmem:[#allocation2 + $0x28] sm:$0xff] %v6999_v20  ;;  %v7005_v18 = vadd.f32 %v6991_v46, %v4165_v1 }
 0x5b9   : > { %7016 = vst [vmem:[#allocation2 + $0x50] sm:$0xff] %v7004_v19 }
 0x5ba   : > { %7017 = vst [vmem:[#allocation2 + $0x58] sm:$0xff] %v7005_v18 }
 0x5be   : > { %v7026_v34 = vld [vmem:[#allocation2 + $0x20] sm:$0xff] }
 0x5bf   : > { %v7027_v38 = vld [vmem:[#allocation2 + $0x28] sm:$0xff]  ;;  %v7070_v37 = vadd.f32 %v7055_v35, %v7026_v34 }
 0x5c0   : > { %v7032_v45 = vld [vmem:[#allocation2 + $0x50] sm:$0xff]  ;;  %v7071_v41 = vadd.f32 %v7059_v39, %v7027_v38 }
 0x5c1   : > { %v7033_v9 = vld [vmem:[#allocation2 + $0x58] sm:$0xff]  ;;  %v7076_v44 = vadd.f32 %v7055_v35, %v7032_v45  ;;  %7082 = vst [vmem:[%s10700_s5 + $0x20] sm:$0xff] %v7070_v37 }
 0x5c2   : > { %v7077_v4 = vadd.f32 %v7059_v39, %v7033_v9  ;;  %7083 = vst [vmem:[%s10700_s5 + $0x28] sm:$0xff] %v7071_v41 }
 0x5c3   : > { %7088 = vst [vmem:[%s10700_s5 + $0x50] sm:$0xff] %v7076_v44 }
 0x5c4   : > { %7089 = vst [vmem:[%s10700_s5 + $0x58] sm:$0xff] %v7077_v4 }
 0x5c5 PF: > { %s15_s22 = sadd.s32 1, %s8782_s22   ;;  %s10701_s18 = smov %s8770_s19 }
 0x5c6   : > { %p12_p13 = scmp.ge.s32.totalorder %s15_s22, 5   ;;  %s10702_s19 = smov %s8850_s26 }
 0x5c7   : > { %s10703_s20 = smov %s8778_s21  ;;  %s10704_s21 = smov %s10706_s23 }
 0x5c8   :  { %14 = sbr.rel (!%p12_p13) target bundleno = 3 (0x3), region = 115 }

</bundles_post_ra>
